<compile_context>
chip_gen: v5e
topology: v5e:2x2
jax: 0.10.0
libtpu: 0.0.40
codegen_flags: <defaults>
</compile_context>

<pallas_src>
import math
from functools import partial

import jax
import jax.numpy as jnp
from jax import lax
from jax.experimental import pallas as pl
from jax.experimental.pallas import tpu as pltpu

EMBED = 8          # embed_dim
KSIZE = 5          # Conv1d kernel_size
NHEAD = 8          # nhead == embed_dim  ->  head_dim == 1
DIM_FF = 2048      # nn.TransformerEncoderLayer default dim_feedforward
NUM_CLASSES = 2
LN_EPS = 1e-5
LANE = 128         # lane-dense output padding
MAX_TB = 32        # upper bound on examples per grid step


def sinusoidal_pe(seq_len, d_model):
    """Standard PyTorch-tutorial sinusoidal positional encoding, shape (S, E)."""
    pos = jnp.arange(seq_len, dtype=jnp.float32)[:, None]
    div = jnp.exp(jnp.arange(0, d_model, 2, dtype=jnp.float32)
                  * (-math.log(10000.0) / d_model))
    pe = jnp.zeros((seq_len, d_model), jnp.float32)
    pe = pe.at[:, 0::2].set(jnp.sin(pos * div))
    pe = pe.at[:, 1::2].set(jnp.cos(pos * div))
    return pe


def _max_tb(S):
    """Largest (even) TB keeping the attention tensor and FFN slab VMEM-safe."""
    cap_attn = max(2, (8 << 20) // max(1, S * S * EMBED * 4))   # (S,S,TB*E) f32
    cap_ffn = max(2, (8 << 20) // max(1, S * DIM_FF * 4))       # (TB*S,2048) f32
    tb = min(MAX_TB, cap_attn, cap_ffn)
    return max(2, tb - (tb % 2))


def _choose_tile(B, S):
    """Pick TB (examples per grid step).  TB is even whenever n_steps > 1 so
    R = TB*S stays a multiple of 8 (S = L-4 is always a multiple of 4)."""
    max_tb = _max_tb(S)
    if B <= 2:
        return B                       # single step; block dims == array dims
    if B >= 2 * max_tb:
        return max_tb                  # many steps
    tb = -(-B // 2)                    # ceil(B/2) -> 2 steps (both TCs on v7x)
    if tb % 2:
        tb += 1
    return min(tb, max_tb)


def _classifier_kernel(patches_ref, add0_ref, convwt_ref, wqkvt_ref, bqkv_ref,
                       wot_ref, vecs_ref, w1t_ref, bf1_ref, w2t_ref,
                       woutp_ref, boutp_ref, out_ref, *, TB, S):
    E = EMBED
    R = TB * S

    # ---- Conv1d as im2col matmul, + (conv bias + positional encoding)
    x = jnp.dot(patches_ref[...], convwt_ref[...],
                preferred_element_type=jnp.float32) + add0_ref[...]          # (R, E)

    # ---- QKV projection for all TB*S rows at once
    qkv = jnp.dot(x, wqkvt_ref[...],
                  preferred_element_type=jnp.float32) + bqkv_ref[...]        # (R, 3E)
    q = qkv[:, :E]
    k = qkv[:, E:2 * E]
    v = qkv[:, 2 * E:3 * E]

    # ---- pack (example, head) onto the lane axis: (TB*S, E) -> (S, TB*E)
    def pack(t):
        return jnp.concatenate([t[b * S:(b + 1) * S, :] for b in range(TB)],
                               axis=1)

    q_p = pack(q)                                                            # (S, TB*E)
    k_p = pack(k)
    v_p = pack(v)

    # ---- self-attention, all examples & heads at once
    # head_dim == 1  ->  scale == 1;  lane c = b*E + h, key index = axis 1
    s3 = q_p[:, None, :] * k_p[None, :, :]                                   # (S, S, TB*E)
    m = jnp.max(s3, axis=1, keepdims=True)
    e3 = jnp.exp(s3 - m)
    denom = jnp.sum(e3, axis=1)                                              # (S, TB*E)
    o_p = jnp.sum(e3 * v_p[None, :, :], axis=1)                              # (S, TB*E)
    o_p = o_p * pl.reciprocal(denom, approx=False)   # one recip/row, after reduce

    # ---- unpack back to row-major (TB*S, E)
    attn = jnp.concatenate([o_p[:, b * E:(b + 1) * E] for b in range(TB)],
                           axis=0)                                           # (R, E)

    a = jnp.dot(attn, wot_ref[...],
                preferred_element_type=jnp.float32) + vecs_ref[0:1, :]       # + bo

    # ---- residual + LayerNorm1 (post-norm)
    h1 = x + a
    mu1 = jnp.mean(h1, axis=-1, keepdims=True)
    var1 = jnp.mean((h1 - mu1) ** 2, axis=-1, keepdims=True)
    h1 = (h1 - mu1) * lax.rsqrt(var1 + LN_EPS) * vecs_ref[1:2, :] + vecs_ref[2:3, :]

    # ---- feed-forward (ReLU)
    f = jnp.dot(h1, w1t_ref[...],
                preferred_element_type=jnp.float32) + bf1_ref[...]           # (R, Dff)
    f = jnp.maximum(f, 0.0)
    f2 = jnp.dot(f, w2t_ref[...],
                 preferred_element_type=jnp.float32) + vecs_ref[3:4, :]      # + bf2

    # ---- residual + LayerNorm2
    h2 = h1 + f2
    mu2 = jnp.mean(h2, axis=-1, keepdims=True)
    var2 = jnp.mean((h2 - mu2) ** 2, axis=-1, keepdims=True)
    h2 = (h2 - mu2) * lax.rsqrt(var2 + LN_EPS) * vecs_ref[4:5, :] + vecs_ref[5:6, :]

    # ---- per-example mean over sequence: block-diagonal pooling matrix built
    # in-kernel from iotas (no O(TB^2) HBM input), applied as one matmul.
    r_idx = lax.broadcasted_iota(jnp.int32, (TB, R), 1)
    b_lo = lax.broadcasted_iota(jnp.int32, (TB, R), 0) * S
    pool = jnp.where((r_idx >= b_lo) & (r_idx < b_lo + S),
                     1.0 / S, 0.0).astype(jnp.float32)                       # (TB, R)
    pooled = jnp.dot(pool, h2, preferred_element_type=jnp.float32)           # (TB, E)

    # ---- final Linear(E, 2), lane-padded to 128 for a dense store
    logits = jnp.dot(pooled, woutp_ref[...],
                     preferred_element_type=jnp.float32) + boutp_ref[...]    # (TB, 128)
    out_ref[0] = logits


def language_classifier_forward(x, params):
    """x: (B, L) float32 -> logits (B, 2). Whole forward fused in one kernel."""
    B, L = x.shape
    S = L - KSIZE + 1
    assert S >= 1

    TB = _choose_tile(B, S)
    n_steps = -(-B // TB)
    B_pad = n_steps * TB
    R = TB * S

    xf = x.astype(jnp.float32)
    if B_pad != B:
        xf = jnp.concatenate([xf, jnp.zeros((B_pad - B, L), jnp.float32)], axis=0)

    # im2col in the wrapper -> contiguous (B_pad*S, K) patch rows (one dense DMA
    # per grid step).
    # TODO(synk): could be folded into the kernel from a (TB, L) block to drop the
    # K-fold HBM inflation; negligible at these sizes so kept host-side.
    patches = jnp.stack([xf[:, kk:kk + S] for kk in range(KSIZE)], axis=-1)
    patches = patches.reshape(B_pad * S, KSIZE)

    pe = sinusoidal_pe(S, EMBED)
    # conv bias + positional encoding fused into one additive (R, E) tile
    add0 = jnp.tile(pe, (TB, 1)) + params['conv_b'].astype(jnp.float32)[None, :]

    # pack the small (E,)-sized bias/gain vectors into one slab
    vecs = jnp.zeros((8, EMBED), jnp.float32)
    vecs = vecs.at[0].set(params['bo'].astype(jnp.float32))
    vecs = vecs.at[1].set(params['g1'].astype(jnp.float32))
    vecs = vecs.at[2].set(params['be1'].astype(jnp.float32))
    vecs = vecs.at[3].set(params['bf2'].astype(jnp.float32))
    vecs = vecs.at[4].set(params['g2'].astype(jnp.float32))
    vecs = vecs.at[5].set(params['be2'].astype(jnp.float32))

    # lane-padded final linear (dense 128-wide store; wrapper slices logits out)
    wout_pad = jnp.zeros((EMBED, LANE), jnp.float32).at[:, :NUM_CLASSES].set(
        params['wout'].T.astype(jnp.float32))
    bout_pad = jnp.zeros((1, LANE), jnp.float32).at[0, :NUM_CLASSES].set(
        params['bout'].astype(jnp.float32))

    def row(v):
        return v.reshape(1, -1).astype(jnp.float32)

    weights = [
        add0,                                       # (R, E)
        params['conv_w'].T.astype(jnp.float32),     # (K, E)
        params['wqkv'].T.astype(jnp.float32),       # (E, 3E)
        row(params['bqkv']),                        # (1, 3E)
        params['wo'].T.astype(jnp.float32),         # (E, E)
        vecs,                                       # (8, E)
        params['w1'].T.astype(jnp.float32),         # (E, Dff)
        row(params['bf1']),                         # (1, Dff)
        params['w2'].T.astype(jnp.float32),         # (Dff, E)
        wout_pad,                                   # (E, 128)
        bout_pad,                                   # (1, 128)
    ]

    in_specs = ([pl.BlockSpec((R, KSIZE), lambda b: (b, 0))]
                + [pl.BlockSpec(w.shape, lambda b: (0, 0)) for w in weights])

    kernel_fn = partial(_classifier_kernel, TB=TB, S=S)

    out = pl.pallas_call(
        kernel_fn,
        out_shape=jax.ShapeDtypeStruct((n_steps, TB, LANE), jnp.float32),
        grid=(n_steps,),
        in_specs=in_specs,
        out_specs=pl.BlockSpec((1, TB, LANE), lambda b: (b, 0, 0)),
        compiler_params=pltpu.CompilerParams(
            dimension_semantics=("parallel",),
            vmem_limit_bytes=32 * 1024 * 1024),
    )(patches, *weights)

    return out.reshape(B_pad, LANE)[:B, :NUM_CLASSES]


# ----------------------- pure-JAX reference (for checking) -----------------------
def _layer_norm(x, g, b):
    mu = x.mean(axis=-1, keepdims=True)
    var = ((x - mu) ** 2).mean(axis=-1, keepdims=True)
    return (x - mu) / jnp.sqrt(var + LN_EPS) * g + b


def reference_forward(x, params):
    B, L = x.shape
    S = L - KSIZE + 1
    E = EMBED
    cols = jnp.stack([x[:, k:k + S] for k in range(KSIZE)], axis=-1)      # (B, S, K)
    h = jnp.einsum('bsk,ek->bse', cols, params['conv_w']) + params['conv_b']
    xs = h + sinusoidal_pe(S, E)[None]
    qkv = xs @ params['wqkv'].T + params['bqkv']
    q, k, v = qkv[..., :E], qkv[..., E:2 * E], qkv[..., 2 * E:]
    H = NHEAD
    d = E // H
    qh = q.reshape(B, S, H, d)
    kh = k.reshape(B, S, H, d)
    vh = v.reshape(B, S, H, d)
    scores = jnp.einsum('bihd,bjhd->bhij', qh, kh) / math.sqrt(d)
    attn = jax.nn.softmax(scores, axis=-1)
    o = jnp.einsum('bhij,bjhd->bihd', attn, vh).reshape(B, S, E)
    a = o @ params['wo'].T + params['bo']
    h1 = _layer_norm(xs + a, params['g1'], params['be1'])
    f = jax.nn.relu(h1 @ params['w1'].T + params['bf1'])
    f2 = f @ params['w2'].T + params['bf2']
    h2 = _layer_norm(h1 + f2, params['g2'], params['be2'])
    pooled = h2.mean(axis=1)
    return pooled @ params['wout'].T + params['bout']


def init_params(key):
    ks = jax.random.split(key, 12)

    def nrm(k, shape, scale=0.1):
        return scale * jax.random.normal(k, shape, dtype=jnp.float32)

    return dict(
        conv_w=nrm(ks[0], (EMBED, KSIZE)),          # Conv1d weight (E,1,K) squeezed
        conv_b=nrm(ks[1], (EMBED,)),
        wqkv=nrm(ks[2], (3 * EMBED, EMBED)),        # MHA in_proj_weight
        bqkv=nrm(ks[3], (3 * EMBED,)),
        wo=nrm(ks[4], (EMBED, EMBED)),              # MHA out_proj
        bo=nrm(ks[5], (EMBED,)),
        g1=jnp.ones((EMBED,), jnp.float32),
        be1=jnp.zeros((EMBED,), jnp.float32),
        w1=nrm(ks[6], (DIM_FF, EMBED)),             # linear1
        bf1=nrm(ks[7], (DIM_FF,)),
        w2=nrm(ks[8], (EMBED, DIM_FF)),             # linear2
        bf2=nrm(ks[9], (EMBED,)),
        g2=jnp.ones((EMBED,), jnp.float32),
        be2=jnp.zeros((EMBED,), jnp.float32),
        wout=nrm(ks[10], (NUM_CLASSES, EMBED)),     # final Linear(E, 2)
        bout=nrm(ks[11], (NUM_CLASSES,)),
    )


if __name__ == "__main__":
    key = jax.random.PRNGKey(0)
    kx, kx2, kp = jax.random.split(key, 3)
    params = init_params(kp)

    # primary check: the module's small shapes (batch=2, seq=16)
    B, L = 2, 16
    x = jax.random.normal(kx, (B, L), dtype=jnp.float32)
    out = jax.block_until_ready(language_classifier_forward(x, params))
    ref = reference_forward(x, params)
    assert out.shape == (B, NUM_CLASSES)
    assert jnp.allclose(out, ref, atol=1e-4, rtol=1e-4), (out, ref)

    # second check: odd batch -> padded, multi-step "parallel" grid (2 steps)
    B2 = 37
    x2 = jax.random.normal(kx2, (B2, L), dtype=jnp.float32)
    out2 = jax.block_until_ready(language_classifier_forward(x2, params))
    ref2 = reference_forward(x2, params)
    assert out2.shape == (B2, NUM_CLASSES)
    assert jnp.allclose(out2, ref2, atol=1e-4, rtol=1e-4)

    print("KERNEL_OK")
</pallas_src>

<mosaic_0001>
module attributes {stable_mosaic.version = 11 : i64} {
  func.func @_classifier_kernel(%arg0: i32, %arg1: memref<24x5xf32, #tpu.memory_space<vmem>>, %arg2: memref<24x8xf32, #tpu.memory_space<vmem>>, %arg3: memref<5x8xf32, #tpu.memory_space<vmem>>, %arg4: memref<8x24xf32, #tpu.memory_space<vmem>>, %arg5: memref<1x24xf32, #tpu.memory_space<vmem>>, %arg6: memref<8x8xf32, #tpu.memory_space<vmem>>, %arg7: memref<8x8xf32, #tpu.memory_space<vmem>>, %arg8: memref<8x2048xf32, #tpu.memory_space<vmem>>, %arg9: memref<1x2048xf32, #tpu.memory_space<vmem>>, %arg10: memref<2048x8xf32, #tpu.memory_space<vmem>>, %arg11: memref<8x128xf32, #tpu.memory_space<vmem>>, %arg12: memref<1x128xf32, #tpu.memory_space<vmem>>, %arg13: memref<1x2x128xf32, #tpu.memory_space<vmem>>) attributes {dimension_semantics = [#tpu.dimension_semantics<parallel>], iteration_bounds = array<i64: 1>, scalar_prefetch = 0 : i64, scratch_operands = 0 : i64, tpu.core_type = #tpu.core_type<tc>, window_params = [{transform_indices = @transform_0, window_bounds = array<i64: 24, 5>}, {pipeline_mode = #tpu.pipeline_mode<synchronous>, transform_indices = @transform_1, window_bounds = array<i64: 24, 8>}, {pipeline_mode = #tpu.pipeline_mode<synchronous>, transform_indices = @transform_2, window_bounds = array<i64: 5, 8>}, {pipeline_mode = #tpu.pipeline_mode<synchronous>, transform_indices = @transform_3, window_bounds = array<i64: 8, 24>}, {pipeline_mode = #tpu.pipeline_mode<synchronous>, transform_indices = @transform_4, window_bounds = array<i64: 1, 24>}, {pipeline_mode = #tpu.pipeline_mode<synchronous>, transform_indices = @transform_5, window_bounds = array<i64: 8, 8>}, {pipeline_mode = #tpu.pipeline_mode<synchronous>, transform_indices = @transform_6, window_bounds = array<i64: 8, 8>}, {pipeline_mode = #tpu.pipeline_mode<synchronous>, transform_indices = @transform_7, window_bounds = array<i64: 8, 2048>}, {pipeline_mode = #tpu.pipeline_mode<synchronous>, transform_indices = @transform_8, window_bounds = array<i64: 1, 2048>}, {pipeline_mode = #tpu.pipeline_mode<synchronous>, transform_indices = @transform_9, window_bounds = array<i64: 2048, 8>}, {pipeline_mode = #tpu.pipeline_mode<synchronous>, transform_indices = @transform_10, window_bounds = array<i64: 8, 128>}, {pipeline_mode = #tpu.pipeline_mode<synchronous>, transform_indices = @transform_11, window_bounds = array<i64: 1, 128>}, {transform_indices = @transform_12, window_bounds = array<i64: 1, 2, 128>}]} {
    %c0 = arith.constant 0 : index
    %c0_0 = arith.constant 0 : index
    %0 = vector.load %arg1[%c0, %c0_0] : memref<24x5xf32, #tpu.memory_space<vmem>>, vector<24x5xf32>
    %c0_1 = arith.constant 0 : index
    %c0_2 = arith.constant 0 : index
    %1 = vector.load %arg3[%c0_1, %c0_2] : memref<5x8xf32, #tpu.memory_space<vmem>>, vector<5x8xf32>
    %cst = arith.constant dense<0.000000e+00> : vector<24x8xf32>
    %2 = tpu.matmul %0, %1, %cst {dimension_numbers = #tpu.dot_dimension_numbers<[1], [0], [0], [1], [0, 0, 1, 1], [], []>} : vector<24x5xf32>, vector<5x8xf32>, vector<24x8xf32> -> vector<24x8xf32>
    %c0_3 = arith.constant 0 : index
    %c0_4 = arith.constant 0 : index
    %3 = vector.load %arg2[%c0_3, %c0_4] : memref<24x8xf32, #tpu.memory_space<vmem>>, vector<24x8xf32>
    %4 = arith.addf %2, %3 : vector<24x8xf32>
    %c0_5 = arith.constant 0 : index
    %c0_6 = arith.constant 0 : index
    %5 = vector.load %arg4[%c0_5, %c0_6] : memref<8x24xf32, #tpu.memory_space<vmem>>, vector<8x24xf32>
    %cst_7 = arith.constant dense<0.000000e+00> : vector<24x24xf32>
    %6 = tpu.matmul %4, %5, %cst_7 {dimension_numbers = #tpu.dot_dimension_numbers<[1], [0], [0], [1], [0, 0, 1, 1], [], []>} : vector<24x8xf32>, vector<8x24xf32>, vector<24x24xf32> -> vector<24x24xf32>
    %c0_8 = arith.constant 0 : index
    %c0_9 = arith.constant 0 : index
    %7 = vector.load %arg5[%c0_8, %c0_9] : memref<1x24xf32, #tpu.memory_space<vmem>>, vector<1x24xf32>
    %8 = vector.broadcast %7 : vector<1x24xf32> to vector<24x24xf32>
    %9 = arith.addf %6, %8 : vector<24x24xf32>
    %10 = vector.extract_strided_slice %9 {offsets = [0, 0], sizes = [24, 8], strides = [1, 1]} : vector<24x24xf32> to vector<24x8xf32>
    %11 = vector.extract_strided_slice %9 {offsets = [0, 8], sizes = [24, 8], strides = [1, 1]} : vector<24x24xf32> to vector<24x8xf32>
    %12 = vector.extract_strided_slice %9 {offsets = [0, 16], sizes = [24, 8], strides = [1, 1]} : vector<24x24xf32> to vector<24x8xf32>
    %13 = vector.extract_strided_slice %10 {offsets = [0, 0], sizes = [12, 8], strides = [1, 1]} : vector<24x8xf32> to vector<12x8xf32>
    %14 = vector.extract_strided_slice %10 {offsets = [12, 0], sizes = [12, 8], strides = [1, 1]} : vector<24x8xf32> to vector<12x8xf32>
    %15 = tpu.concatenate %13, %14 in 1 : vector<12x8xf32>, vector<12x8xf32> -> vector<12x16xf32>
    %16 = vector.extract_strided_slice %11 {offsets = [0, 0], sizes = [12, 8], strides = [1, 1]} : vector<24x8xf32> to vector<12x8xf32>
    %17 = vector.extract_strided_slice %11 {offsets = [12, 0], sizes = [12, 8], strides = [1, 1]} : vector<24x8xf32> to vector<12x8xf32>
    %18 = tpu.concatenate %16, %17 in 1 : vector<12x8xf32>, vector<12x8xf32> -> vector<12x16xf32>
    %19 = vector.extract_strided_slice %12 {offsets = [0, 0], sizes = [12, 8], strides = [1, 1]} : vector<24x8xf32> to vector<12x8xf32>
    %20 = vector.extract_strided_slice %12 {offsets = [12, 0], sizes = [12, 8], strides = [1, 1]} : vector<24x8xf32> to vector<12x8xf32>
    %21 = tpu.concatenate %19, %20 in 1 : vector<12x8xf32>, vector<12x8xf32> -> vector<12x16xf32>
    %22 = vector.shape_cast %15 : vector<12x16xf32> to vector<12x1x16xf32>
    %23 = vector.shape_cast %18 : vector<12x16xf32> to vector<1x12x16xf32>
    %24 = vector.broadcast %22 : vector<12x1x16xf32> to vector<12x12x16xf32>
    %25 = vector.broadcast %23 : vector<1x12x16xf32> to vector<12x12x16xf32>
    %26 = arith.mulf %24, %25 : vector<12x12x16xf32>
    %cst_10 = arith.constant dense<0xFF800000> : vector<12x16xf32>
    %27 = vector.multi_reduction <maximumf>, %26, %cst_10 [1] : vector<12x12x16xf32> to vector<12x16xf32>
    %28 = vector.shape_cast %27 : vector<12x16xf32> to vector<12x1x16xf32>
    %29 = vector.broadcast %28 : vector<12x1x16xf32> to vector<12x12x16xf32>
    %30 = arith.subf %26, %29 : vector<12x12x16xf32>
    %31 = math.exp %30 : vector<12x12x16xf32>
    %cst_11 = arith.constant dense<0.000000e+00> : vector<12x16xf32>
    %32 = vector.multi_reduction <add>, %31, %cst_11 [1] : vector<12x12x16xf32> to vector<12x16xf32>
    %33 = vector.shape_cast %21 : vector<12x16xf32> to vector<1x12x16xf32>
    %34 = vector.broadcast %33 : vector<1x12x16xf32> to vector<12x12x16xf32>
    %35 = arith.mulf %31, %34 : vector<12x12x16xf32>
    %cst_12 = arith.constant dense<0.000000e+00> : vector<12x16xf32>
    %36 = vector.multi_reduction <add>, %35, %cst_12 [1] : vector<12x12x16xf32> to vector<12x16xf32>
    %37 = tpu.reciprocal %32 : vector<12x16xf32> -> vector<12x16xf32>
    %38 = arith.mulf %36, %37 : vector<12x16xf32>
    %39 = vector.extract_strided_slice %38 {offsets = [0, 0], sizes = [12, 8], strides = [1, 1]} : vector<12x16xf32> to vector<12x8xf32>
    %40 = vector.extract_strided_slice %38 {offsets = [0, 8], sizes = [12, 8], strides = [1, 1]} : vector<12x16xf32> to vector<12x8xf32>
    %41 = tpu.concatenate %39, %40 in 0 : vector<12x8xf32>, vector<12x8xf32> -> vector<24x8xf32>
    %c0_13 = arith.constant 0 : index
    %c0_14 = arith.constant 0 : index
    %42 = vector.load %arg6[%c0_13, %c0_14] : memref<8x8xf32, #tpu.memory_space<vmem>>, vector<8x8xf32>
    %cst_15 = arith.constant dense<0.000000e+00> : vector<24x8xf32>
    %43 = tpu.matmul %41, %42, %cst_15 {dimension_numbers = #tpu.dot_dimension_numbers<[1], [0], [0], [1], [0, 0, 1, 1], [], []>} : vector<24x8xf32>, vector<8x8xf32>, vector<24x8xf32> -> vector<24x8xf32>
    %c0_16 = arith.constant 0 : index
    %c0_17 = arith.constant 0 : index
    %44 = vector.load %arg7[%c0_16, %c0_17] : memref<8x8xf32, #tpu.memory_space<vmem>>, vector<1x8xf32>
    %45 = vector.broadcast %44 : vector<1x8xf32> to vector<24x8xf32>
    %46 = arith.addf %43, %45 : vector<24x8xf32>
    %47 = arith.addf %4, %46 : vector<24x8xf32>
    %cst_18 = arith.constant dense<0.000000e+00> : vector<24xf32>
    %48 = vector.multi_reduction <add>, %47, %cst_18 [1] : vector<24x8xf32> to vector<24xf32>
    %49 = vector.shape_cast %48 : vector<24xf32> to vector<24x1xf32>
    %cst_19 = arith.constant 8.000000e+00 : f32
    %50 = vector.broadcast %cst_19 : f32 to vector<24x1xf32>
    %51 = arith.divf %49, %50 : vector<24x1xf32>
    %52 = vector.broadcast %51 : vector<24x1xf32> to vector<24x8xf32>
    %53 = arith.subf %47, %52 : vector<24x8xf32>
    %54 = arith.mulf %53, %53 : vector<24x8xf32>
    %cst_20 = arith.constant dense<0.000000e+00> : vector<24xf32>
    %55 = vector.multi_reduction <add>, %54, %cst_20 [1] : vector<24x8xf32> to vector<24xf32>
    %56 = vector.shape_cast %55 : vector<24xf32> to vector<24x1xf32>
    %cst_21 = arith.constant 8.000000e+00 : f32
    %57 = vector.broadcast %cst_21 : f32 to vector<24x1xf32>
    %58 = arith.divf %56, %57 : vector<24x1xf32>
    %59 = vector.broadcast %51 : vector<24x1xf32> to vector<24x8xf32>
    %60 = arith.subf %47, %59 : vector<24x8xf32>
    %cst_22 = arith.constant 9.99999974E-6 : f32
    %61 = vector.broadcast %cst_22 : f32 to vector<24x1xf32>
    %62 = arith.addf %58, %61 : vector<24x1xf32>
    %63 = math.rsqrt %62 : vector<24x1xf32>
    %64 = vector.broadcast %63 : vector<24x1xf32> to vector<24x8xf32>
    %65 = arith.mulf %60, %64 : vector<24x8xf32>
    %c1 = arith.constant 1 : index
    %c0_23 = arith.constant 0 : index
    %66 = vector.load %arg7[%c1, %c0_23] : memref<8x8xf32, #tpu.memory_space<vmem>>, vector<1x8xf32>
    %67 = vector.broadcast %66 : vector<1x8xf32> to vector<24x8xf32>
    %68 = arith.mulf %65, %67 : vector<24x8xf32>
    %c2 = arith.constant 2 : index
    %c0_24 = arith.constant 0 : index
    %69 = vector.load %arg7[%c2, %c0_24] : memref<8x8xf32, #tpu.memory_space<vmem>>, vector<1x8xf32>
    %70 = vector.broadcast %69 : vector<1x8xf32> to vector<24x8xf32>
    %71 = arith.addf %68, %70 : vector<24x8xf32>
    %c0_25 = arith.constant 0 : index
    %c0_26 = arith.constant 0 : index
    %72 = vector.load %arg8[%c0_25, %c0_26] : memref<8x2048xf32, #tpu.memory_space<vmem>>, vector<8x2048xf32>
    %cst_27 = arith.constant dense<0.000000e+00> : vector<24x2048xf32>
    %73 = tpu.matmul %71, %72, %cst_27 {dimension_numbers = #tpu.dot_dimension_numbers<[1], [0], [0], [1], [0, 0, 1, 1], [], []>} : vector<24x8xf32>, vector<8x2048xf32>, vector<24x2048xf32> -> vector<24x2048xf32>
    %c0_28 = arith.constant 0 : index
    %c0_29 = arith.constant 0 : index
    %74 = vector.load %arg9[%c0_28, %c0_29] : memref<1x2048xf32, #tpu.memory_space<vmem>>, vector<1x2048xf32>
    %75 = vector.broadcast %74 : vector<1x2048xf32> to vector<24x2048xf32>
    %76 = arith.addf %73, %75 : vector<24x2048xf32>
    %cst_30 = arith.constant 0.000000e+00 : f32
    %77 = vector.broadcast %cst_30 : f32 to vector<24x2048xf32>
    %78 = arith.maximumf %76, %77 : vector<24x2048xf32>
    %c0_31 = arith.constant 0 : index
    %c0_32 = arith.constant 0 : index
    %79 = vector.load %arg10[%c0_31, %c0_32] : memref<2048x8xf32, #tpu.memory_space<vmem>>, vector<2048x8xf32>
    %cst_33 = arith.constant dense<0.000000e+00> : vector<24x8xf32>
    %80 = tpu.matmul %78, %79, %cst_33 {dimension_numbers = #tpu.dot_dimension_numbers<[1], [0], [0], [1], [0, 0, 1, 1], [], []>} : vector<24x2048xf32>, vector<2048x8xf32>, vector<24x8xf32> -> vector<24x8xf32>
    %c3 = arith.constant 3 : index
    %c0_34 = arith.constant 0 : index
    %81 = vector.load %arg7[%c3, %c0_34] : memref<8x8xf32, #tpu.memory_space<vmem>>, vector<1x8xf32>
    %82 = vector.broadcast %81 : vector<1x8xf32> to vector<24x8xf32>
    %83 = arith.addf %80, %82 : vector<24x8xf32>
    %84 = arith.addf %71, %83 : vector<24x8xf32>
    %cst_35 = arith.constant dense<0.000000e+00> : vector<24xf32>
    %85 = vector.multi_reduction <add>, %84, %cst_35 [1] : vector<24x8xf32> to vector<24xf32>
    %86 = vector.shape_cast %85 : vector<24xf32> to vector<24x1xf32>
    %cst_36 = arith.constant 8.000000e+00 : f32
    %87 = vector.broadcast %cst_36 : f32 to vector<24x1xf32>
    %88 = arith.divf %86, %87 : vector<24x1xf32>
    %89 = vector.broadcast %88 : vector<24x1xf32> to vector<24x8xf32>
    %90 = arith.subf %84, %89 : vector<24x8xf32>
    %91 = arith.mulf %90, %90 : vector<24x8xf32>
    %cst_37 = arith.constant dense<0.000000e+00> : vector<24xf32>
    %92 = vector.multi_reduction <add>, %91, %cst_37 [1] : vector<24x8xf32> to vector<24xf32>
    %93 = vector.shape_cast %92 : vector<24xf32> to vector<24x1xf32>
    %cst_38 = arith.constant 8.000000e+00 : f32
    %94 = vector.broadcast %cst_38 : f32 to vector<24x1xf32>
    %95 = arith.divf %93, %94 : vector<24x1xf32>
    %96 = vector.broadcast %88 : vector<24x1xf32> to vector<24x8xf32>
    %97 = arith.subf %84, %96 : vector<24x8xf32>
    %cst_39 = arith.constant 9.99999974E-6 : f32
    %98 = vector.broadcast %cst_39 : f32 to vector<24x1xf32>
    %99 = arith.addf %95, %98 : vector<24x1xf32>
    %100 = math.rsqrt %99 : vector<24x1xf32>
    %101 = vector.broadcast %100 : vector<24x1xf32> to vector<24x8xf32>
    %102 = arith.mulf %97, %101 : vector<24x8xf32>
    %c4 = arith.constant 4 : index
    %c0_40 = arith.constant 0 : index
    %103 = vector.load %arg7[%c4, %c0_40] : memref<8x8xf32, #tpu.memory_space<vmem>>, vector<1x8xf32>
    %104 = vector.broadcast %103 : vector<1x8xf32> to vector<24x8xf32>
    %105 = arith.mulf %102, %104 : vector<24x8xf32>
    %c5 = arith.constant 5 : index
    %c0_41 = arith.constant 0 : index
    %106 = vector.load %arg7[%c5, %c0_41] : memref<8x8xf32, #tpu.memory_space<vmem>>, vector<1x8xf32>
    %107 = vector.broadcast %106 : vector<1x8xf32> to vector<24x8xf32>
    %108 = arith.addf %105, %107 : vector<24x8xf32>
    %109 = tpu.iota {dimensions = array<i32: 1>} : vector<2x24xi32>
    %110 = tpu.iota {dimensions = array<i32: 0>} : vector<2x24xi32>
    %c12_i32 = arith.constant 12 : i32
    %111 = vector.broadcast %c12_i32 : i32 to vector<2x24xi32>
    %112 = arith.muli %110, %111 : vector<2x24xi32>
    %113 = arith.cmpi sge, %109, %112 : vector<2x24xi32>
    %c12_i32_42 = arith.constant 12 : i32
    %114 = vector.broadcast %c12_i32_42 : i32 to vector<2x24xi32>
    %115 = arith.addi %112, %114 : vector<2x24xi32>
    %116 = arith.cmpi slt, %109, %115 : vector<2x24xi32>
    %117 = arith.andi %113, %116 : vector<2x24xi1>
    %cst_43 = arith.constant 0.0833333358 : f32
    %cst_44 = arith.constant 0.000000e+00 : f32
    %118 = vector.broadcast %cst_43 : f32 to vector<2x24xf32>
    %119 = vector.broadcast %cst_44 : f32 to vector<2x24xf32>
    %120 = arith.select %117, %118, %119 : vector<2x24xi1>, vector<2x24xf32>
    %cst_45 = arith.constant dense<0.000000e+00> : vector<2x8xf32>
    %121 = tpu.matmul %120, %108, %cst_45 {dimension_numbers = #tpu.dot_dimension_numbers<[1], [0], [0], [1], [0, 0, 1, 1], [], []>} : vector<2x24xf32>, vector<24x8xf32>, vector<2x8xf32> -> vector<2x8xf32>
    %c0_46 = arith.constant 0 : index
    %c0_47 = arith.constant 0 : index
    %122 = vector.load %arg11[%c0_46, %c0_47] : memref<8x128xf32, #tpu.memory_space<vmem>>, vector<8x128xf32>
    %cst_48 = arith.constant dense<0.000000e+00> : vector<2x128xf32>
    %123 = tpu.matmul %121, %122, %cst_48 {dimension_numbers = #tpu.dot_dimension_numbers<[1], [0], [0], [1], [0, 0, 1, 1], [], []>} : vector<2x8xf32>, vector<8x128xf32>, vector<2x128xf32> -> vector<2x128xf32>
    %c0_49 = arith.constant 0 : index
    %c0_50 = arith.constant 0 : index
    %124 = vector.load %arg12[%c0_49, %c0_50] : memref<1x128xf32, #tpu.memory_space<vmem>>, vector<1x128xf32>
    %125 = vector.broadcast %124 : vector<1x128xf32> to vector<2x128xf32>
    %126 = arith.addf %123, %125 : vector<2x128xf32>
    %c0_51 = arith.constant 0 : index
    %c0_52 = arith.constant 0 : index
    %c0_53 = arith.constant 0 : index
    %127 = vector.load %arg13[%c0_51, %c0_52, %c0_53] : memref<1x2x128xf32, #tpu.memory_space<vmem>>, vector<1x2x128xf32>
    %128 = vector.shape_cast %127 : vector<1x2x128xf32> to vector<2x128xf32>
    %129 = vector.shape_cast %126 : vector<2x128xf32> to vector<1x2x128xf32>
    tpu.vector_store %arg13[%c0_51, %c0_52, %c0_53], %129 {strides = array<i32>} : memref<1x2x128xf32, #tpu.memory_space<vmem>>, vector<1x2x128xf32>,
    return
  }
  func.func @transform_0(%arg0: i32) -> (i32, i32) {
    %c0_i32 = arith.constant 0 : i32
    %c0_i32_0 = arith.constant 0 : i32
    return %arg0, %c0_i32 : i32, i32
  }
  func.func @transform_1(%arg0: i32) -> (i32, i32) {
    %c0_i32 = arith.constant 0 : i32
    %c0_i32_0 = arith.constant 0 : i32
    %c0_i32_1 = arith.constant 0 : i32
    return %c0_i32, %c0_i32_0 : i32, i32
  }
  func.func @transform_2(%arg0: i32) -> (i32, i32) {
    %c0_i32 = arith.constant 0 : i32
    %c0_i32_0 = arith.constant 0 : i32
    %c0_i32_1 = arith.constant 0 : i32
    return %c0_i32, %c0_i32_0 : i32, i32
  }
  func.func @transform_3(%arg0: i32) -> (i32, i32) {
    %c0_i32 = arith.constant 0 : i32
    %c0_i32_0 = arith.constant 0 : i32
    %c0_i32_1 = arith.constant 0 : i32
    return %c0_i32, %c0_i32_0 : i32, i32
  }
  func.func @transform_4(%arg0: i32) -> (i32, i32) {
    %c0_i32 = arith.constant 0 : i32
    %c0_i32_0 = arith.constant 0 : i32
    %c0_i32_1 = arith.constant 0 : i32
    return %c0_i32, %c0_i32_0 : i32, i32
  }
  func.func @transform_5(%arg0: i32) -> (i32, i32) {
    %c0_i32 = arith.constant 0 : i32
    %c0_i32_0 = arith.constant 0 : i32
    %c0_i32_1 = arith.constant 0 : i32
    return %c0_i32, %c0_i32_0 : i32, i32
  }
  func.func @transform_6(%arg0: i32) -> (i32, i32) {
    %c0_i32 = arith.constant 0 : i32
    %c0_i32_0 = arith.constant 0 : i32
    %c0_i32_1 = arith.constant 0 : i32
    return %c0_i32, %c0_i32_0 : i32, i32
  }
  func.func @transform_7(%arg0: i32) -> (i32, i32) {
    %c0_i32 = arith.constant 0 : i32
    %c0_i32_0 = arith.constant 0 : i32
    %c0_i32_1 = arith.constant 0 : i32
    return %c0_i32, %c0_i32_0 : i32, i32
  }
  func.func @transform_8(%arg0: i32) -> (i32, i32) {
    %c0_i32 = arith.constant 0 : i32
    %c0_i32_0 = arith.constant 0 : i32
    %c0_i32_1 = arith.constant 0 : i32
    return %c0_i32, %c0_i32_0 : i32, i32
  }
  func.func @transform_9(%arg0: i32) -> (i32, i32) {
    %c0_i32 = arith.constant 0 : i32
    %c0_i32_0 = arith.constant 0 : i32
    %c0_i32_1 = arith.constant 0 : i32
    return %c0_i32, %c0_i32_0 : i32, i32
  }
  func.func @transform_10(%arg0: i32) -> (i32, i32) {
    %c0_i32 = arith.constant 0 : i32
    %c0_i32_0 = arith.constant 0 : i32
    %c0_i32_1 = arith.constant 0 : i32
    return %c0_i32, %c0_i32_0 : i32, i32
  }
  func.func @transform_11(%arg0: i32) -> (i32, i32) {
    %c0_i32 = arith.constant 0 : i32
    %c0_i32_0 = arith.constant 0 : i32
    %c0_i32_1 = arith.constant 0 : i32
    return %c0_i32, %c0_i32_0 : i32, i32
  }
  func.func @transform_12(%arg0: i32) -> (i32, i32, i32) {
    %c0_i32 = arith.constant 0 : i32
    %c0_i32_0 = arith.constant 0 : i32
    %c0_i32_1 = arith.constant 0 : i32
    return %arg0, %c0_i32, %c0_i32_0 : i32, i32, i32
  }
}

</mosaic_0001>

<bundles_post_ra>
// kernel: tpu_custom_call.1
= control target key start
LH: loop header
LB: loop body
LE: loop exit
PB: predicated region body
PF: predicated region fallthrough
CT: control target
= control target key end

     0   :  { %vm59_vm0 = vcmask 1044480   ;;  %vm49_vm1 = vcmask 39936   ;;  %s4389_s0 = inlined_call_operand.vmem [shape: f32[24,5], index: 0, kind: input, shape index: {}]   ;;  %s4390_s1 = inlined_call_operand.vmem [shape: f32[24,8], index: 1, kind: input, shape index: {}]   ;;  %s4391_s2 = inlined_call_operand.vmem [shape: f32[5,8], index: 2, kind: input, shape index: {}]   ;;  %s4392_s3 = inlined_call_operand.vmem [shape: f32[8,24], index: 3, kind: input, shape index: {}]   ;;  %s4393_s4 = inlined_call_operand.vmem [shape: f32[1,24], index: 4, kind: input, shape index: {}]   ;;  %s4394_s5 = inlined_call_operand.vmem [shape: f32[8,8], index: 5, kind: input, shape index: {}]   ;;  %s4395_s6 = inlined_call_operand.vmem [shape: f32[8,8], index: 6, kind: input, shape index: {}]   ;;  %s4396_s7 = inlined_call_operand.vmem [shape: f32[8,2048], index: 7, kind: input, shape index: {}]   ;;  %s4397_s8 = inlined_call_operand.vmem [shape: f32[1,2048], index: 8, kind: input, shape index: {}]   ;;  %s4398_s9 = inlined_call_operand.vmem [shape: f32[2048,8], index: 9, kind: input, shape index: {}]   ;;  %s4399_s10 = inlined_call_operand.vmem [shape: f32[8,128], index: 10, kind: input, shape index: {}]   ;;  %s4400_s11 = inlined_call_operand.vmem [shape: f32[1,128], index: 11, kind: input, shape index: {}]   ;;  %s4401_s12 = inlined_call_operand.hbm [shape: f32[1,2,128], index: 12, kind: output, shape index: {}]  }
   0x1   :  { %v45_v0 = vld [vmem:[%s4391_s2] sm:$0x1f] }
   0x2   :  { %v42_v1 = vld [vmem:[%s4389_s0] sm:$0xff]  ;;  %2356 = vmatpush.msk.msra.mxu0 %vm59_vm0, %v45_v0 }
   0x3   :  { %2357 = vmatmul.msk.f32.vlgmr.msra.gmra.mxu0 %vm49_vm1, %v42_v1 }
   0x4   :  { %17 = vsyncpa [#allocation3], 0  ;;  %v43_v2 = vld [vmem:[%s4389_s0 + $0x8] sm:$0xff]  ;;  %v44_v3 = vld [vmem:[%s4389_s0 + $0x10] sm:$0xff]  ;;  %vm4403_vm2 = vcmask 64512   ;;  %s2542_s18 = smov 112  }
   0x5   :  { %v89_v4 = vld [vmem:[%s4392_s3] sm:$0xff]  ;;  %v47_v8 = vld [vmem:[%s4390_s1 + $0x8] sm:$0xff]  ;;  %v48_v11 = vld [vmem:[%s4390_s1 + $0x10] sm:$0xff]  ;;  %s2543_s19 = smov 120   ;;  %vm4402_vm3 = vcmask 1043456   ;;  %vm231_vm4 = vcmask 125952  }
   0x6   :  { %119 = vmatpush.msra.mxu1 %v89_v4  ;;  %v46_v5 = vld [vmem:[%s4390_s1] sm:$0xff]  ;;  %s2544_s1 = smov 8   ;;  %vm229_vm5 = vcmask 130048   ;;  %vm851_vm14 = vcmask 1045509   ;;  %s2547_s28 = smov [#allocation2]  }
   0x7   :  { %v2422_v14 = vld [vmem:[%s4393_s4] ss:$0 sm:$0xff]  ;;  %s2345_s2 = sshll.u32 %s2547_s28, 4  ;;  %s2347_s13 = sshll.u32 %s4401_s12, 4  ;;  %s2346_s2 = int_to_ptr.vmem [resolvable:$true] %s2345_s2  ;;  %s2348_s13 = int_to_ptr.hbm [resolvable:$true] %s2347_s13 }
   0xb   :  { %2358 = vmatmul.msk.f32.gmra.mxu0 %vm49_vm1, %v43_v2 }
  0x13   :  { %2359 = vmatmul.msk.f32.gmra.mxu0 %vm49_vm1, %v44_v3 }
  0x80   :  { %v80_v6 = vpop.f32.mrf.mxu0 }
  0x81   :  { %v2631_v7 = vadd.f32 %v80_v6, %v46_v5 }
  0x83   :  { %2360 = vmatmul.msk.f32.vlgmr.msra.gmra.mxu1 %vm4403_vm2, %v2631_v7 }
  0x88   :  { %v83_v9 = vpop.f32.mrf.mxu0 }
  0x89   :  { %v2638_v10 = vadd.f32 %v83_v9, %v47_v8 }
  0x8b   :  { %2361 = vmatmul.msk.f32.gmra.mxu1 %vm4403_vm2, %v2638_v10 }
  0x90   :  { %v86_v12 = vpop.f32.mrf.mxu0 }
  0x91   :  { %v2645_v13 = vadd.f32 %v86_v12, %v48_v11 }
  0x93   :  { %2362 = vmatmul.msk.f32.gmra.mxu1 %vm4403_vm2, %v2645_v13 }
 0x100   :  { %v121_v15 = vpop.f32.mrf.mxu1 }
 0x101   :  { %v122_v16 = vadd.f32 %v2422_v14, %v121_v15 }
 0x103   :  { %155 = vrot.lane.b32.xlu2 %v122_v16, %s2542_s18 }
 0x108   :  { %v124_v17 = vpop.f32.mrf.mxu1 }
 0x109   :  { %v125_v18 = vadd.f32 %v2422_v14, %v124_v17 }
 0x10b   :  { %147 = vrot.lane.b32.xlu1 %v125_v18, %s2543_s19  ;;  %157 = vrot.lane.b32.xlu2 %v125_v18, %s2542_s18  ;;  %v133_v22 = vrot.slane %v125_v18, 4 }
 0x110   :  { %v127_v19 = vpop.f32.mrf.mxu1 }
 0x111   :  { %v128_v20 = vadd.f32 %v2422_v14, %v127_v19 }
 0x113   :  { %v134_v21 = vrot.slane %v128_v20, 4 }
 0x115   :  { %138 = vrot.lane.b32.xlu1 %v134_v21, %s2544_s1  ;;  %v135_v23 = vsel %vm4402_vm3, %v133_v22, %v134_v21  ;;  %vm853_vm3 = vcmask 1046534  }
 0x116   :  { %136 = vrot.lane.b32.xlu0 %v135_v23, %s2544_s1 }
 0x11d   :  { %163 = vrot.lane.b32.xlu1 %v134_v21, %s2543_s19 }
 0x11e   :  { %145 = vrot.lane.b32.xlu0 %v122_v16, %s2543_s19 }
 0x126   :  { %161 = vrot.lane.b32.xlu0 %v135_v23, %s2543_s19 }
 0x17d   :  { %v148_v24 = vpop.permute.xlu1 %147 }
 0x17e   :  { %v154_v41 = vsel %vm4403_vm2, %v148_v24, %v134_v21 }
 0x187   :  { %v139_v25 = vpop.permute.xlu1 %138 }
 0x188   :  { %v2658_v26 = vsel %vm4403_vm2, %v125_v18, %v139_v25  ;;  %v137_v27 = vpop.permute.xlu0 %136 }
 0x189   :  { %v142_v28 = vsel %vm4403_vm2, %v122_v16, %v137_v27  ;;  %v178_v29 = vrot.slane %v2658_v26, 1  ;;  %v179_v30 = vrot.slane %v2658_v26, 2  ;;  %v180_v35 = vrot.slane %v2658_v26, 3 }
 0x18a   :  { %v171_v31 = vrot.slane %v142_v28, 1  ;;  %v172_v32 = vrot.slane %v142_v28, 2  ;;  %v173_v33 = vrot.slane %v142_v28, 3  ;;  %v174_v34 = vrot.slane %v142_v28, 4 }
 0x18b   :  { %v189_v36 = vperm.slane %v2658_v26, 0  ;;  %v175_v37 = vrot.slane %v142_v28, 5  ;;  %v176_v38 = vrot.slane %v142_v28, 6  ;;  %v177_v39 = vrot.slane %v142_v28, 7 }
 0x18c   :  { %v181_v40 = vperm.slane %v142_v28, 0  ;;  %v2666_v42 = vperm.slane %v178_v29, 0  ;;  %v2668_v43 = vperm.slane %v179_v30, 0  ;;  %v182_v44 = vperm.slane %v171_v31, 0 }
 0x18d   :  { %v183_v45 = vperm.slane %v172_v32, 0  ;;  %v184_v46 = vperm.slane %v173_v33, 0  ;;  %v185_v47 = vperm.slane %v174_v34, 0  ;;  %v186_v48 = vperm.slane %v175_v37, 0 }
 0x18e   :  { %v187_v49 = vperm.slane %v176_v38, 0  ;;  %v188_v50 = vperm.slane %v177_v39, 0  ;;  %v2670_v51 = vmul.f32 %v181_v40, %v154_v41  ;;  %v2672_v52 = vmul.f32 %v182_v44, %v154_v41 }
 0x18f   :  { %v2674_v53 = vperm.slane %v180_v35, 0  ;;  %v2678_v54 = vmul.f32 %v189_v36, %v154_v41  ;;  %v2680_v55 = vmul.f32 %v185_v47, %v154_v41  ;;  %v2682_v56 = vmul.f32 %v186_v48, %v154_v41 }
 0x190   :  { %v146_v57 = vpop.permute.xlu0 %145  ;;  %v2685_v58 = vmul.f32 %v2666_v42, %v154_v41  ;;  %v2688_v59 = vmul.f32 %v2668_v43, %v154_v41  ;;  %v2690_v60 = vmul.f32 %v187_v49, %v154_v41  ;;  %v2692_v61 = vmul.f32 %v188_v50, %v154_v41 }
 0x191   :  { %v2694_v62 = vmul.f32 %v183_v45, %v154_v41  ;;  %v2696_v63 = vmul.f32 %v184_v46, %v154_v41  ;;  %v232_v0 = vsel %vm231_vm4, %v2670_v51, -inf  ;;  %v241_v1 = vsel %vm231_vm4, %v2672_v52, -inf }
 0x192   :  { %v268_v2 = vsel %vm231_vm4, %v2680_v55, -inf  ;;  %v277_v3 = vsel %vm231_vm4, %v2682_v56, -inf  ;;  %v286_v4 = vsel %vm231_vm4, %v2690_v60, -inf  ;;  %v2709_v5 = vsel %vm4403_vm2, %v146_v57, %v135_v23 }
 0x193   :  { %v2712_v6 = vmul.f32 %v185_v47, %v2709_v5  ;;  %v2715_v8 = vmul.f32 %v186_v48, %v2709_v5  ;;  %v2718_v9 = vmul.f32 %v187_v49, %v2709_v5  ;;  %v2721_v11 = vmul.f32 %v181_v40, %v2709_v5 }
 0x194   :  { %v2724_v12 = vmul.f32 %v182_v44, %v2709_v5  ;;  %v2727_v14 = vmul.f32 %v183_v45, %v2709_v5  ;;  %v2730_v15 = vmul.f32 %v184_v46, %v2709_v5  ;;  %v2733_v16 = vmul.f32 %v188_v50, %v2709_v5 }
 0x195   :  { %v267_v17 = vsel %vm229_vm5, %v2712_v6, -inf  ;;  %v276_v18 = vsel %vm229_vm5, %v2715_v8, -inf  ;;  %v285_v19 = vsel %vm229_vm5, %v2718_v9, -inf  ;;  %v230_v20 = vsel %vm229_vm5, %v2721_v11, -inf }
 0x196   :  { %v250_v21 = vsel %vm231_vm4, %v2694_v62, -inf  ;;  %v269_v22 = vmax.f32 %v267_v17, %v268_v2  ;;  %v278_v23 = vmax.f32 %v276_v18, %v277_v3  ;;  %v287_v24 = vmax.f32 %v285_v19, %v286_v4 }
 0x197   :  { %v233_v25 = vmax.f32 %v230_v20, %v232_v0  ;;  %v240_v27 = vsel %vm229_vm5, %v2724_v12, -inf  ;;  %v249_v28 = vsel %vm229_vm5, %v2727_v14, -inf  ;;  %v258_v29 = vsel %vm229_vm5, %v2730_v15, -inf }
 0x198   :  { %v259_v30 = vsel %vm231_vm4, %v2696_v63, -inf  ;;  %v270_v31 = vrot.slane %v269_v22, 4  ;;  %v279_v32 = vrot.slane %v278_v23, 4  ;;  %v242_v33 = vmax.f32 %v240_v27, %v241_v1 }
 0x199   :  { %v2754_v34 = vmul.f32 %v2674_v53, %v154_v41  ;;  %v234_v35 = vrot.slane %v233_v25, 4  ;;  %v251_v37 = vmax.f32 %v249_v28, %v250_v21  ;;  %v260_v38 = vmax.f32 %v258_v29, %v259_v30 }
 0x19a   :  { %v2758_v39 = vsel %vm231_vm4, %v2678_v54, -inf  ;;  %v271_v40 = vmax.f32 %v269_v22, %v270_v31  ;;  %v288_v44 = vrot.slane %v287_v24, 4  ;;  %v243_v45 = vrot.slane %v242_v33, 4 }
 0x19b   :  { %v280_v46 = vmax.f32 %v278_v23, %v279_v32  ;;  %v235_v47 = vmax.f32 %v233_v25, %v234_v35  ;;  %v252_v48 = vrot.slane %v251_v37, 4  ;;  %v261_v49 = vrot.slane %v260_v38, 4 }
 0x19c   :  { %v2762_v50 = vsel %vm231_vm4, %v2685_v58, -inf  ;;  %v2766_v41 = vsel %vm231_vm4, %v2688_v59, -inf  ;;  %v244_v57 = vmax.f32 %v242_v33, %v243_v45  ;;  %v272_v0 = vrot.slane %v271_v40, 2 }
 0x19d   :  { %v2770_v1 = vsel %vm231_vm4, %v2754_v34, -inf  ;;  %v236_v2 = vrot.slane %v235_v47, 2  ;;  %v253_v3 = vmax.f32 %v251_v37, %v252_v48  ;;  %v262_v4 = vmax.f32 %v260_v38, %v261_v49 }
 0x19e   :  { %v295_v17 = vsel %vm231_vm4, %v2692_v61, -inf  ;;  %v245_v18 = vrot.slane %v244_v57, 2  ;;  %v289_v19 = vmax.f32 %v287_v24, %v288_v44  ;;  %v294_v20 = vsel %vm229_vm5, %v2733_v16, -inf }
 0x19f   :  { %v237_v21 = vmax.f32 %v235_v47, %v236_v2  ;;  %v254_v22 = vrot.slane %v253_v3, 2  ;;  %v263_v23 = vrot.slane %v262_v4, 2  ;;  %v281_v25 = vrot.slane %v280_v46, 2  ;;  %v156_v47 = vpop.permute.xlu2 %155 }
 0x1a0   :  { %v246_v27 = vmax.f32 %v244_v57, %v245_v18  ;;  %v2779_v28 = vmul.f32 %v189_v36, %v2709_v5  ;;  %v2781_v29 = vmax.f32 %v271_v40, %v272_v0  ;;  %v296_v30 = vmax.f32 %v294_v20, %v295_v17 }
 0x1a1   :  { %v238_v31 = vrot.slane %v237_v21, 1  ;;  %v255_v32 = vmax.f32 %v253_v3, %v254_v22  ;;  %v264_v33 = vmax.f32 %v262_v4, %v263_v23  ;;  %v2785_v24 = vmul.f32 %v2666_v42, %v2709_v5 }
 0x1a2   :  { %v247_v35 = vrot.slane %v246_v27, 1  ;;  %v2789_v37 = vmul.f32 %v2668_v43, %v2709_v5  ;;  %v290_v38 = vrot.slane %v289_v19, 2  ;;  %v297_v44 = vrot.slane %v296_v30, 4 }
 0x1a3   :  { %v239_v26 = vmax.f32 %v237_v21, %v238_v31  ;;  %v256_v36 = vrot.slane %v255_v32, 1  ;;  %v265_v45 = vrot.slane %v264_v33, 1  ;;  %v282_v40 = vmax.f32 %v280_v46, %v281_v25 }
 0x1a4   :  { %v248_v48 = vmax.f32 %v246_v27, %v247_v35  ;;  %v2793_v49 = vmul.f32 %v2674_v53, %v2709_v5  ;;  %v274_v42 = vrot.slane %v2781_v29, 1  ;;  %v298_v57 = vmax.f32 %v296_v30, %v297_v44 }
 0x1a5   :  { %v257_v0 = vmax.f32 %v255_v32, %v256_v36  ;;  %v266_v2 = vmax.f32 %v264_v33, %v265_v45  ;;  %v339_v43 = vsub.f32 %v2721_v11, %v239_v26  ;;  %v340_v3 = vsub.f32 %v2670_v51, %v239_v26  ;;  %v164_v32 = vpop.permute.xlu1 %163  ;;  %v162_v33 = vpop.permute.xlu0 %161 }
 0x1a6   :  { %v341_v4 = vsub.f32 %v2724_v12, %v248_v48  ;;  %v342_v17 = vsub.f32 %v2672_v52, %v248_v48  ;;  %v291_v46 = vmax.f32 %v289_v19, %v290_v38  ;;  %v303_v18 = vsel %vm229_vm5, %v2779_v28, -inf }
 0x1a7   :  { %v343_v53 = vsub.f32 %v2727_v14, %v257_v0  ;;  %v344_v5 = vsub.f32 %v2694_v62, %v257_v0  ;;  %v283_v20 = vrot.slane %v282_v40, 1  ;;  %v312_v21 = vsel %vm229_vm5, %v2785_v24, -inf }
 0x1a8   :  { %v345_v11 = vsub.f32 %v2730_v15, %v266_v2  ;;  %v363_v22 = vmul.f32 1.442695, %v339_v43  ;;  %v365_v51 = vmul.f32 1.442695, %v340_v3  ;;  %v367_v23 = vmul.f32 1.442695, %v341_v4 }
 0x1a9   :  { %v346_v12 = vsub.f32 %v2696_v63, %v266_v2  ;;  %v369_v52 = vmul.f32 1.442695, %v342_v17  ;;  %v299_v19 = vrot.slane %v298_v57, 2  ;;  %v305_v25 = vmax.f32 %v303_v18, %v2758_v39 }
 0x1aa   :  { %2430 = vpow2.f32 %v363_v22  ;;  %v371_v27 = vmul.f32 1.442695, %v343_v53  ;;  %v373_v14 = vmul.f32 1.442695, %v344_v5  ;;  %v292_v30 = vrot.slane %v291_v46, 1 }
 0x1ab   :  { %2432 = vpow2.f32 %v365_v51  ;;  %v306_v62 = vrot.slane %v305_v25, 4  ;;  %v314_v31 = vmax.f32 %v312_v21, %v2762_v50  ;;  %v321_v15 = vsel %vm229_vm5, %v2789_v37, -inf  ;;  %v158_v50 = vpop.permute.xlu2 %157 }
 0x1ac   :  { %2434 = vpow2.f32 %v367_v23  ;;  %v375_v35 = vmul.f32 1.442695, %v345_v11  ;;  %v2813_v63 = vmax.f32 %v321_v15, %v2766_v41  ;;  %v330_v39 = vsel %vm229_vm5, %v2793_v49, -inf }
 0x1ad   :  { %2436 = vpow2.f32 %v369_v52  ;;  %v377_v38 = vmul.f32 1.442695, %v346_v12  ;;  %v2817_v44 = vmax.f32 %v298_v57, %v299_v19  ;;  %v2820_v26 = vmax.f32 %v330_v39, %v2770_v1 }
 0x1ae   :  { %2438 = vpow2.f32 %v371_v27  ;;  %v2822_v36 = vmax.f32 %v305_v25, %v306_v62  ;;  %v2825_v45 = vsel %vm4403_vm2, %v158_v50, %v164_v32  ;;  %v2828_v41 = vsel %vm4403_vm2, %v156_v47, %v162_v33 }
 0x1af   :  { %2440 = vpow2.f32 %v373_v14  ;;  %v2831_v48 = vmax.f32 %v2781_v29, %v274_v42  ;;  %v2833_v57 = vmax.f32 %v282_v40, %v283_v20  ;;  %v2835_v1 = vmax.f32 %v291_v46, %v292_v30 }
 0x1b0   :  { %v2431_v0 = vpop.eup %2430  ;;  %2442 = vpow2.f32 %v375_v35  ;;  %v315_v2 = vrot.slane %v314_v31, 4  ;;  %v301_v47 = vrot.slane %v2817_v44, 1  ;;  %v308_v42 = vrot.slane %v2822_v36, 2 }
 0x1b1   :  { %v2433_v43 = vpop.eup %2432  ;;  %2444 = vpow2.f32 %v377_v38  ;;  %v411_v3 = vsel %vm229_vm5, %v2431_v0, 0.0  ;;  %v519_v4 = vmul.f32 %v2431_v0, %v2828_v41  ;;  %v324_v40 = vrot.slane %v2813_v63, 4 }
 0x1b2   :  { %v2435_v17 = vpop.eup %2434  ;;  %v412_v18 = vsel %vm231_vm4, %v2433_v43, 0.0  ;;  %v520_v29 = vmul.f32 %v2433_v43, %v2825_v45  ;;  %v2850_v12 = vmax.f32 %v314_v31, %v315_v2 }
 0x1b3   :  { %v2437_v46 = vpop.eup %2436  ;;  %v413_v53 = vadd.f32 %v412_v18, %v411_v3  ;;  %v420_v5 = vsel %vm229_vm5, %v2435_v17, 0.0  ;;  %v521_v20 = vmul.f32 %v2435_v17, %v2828_v41  ;;  %v543_v21 = vsel %vm229_vm5, %v519_v4, 0.0 }
 0x1b4   :  { %v2439_v11 = vpop.eup %2438  ;;  %v421_v22 = vsel %vm231_vm4, %v2437_v46, 0.0  ;;  %v522_v51 = vmul.f32 %v2437_v46, %v2825_v45  ;;  %v544_v23 = vsel %vm231_vm4, %v520_v29, 0.0 }
 0x1b5   :  { %v2441_v52 = vpop.eup %2440  ;;  %v414_v19 = vrot.slane %v413_v53, 4  ;;  %v422_v25 = vadd.f32 %v421_v22, %v420_v5  ;;  %v429_v27 = vsel %vm229_vm5, %v2439_v11, 0.0  ;;  %v523_v14 = vmul.f32 %v2439_v11, %v2828_v41 }
 0x1b6   :  { %v2443_v30 = vpop.eup %2442  ;;  %v430_v62 = vsel %vm231_vm4, %v2441_v52, 0.0  ;;  %v524_v15 = vmul.f32 %v2441_v52, %v2825_v45  ;;  %v545_v32 = vadd.f32 %v544_v23, %v543_v21  ;;  %v552_v33 = vsel %vm229_vm5, %v521_v20, 0.0 }
 0x1b7   :  { %v2445_v35 = vpop.eup %2444  ;;  %v415_v39 = vadd.f32 %v414_v19, %v413_v53  ;;  %v423_v38 = vrot.slane %v422_v25, 4  ;;  %v431_v31 = vadd.f32 %v430_v62, %v429_v27  ;;  %v438_v50 = vsel %vm229_vm5, %v2443_v30, 0.0 }
 0x1b8   :  { %v439_v0 = vsel %vm231_vm4, %v2445_v35, 0.0  ;;  %v525_v2 = vmul.f32 %v2443_v30, %v2828_v41  ;;  %v526_v43 = vmul.f32 %v2445_v35, %v2825_v45  ;;  %v546_v3 = vrot.slane %v545_v32, 4 }
 0x1b9   :  { %v416_v4 = vrot.slane %v415_v39, 2  ;;  %v424_v17 = vadd.f32 %v423_v38, %v422_v25  ;;  %v432_v18 = vrot.slane %v431_v31, 4  ;;  %v440_v29 = vadd.f32 %v439_v0, %v438_v50 }
 0x1ba   :  { %v547_v46 = vadd.f32 %v546_v3, %v545_v32  ;;  %v553_v5 = vsel %vm231_vm4, %v522_v51, 0.0  ;;  %v561_v53 = vsel %vm229_vm5, %v523_v14, 0.0  ;;  %v562_v20 = vsel %vm231_vm4, %v524_v15, 0.0  ;;  %v877_v15 = vld [vmem:[%s4394_s5] sm:$0xff] }
 0x1bb   :  { %v417_v21 = vadd.f32 %v416_v4, %v415_v39  ;;  %v425_v11 = vrot.slane %v424_v17, 2  ;;  %v433_v22 = vadd.f32 %v432_v18, %v431_v31  ;;  %v441_v23 = vrot.slane %v440_v29, 4  ;;  %902 = vmatpush.msra.mxu2 %v877_v15 }
 0x1bc   :  { %v548_v52 = vrot.slane %v547_v46, 2  ;;  %v554_v19 = vadd.f32 %v553_v5, %v552_v33  ;;  %v563_v27 = vadd.f32 %v562_v20, %v561_v53  ;;  %v570_v30 = vsel %vm229_vm5, %v525_v2, 0.0 }
 0x1bd   :  { %v418_v62 = vrot.slane %v417_v21, 1  ;;  %v426_v25 = vadd.f32 %v425_v11, %v424_v17  ;;  %v434_v35 = vrot.slane %v433_v22, 2  ;;  %v442_v38 = vadd.f32 %v441_v23, %v440_v29 }
 0x1be   :  { %v549_v32 = vadd.f32 %v548_v52, %v547_v46  ;;  %v555_v50 = vrot.slane %v554_v19, 4  ;;  %v564_v51 = vrot.slane %v563_v27, 4  ;;  %v571_v14 = vsel %vm231_vm4, %v526_v43, 0.0 }
 0x1bf   :  { %v2869_v39 = vadd.f32 %v418_v62, %v417_v21  ;;  %v427_v31 = vrot.slane %v426_v25, 1  ;;  %v435_v33 = vadd.f32 %v434_v35, %v433_v22  ;;  %v443_v0 = vrot.slane %v442_v38, 2 }
 0x1c0   :  { %v556_v2 = vadd.f32 %v555_v50, %v554_v19  ;;  %v565_v3 = vadd.f32 %v564_v51, %v563_v27  ;;  %v572_v4 = vadd.f32 %v571_v14, %v570_v30  ;;  %v2874_v17 = vmax.f32 %v2813_v63, %v324_v40 }
 0x1c1   :  { %v2876_v18 = vadd.f32 %v427_v31, %v426_v25  ;;  %v436_v43 = vrot.slane %v435_v33, 1  ;;  %v444_v29 = vadd.f32 %v443_v0, %v442_v38  ;;  %2446 = vrcp.f32 %v2869_v39 }
 0x1c2   :  { %v557_v46 = vrot.slane %v556_v2, 2  ;;  %v566_v5 = vrot.slane %v565_v3, 2  ;;  %v573_v53 = vrot.slane %v572_v4, 4  ;;  %v309_v20 = vmax.f32 %v2822_v36, %v308_v42 }
 0x1c3   :  { %v2882_v21 = vadd.f32 %v436_v43, %v435_v33  ;;  %v445_v11 = vrot.slane %v444_v29, 1  ;;  %v550_v22 = vrot.slane %v549_v32, 1  ;;  %v2887_v63 = vmax.f32 %v2817_v44, %v301_v47 }
 0x1c4   :  { %v558_v40 = vadd.f32 %v557_v46, %v556_v2  ;;  %v567_v23 = vadd.f32 %v566_v5, %v565_v3  ;;  %v574_v52 = vadd.f32 %v573_v53, %v572_v4  ;;  %v660_v27 = vand.u32 2147483647, %v2869_v39 }
 0x1c5   :  { %v662_v30 = vand.u32 2147483648, %v2869_v39  ;;  %2448 = vrcp.f32 %v2876_v18  ;;  %v317_v36 = vrot.slane %v2850_v12, 2  ;;  %v2894_v42 = vadd.f32 %v445_v11, %v444_v29 }
 0x1c6   :  { %v575_v62 = vrot.slane %v574_v52, 2  ;;  %v310_v25 = vrot.slane %v309_v20, 1  ;;  %v326_v44 = vrot.slane %v2874_v17, 2  ;;  %v551_v35 = vadd.f32 %v550_v22, %v549_v32 }
 0x1c7   :  { %v2447_v47 = vpop.eup %2446  ;;  %v559_v38 = vrot.slane %v558_v40, 1  ;;  %v568_v50 = vrot.slane %v567_v23, 1  ;;  %2450 = vrcp.f32 %v2882_v21  ;;  %v674_v15 = vand.u32 2147483647, %v2876_v18 }
 0x1c8   :  { %v576_v51 = vadd.f32 %v575_v62, %v574_v52  ;;  %v652_v14 = vmul.f32 %v2447_v47, %v2869_v39  ;;  %v676_v31 = vand.u32 2147483648, %v2876_v18  ;;  %vm656_vm6 = vweird.f32 %v2869_v39 }
 0x1c9   :  { %vm2902_vm7 = vcmp.eq.f32.partialorder %v660_v27, 8.507059e+37  ;;  %v663_v0 = vor.u32 1.1754944e-38, %v662_v30  ;;  %v688_v32 = vand.u32 2147483647, %v2882_v21  ;;  %vm670_vm8 = vweird.f32 %v2876_v18 }
 0x1ca   :  { %v577_v2 = vrot.slane %v576_v51, 1  ;;  %v653_v3 = vsub.f32 1.0, %v652_v14  ;;  %v690_v4 = vand.u32 2147483648, %v2882_v21  ;;  %2452 = vrcp.f32 %v2894_v42 }
 0x1cb   :  { %v2449_v43 = vpop.eup %2448  ;;  %v560_v29 = vadd.f32 %v559_v38, %v558_v40  ;;  %v2910_v46 = vadd.f32 %v568_v50, %v567_v23  ;;  %vm657_vm9 = vweird.f32 %v2447_v47  ;;  %v704_v5 = vand.u32 2147483648, %v2894_v42 }
 0x1cc   :  { %v654_v53 = vmul.f32 %v2447_v47, %v653_v3  ;;  %v666_v11 = vmul.f32 %v2449_v43, %v2876_v18  ;;  %vm2914_vm10 = vcmp.eq.f32.partialorder %v674_v15, 8.507059e+37  ;;  %v677_v52 = vor.u32 1.1754944e-38, %v676_v31  ;;  %vm658_vm15 = vmor %vm656_vm6, %vm657_vm9 }
 0x1cd   :  { %vm684_vm11 = vweird.f32 %v2882_v21  ;;  %v702_v27 = vand.u32 2147483647, %v2894_v42  ;;  %v2451_v30 = vpop.eup %2450  ;;  %v2920_v62 = vadd.f32 %v577_v2, %v576_v51  ;;  %vm671_vm12 = vweird.f32 %v2449_v43 }
 0x1ce   :  { %v691_v40 = vor.u32 1.1754944e-38, %v690_v4  ;;  %v705_v23 = vor.u32 1.1754944e-38, %v704_v5  ;;  %v655_v38 = vadd.f32 %v2447_v47, %v654_v53  ;;  %v667_v50 = vsub.f32 1.0, %v666_v11  ;;  %vm672_vm2 = vmor %vm670_vm8, %vm671_vm12 }
 0x1cf   :  { %v680_v14 = vmul.f32 %v2451_v30, %v2882_v21  ;;  %vm2923_vm13 = vcmp.eq.f32.partialorder %v688_v32, 8.507059e+37  ;;  %vm685_vm0 = vweird.f32 %v2451_v30  ;;  %vm698_vm1 = vweird.f32 %v2894_v42 }
 0x1d0   :  { %v2931_v51 = vmax.f32 %v309_v20, %v310_v25  ;;  %v318_v31 = vmax.f32 %v2850_v12, %v317_v36  ;;  %v2453_v2 = vpop.eup %2452  ;;  %v659_v3 = vsel %vm658_vm15, %v2447_v47, %v655_v38  ;;  %v668_v4 = vmul.f32 %v2449_v43, %v667_v50 }
 0x1d1   :  { %v681_v32 = vsub.f32 1.0, %v680_v14  ;;  %v327_v5 = vmax.f32 %v2874_v17, %v326_v44  ;;  %v664_v53 = vsel %vm2902_vm7, %v663_v0, %v659_v3  ;;  %v694_v39 = vmul.f32 %v2453_v2, %v2894_v42  ;;  %vm686_vm7 = vmor %vm684_vm11, %vm685_vm0 }
 0x1d2   :  { %vm699_vm6 = vweird.f32 %v2453_v2  ;;  %vm2938_vm9 = vcmp.eq.f32.partialorder %v702_v27, 8.507059e+37  ;;  %v319_v20 = vrot.slane %v318_v31, 1  ;;  %v669_v25 = vadd.f32 %v2449_v43, %v668_v4 }
 0x1d3   :  { %v682_v19 = vmul.f32 %v2451_v30, %v681_v32  ;;  %v2942_v12 = vmul.f32 %v664_v53, %v551_v35  ;;  %vm855_vm15 = vcmask 1047559   ;;  %v328_v36 = vrot.slane %v327_v5, 1 }
 0x1d4   :  { %v695_v17 = vsub.f32 1.0, %v694_v39  ;;  %v320_v44 = vmax.f32 %v318_v31, %v319_v20  ;;  %v4412_v47 = vrot.slane %v2820_v26, 4  ;;  %v347_v0 = vsub.f32 %v2712_v6, %v2831_v48 }
 0x1d5   :  { %v673_v27 = vsel %vm672_vm2, %v2449_v43, %v669_v25  ;;  %v683_v38 = vadd.f32 %v2451_v30, %v682_v19  ;;  %v2952_v50 = vmax.f32 %v327_v5, %v328_v36  ;;  %v348_v35 = vsub.f32 %v2680_v55, %v2831_v48  ;;  %vm700_vm2 = vmor %vm698_vm1, %vm699_vm6 }
 0x1d6   :  { %v334_v33 = vmax.f32 %v2820_v26, %v4412_v47  ;;  %v678_v18 = vsel %vm2914_vm10, %v677_v52, %v673_v27  ;;  %v696_v14 = vmul.f32 %v2453_v2, %v695_v17  ;;  %v349_v26 = vsub.f32 %v2715_v8, %v2833_v57 }
 0x1d7   :  { %v687_v6 = vsel %vm686_vm7, %v2451_v30, %v683_v38  ;;  %v2963_v43 = vmul.f32 %v678_v18, %v560_v29  ;;  %v350_v19 = vsub.f32 %v2682_v56, %v2833_v57  ;;  %v351_v55 = vsub.f32 %v2718_v9, %v2835_v1 }
 0x1d8   :  { %v335_v31 = vrot.slane %v334_v33, 2  ;;  %v692_v48 = vsel %vm2923_vm13, %v691_v40, %v687_v6  ;;  %v697_v22 = vadd.f32 %v2453_v2, %v696_v14  ;;  %v352_v52 = vsub.f32 %v2690_v60, %v2835_v1 }
 0x1d9   :  { %v2977_v8 = vmul.f32 %v692_v48, %v2910_v46  ;;  %v861_v56 = vsel %vm851_vm14, %v2963_v43, %v2942_v12  ;;  %v353_v9 = vsub.f32 %v2733_v16, %v2887_v63  ;;  %v354_v57 = vsub.f32 %v2692_v61, %v2887_v63 }
 0x1da   :  { %v336_v21 = vmax.f32 %v334_v33, %v335_v31  ;;  %v701_v29 = vsel %vm700_vm2, %v2453_v2, %v697_v22  ;;  %v355_v60 = vsub.f32 %v2779_v28, %v2931_v51  ;;  %v356_v1 = vsub.f32 %v2678_v54, %v2931_v51 }
 0x1db   :  { %v706_v42 = vsel %vm2938_vm9, %v705_v23, %v701_v29  ;;  %v862_v46 = vsel %vm853_vm3, %v2977_v8, %v861_v56  ;;  %v357_v40 = vsub.f32 %v2785_v24, %v320_v44  ;;  %v358_v16 = vsub.f32 %v2685_v58, %v320_v44 }
 0x1dc   :  { %v337_v30 = vrot.slane %v336_v21, 1  ;;  %v2997_v61 = vmul.f32 %v706_v42, %v2920_v62  ;;  %v359_v28 = vsub.f32 %v2789_v37, %v2952_v50  ;;  %v360_v54 = vsub.f32 %v2688_v59, %v2952_v50 }
 0x1dd   :  { %v379_v15 = vmul.f32 1.442695, %v347_v0  ;;  %v381_v51 = vmul.f32 1.442695, %v348_v35  ;;  %v383_v23 = vmul.f32 1.442695, %v349_v26 }
 0x1de   :  { %v338_v63 = vmax.f32 %v336_v21, %v337_v30  ;;  %v863_v2 = vsel %vm855_vm15, %v2997_v61, %v862_v46  ;;  %v385_v3 = vmul.f32 1.442695, %v350_v19  ;;  %v387_v62 = vmul.f32 1.442695, %v351_v55 }
 0x1df   :  { %871 = vrot.lane.b32.xlu2 %v863_v2, %s2543_s19  ;;  %2454 = vpow2.f32 %v379_v15  ;;  %v389_v37 = vmul.f32 1.442695, %v352_v52  ;;  %v391_v4 = vmul.f32 1.442695, %v353_v9  ;;  %v393_v59 = vmul.f32 1.442695, %v354_v57 }
 0x1e0   :  { %v361_v24 = vsub.f32 %v2793_v49, %v338_v63  ;;  %v362_v58 = vsub.f32 %v2754_v34, %v338_v63  ;;  %2456 = vpow2.f32 %v381_v51  ;;  %v395_v32 = vmul.f32 1.442695, %v355_v60 }
 0x1e1   :  { %2458 = vpow2.f32 %v383_v23  ;;  %v397_v5 = vmul.f32 1.442695, %v356_v1  ;;  %v399_v49 = vmul.f32 1.442695, %v357_v40  ;;  %v401_v39 = vmul.f32 1.442695, %v358_v16 }
 0x1e2   :  { %2460 = vpow2.f32 %v385_v3  ;;  %v403_v25 = vmul.f32 1.442695, %v359_v28  ;;  %v405_v44 = vmul.f32 1.442695, %v360_v54  ;;  %v407_v27 = vmul.f32 1.442695, %v361_v24 }
 0x1e3   :  { %2462 = vpow2.f32 %v387_v62  ;;  %v409_v38 = vmul.f32 1.442695, %v362_v58 }
 0x1e4   :  { %2464 = vpow2.f32 %v389_v37 }
 0x1e5   :  { %v3008_v53 = vpop.eup %2454  ;;  %2466 = vpow2.f32 %v391_v4 }
 0x1e6   :  { %v3010_v34 = vpop.eup %2456  ;;  %2468 = vpow2.f32 %v393_v59  ;;  %v447_v11 = vsel %vm229_vm5, %v3008_v53, 0.0 }
 0x1e7   :  { %v3014_v20 = vpop.eup %2458  ;;  %2470 = vpow2.f32 %v395_v32  ;;  %v448_v36 = vsel %vm231_vm4, %v3010_v34, 0.0 }
 0x1e8   :  { %v3018_v17 = vpop.eup %2460  ;;  %2472 = vpow2.f32 %v397_v5  ;;  %v449_v47 = vadd.f32 %v448_v36, %v447_v11  ;;  %v456_v33 = vsel %vm229_vm5, %v3014_v20, 0.0 }
 0x1e9   :  { %v3022_v0 = vpop.eup %2462  ;;  %2474 = vpow2.f32 %v399_v49  ;;  %v457_v50 = vsel %vm231_vm4, %v3018_v17, 0.0 }
 0x1ea   :  { %v3026_v35 = vpop.eup %2464  ;;  %2476 = vpow2.f32 %v401_v39  ;;  %v450_v18 = vrot.slane %v449_v47, 4  ;;  %v458_v14 = vadd.f32 %v457_v50, %v456_v33  ;;  %v465_v31 = vsel %vm229_vm5, %v3022_v0, 0.0 }
 0x1eb   :  { %v3030_v26 = vpop.eup %2466  ;;  %2478 = vpow2.f32 %v403_v25  ;;  %v466_v6 = vsel %vm231_vm4, %v3026_v35, 0.0  ;;  %v527_v25 = vmul.f32 %v3008_v53, %v2828_v41  ;;  %v528_v50 = vmul.f32 %v3010_v34, %v2825_v45 }
 0x1ec   :  { %v2469_v19 = vpop.eup %2468  ;;  %2480 = vpow2.f32 %v405_v44  ;;  %v451_v55 = vadd.f32 %v450_v18, %v449_v47  ;;  %v459_v48 = vrot.slane %v458_v14, 4  ;;  %v467_v22 = vadd.f32 %v466_v6, %v465_v31 }
 0x1ed   :  { %v2471_v21 = vpop.eup %2470  ;;  %2482 = vpow2.f32 %v407_v27  ;;  %v474_v52 = vsel %vm229_vm5, %v3030_v26, 0.0  ;;  %v475_v56 = vsel %vm231_vm4, %v2469_v19, 0.0  ;;  %v529_v53 = vmul.f32 %v3014_v20, %v2828_v41 }
 0x1ee   :  { %v2473_v9 = vpop.eup %2472  ;;  %2484 = vpow2.f32 %v409_v38  ;;  %v452_v57 = vrot.slane %v451_v55, 2  ;;  %v460_v29 = vadd.f32 %v459_v48, %v458_v14  ;;  %v468_v30 = vrot.slane %v467_v22, 4 }
 0x1ef   :  { %v2475_v60 = vpop.eup %2474  ;;  %v476_v1 = vadd.f32 %v475_v56, %v474_v52  ;;  %v483_v42 = vsel %vm229_vm5, %v2471_v21, 0.0  ;;  %v484_v46 = vsel %vm231_vm4, %v2473_v9, 0.0  ;;  %v530_v48 = vmul.f32 %v3018_v17, %v2825_v45 }
 0x1f0   :  { %v2477_v40 = vpop.eup %2476  ;;  %v461_v16 = vrot.slane %v460_v29, 2  ;;  %v469_v63 = vadd.f32 %v468_v30, %v467_v22  ;;  %v485_v28 = vadd.f32 %v484_v46, %v483_v42  ;;  %v492_v51 = vsel %vm229_vm5, %v2475_v60, 0.0 }
 0x1f1   :  { %v2479_v54 = vpop.eup %2478  ;;  %v477_v15 = vrot.slane %v476_v1, 4  ;;  %v493_v23 = vsel %vm231_vm4, %v2477_v40, 0.0  ;;  %v453_v24 = vadd.f32 %v452_v57, %v451_v55  ;;  %v579_v22 = vsel %vm229_vm5, %v527_v25, 0.0 }
 0x1f2   :  { %v2481_v2 = vpop.eup %2480  ;;  %v462_v58 = vadd.f32 %v461_v16, %v460_v29  ;;  %v470_v3 = vrot.slane %v469_v63, 2  ;;  %v486_v62 = vrot.slane %v485_v28, 4  ;;  %v494_v59 = vadd.f32 %v493_v23, %v492_v51 }
 0x1f3   :  { %v3041_v37 = vpop.eup %2482  ;;  %v478_v4 = vadd.f32 %v477_v15, %v476_v1  ;;  %v501_v32 = vsel %vm229_vm5, %v2479_v54, 0.0  ;;  %v502_v5 = vsel %vm231_vm4, %v2481_v2, 0.0  ;;  %v454_v27 = vrot.slane %v453_v24, 1 }
 0x1f4   :  { %v3045_v49 = vpop.eup %2484  ;;  %v471_v39 = vadd.f32 %v470_v3, %v469_v63  ;;  %v487_v11 = vadd.f32 %v486_v62, %v485_v28  ;;  %v495_v44 = vrot.slane %v494_v59, 4  ;;  %v503_v47 = vadd.f32 %v502_v5, %v501_v32 }
 0x1f5   :  { %v479_v36 = vrot.slane %v478_v4, 2  ;;  %v510_v33 = vsel %vm229_vm5, %v3041_v37, 0.0  ;;  %v511_v38 = vsel %vm231_vm4, %v3045_v49, 0.0  ;;  %v463_v18 = vrot.slane %v462_v58, 1 }
 0x1f6   :  { %v472_v14 = vrot.slane %v471_v39, 1  ;;  %v488_v31 = vrot.slane %v487_v11, 2  ;;  %v512_v6 = vadd.f32 %v511_v38, %v510_v33  ;;  %v496_v52 = vadd.f32 %v495_v44, %v494_v59 }
 0x1f7   :  { %v3055_v55 = vadd.f32 %v479_v36, %v478_v4  ;;  %v504_v56 = vrot.slane %v503_v47, 4  ;;  %v531_v57 = vmul.f32 %v3022_v0, %v2828_v41  ;;  %v532_v34 = vmul.f32 %v3026_v35, %v2825_v45 }
 0x1f8   :  { %v3066_v29 = vadd.f32 %v454_v27, %v453_v24  ;;  %v533_v30 = vmul.f32 %v3030_v26, %v2828_v41  ;;  %v534_v20 = vmul.f32 %v2469_v19, %v2825_v45  ;;  %v535_v1 = vmul.f32 %v2471_v21, %v2828_v41 }
 0x1f9   :  { %v3072_v17 = vadd.f32 %v463_v18, %v462_v58  ;;  %v3074_v42 = vadd.f32 %v472_v14, %v471_v39  ;;  %v3076_v46 = vadd.f32 %v488_v31, %v487_v11  ;;  %v513_v16 = vrot.slane %v512_v6, 4 }
 0x1fa   :  { %v481_v0 = vrot.slane %v3055_v55, 1  ;;  %v536_v35 = vmul.f32 %v2473_v9, %v2825_v45  ;;  %v537_v63 = vmul.f32 %v2475_v60, %v2828_v41  ;;  %v580_v28 = vsel %vm231_vm4, %v528_v50, 0.0 }
 0x1fb   :  { %v497_v26 = vrot.slane %v496_v52, 2  ;;  %v505_v15 = vadd.f32 %v504_v56, %v503_v47  ;;  %v538_v19 = vmul.f32 %v2477_v40, %v2825_v45  ;;  %v581_v21 = vadd.f32 %v580_v28, %v579_v22 }
 0x1fc   :  { %v588_v51 = vsel %vm229_vm5, %v529_v53, 0.0  ;;  %v589_v23 = vsel %vm231_vm4, %v530_v48, 0.0  ;;  %v597_v24 = vsel %vm229_vm5, %v531_v57, 0.0  ;;  %v598_v58 = vsel %vm231_vm4, %v532_v34, 0.0 }
 0x1fd   :  { %v514_v3 = vadd.f32 %v513_v16, %v512_v6  ;;  %v539_v9 = vmul.f32 %v2479_v54, %v2828_v41  ;;  %v540_v60 = vmul.f32 %v2481_v2, %v2825_v45  ;;  %v582_v62 = vrot.slane %v581_v21, 4 }
 0x1fe   :  { %v590_v4 = vadd.f32 %v589_v23, %v588_v51  ;;  %v599_v59 = vadd.f32 %v598_v58, %v597_v24  ;;  %v606_v32 = vsel %vm229_vm5, %v533_v30, 0.0  ;;  %v607_v40 = vsel %vm231_vm4, %v534_v20, 0.0 }
 0x1ff   :  { %v498_v5 = vadd.f32 %v497_v26, %v496_v52  ;;  %v506_v39 = vrot.slane %v505_v15, 2  ;;  %v583_v11 = vadd.f32 %v582_v62, %v581_v21  ;;  %v608_v25 = vadd.f32 %v607_v40, %v606_v32 }
 0x200   :  { %v591_v36 = vrot.slane %v590_v4, 4  ;;  %v600_v44 = vrot.slane %v599_v59, 4  ;;  %v615_v47 = vsel %vm229_vm5, %v535_v1, 0.0  ;;  %v616_v33 = vsel %vm231_vm4, %v536_v35, 0.0 }
 0x201   :  { %v515_v54 = vrot.slane %v514_v3, 2  ;;  %v541_v2 = vmul.f32 %v3041_v37, %v2828_v41  ;;  %v609_v27 = vrot.slane %v608_v25, 4  ;;  %v617_v38 = vadd.f32 %v616_v33, %v615_v47 }
 0x202   :  { %v592_v50 = vadd.f32 %v591_v36, %v590_v4  ;;  %v601_v18 = vadd.f32 %v600_v44, %v599_v59  ;;  %v624_v14 = vsel %vm229_vm5, %v537_v63, 0.0  ;;  %v625_v31 = vsel %vm231_vm4, %v538_v19, 0.0 }
 0x203   :  { %v584_v6 = vrot.slane %v583_v11, 2  ;;  %v610_v53 = vadd.f32 %v609_v27, %v608_v25  ;;  %v618_v48 = vrot.slane %v617_v38, 4  ;;  %v626_v22 = vadd.f32 %v625_v31, %v624_v14 }
 0x204   :  { %v542_v52 = vmul.f32 %v3045_v49, %v2825_v45  ;;  %v593_v56 = vrot.slane %v592_v50, 2  ;;  %v633_v57 = vsel %vm229_vm5, %v539_v9, 0.0  ;;  %v634_v41 = vsel %vm231_vm4, %v540_v60, 0.0 }
 0x205   :  { %v602_v37 = vrot.slane %v601_v18, 2  ;;  %v611_v34 = vrot.slane %v610_v53, 2  ;;  %v619_v30 = vadd.f32 %v618_v48, %v617_v38  ;;  %v627_v20 = vrot.slane %v626_v22, 4 }
 0x206   :  { %v507_v1 = vadd.f32 %v506_v39, %v505_v15  ;;  %v516_v16 = vadd.f32 %v515_v54, %v514_v3  ;;  %v635_v35 = vadd.f32 %v634_v41, %v633_v57  ;;  %v642_v63 = vsel %vm229_vm5, %v541_v2, 0.0 }
 0x207   :  { %v585_v28 = vadd.f32 %v584_v6, %v583_v11  ;;  %v594_v26 = vadd.f32 %v593_v56, %v592_v50  ;;  %v620_v19 = vrot.slane %v619_v30, 2  ;;  %v628_v21 = vadd.f32 %v627_v20, %v626_v22 }
 0x208   :  { %v490_v45 = vrot.slane %v3076_v46, 1  ;;  %v499_v49 = vrot.slane %v498_v5, 1  ;;  %v636_v51 = vrot.slane %v635_v35, 4  ;;  %v643_v23 = vsel %vm231_vm4, %v542_v52, 0.0 }
 0x209   :  { %v603_v24 = vadd.f32 %v602_v37, %v601_v18  ;;  %v612_v58 = vadd.f32 %v611_v34, %v610_v53  ;;  %v629_v9 = vrot.slane %v628_v21, 2  ;;  %v644_v60 = vadd.f32 %v643_v23, %v642_v63 }
 0x20a   :  { %v508_v62 = vrot.slane %v507_v1, 1  ;;  %v621_v15 = vadd.f32 %v620_v19, %v619_v30  ;;  %v637_v3 = vadd.f32 %v636_v51, %v635_v35  ;;  %2486 = vrcp.f32 %v3066_v29 }
 0x20b   :  { %v517_v4 = vrot.slane %v516_v16, 1  ;;  %v586_v59 = vrot.slane %v585_v28, 1  ;;  %v595_v32 = vrot.slane %v594_v26, 1  ;;  %v645_v40 = vrot.slane %v644_v60, 4 }
 0x20c   :  { %v3108_v39 = vadd.f32 %v481_v0, %v3055_v55  ;;  %v3111_v11 = vadd.f32 %v490_v45, %v3076_v46  ;;  %v630_v25 = vadd.f32 %v629_v9, %v628_v21  ;;  %v638_v36 = vrot.slane %v637_v3, 2 }
 0x20d   :  { %v604_v44 = vrot.slane %v603_v24, 1  ;;  %v613_v47 = vrot.slane %v612_v58, 1  ;;  %v646_v33 = vadd.f32 %v645_v40, %v644_v60  ;;  %2488 = vrcp.f32 %v3072_v17 }
 0x20e   :  { %v3114_v54 = vadd.f32 %v499_v49, %v498_v5  ;;  %v622_v2 = vrot.slane %v621_v15, 1  ;;  %v639_v27 = vadd.f32 %v638_v36, %v637_v3  ;;  %v718_v38 = vand.u32 2147483648, %v3066_v29 }
 0x20f   :  { %v3117_v50 = vadd.f32 %v508_v62, %v507_v1  ;;  %v3119_v55 = vadd.f32 %v517_v4, %v516_v16  ;;  %v3121_v0 = vadd.f32 %v586_v59, %v585_v28  ;;  %v3123_v46 = vadd.f32 %v595_v32, %v594_v26 }
 0x210   :  { %v3125_v18 = vpop.eup %2486  ;;  %v631_v14 = vrot.slane %v630_v25, 1  ;;  %v647_v31 = vrot.slane %v646_v33, 2  ;;  %v716_v6 = vand.u32 2147483647, %v3066_v29  ;;  %2490 = vrcp.f32 %v3074_v42 }
 0x211   :  { %v3129_v5 = vadd.f32 %v604_v44, %v603_v24  ;;  %v3131_v53 = vadd.f32 %v613_v47, %v612_v58  ;;  %v708_v48 = vmul.f32 %v3125_v18, %v3066_v29  ;;  %vm712_vm4 = vweird.f32 %v3066_v29 }
 0x212   :  { %v3136_v22 = vadd.f32 %v622_v2, %v621_v15  ;;  %v640_v52 = vrot.slane %v639_v27, 1  ;;  %v719_v56 = vor.u32 1.1754944e-38, %v718_v38  ;;  %v730_v57 = vand.u32 2147483647, %v3072_v17 }
 0x213   :  { %v3139_v41 = vpop.eup %2488  ;;  %v709_v37 = vsub.f32 1.0, %v708_v48  ;;  %vm726_vm5 = vweird.f32 %v3072_v17  ;;  %v732_v34 = vand.u32 2147483648, %v3072_v17  ;;  %2492 = vrcp.f32 %v3108_v39 }
 0x214   :  { %v3144_v30 = vadd.f32 %v631_v14, %v630_v25  ;;  %v3146_v20 = vadd.f32 %v647_v31, %v646_v33  ;;  %vm3148_vm8 = vcmp.eq.f32.partialorder %v716_v6, 8.507059e+37  ;;  %v722_v16 = vmul.f32 %v3139_v41, %v3072_v17 }
 0x215   :  { %v744_v35 = vand.u32 2147483647, %v3074_v42  ;;  %v710_v63 = vmul.f32 %v3125_v18, %v709_v37  ;;  %vm713_vm10 = vweird.f32 %v3125_v18  ;;  %vm740_vm11 = vweird.f32 %v3074_v42 }
 0x216   :  { %v746_v28 = vand.u32 2147483648, %v3074_v42  ;;  %2494 = vrcp.f32 %v3111_v11  ;;  %v2491_v26 = vpop.eup %2490  ;;  %v3160_v19 = vadd.f32 %v640_v52, %v639_v27  ;;  %v723_v21 = vsub.f32 1.0, %v722_v16  ;;  %vm3179_vm0 = vmor %vm712_vm4, %vm713_vm10 }
 0x217   :  { %vm3162_vm12 = vcmp.eq.f32.partialorder %v730_v57, 8.507059e+37  ;;  %v758_v49 = vand.u32 2147483647, %v3108_v39  ;;  %v711_v51 = vadd.f32 %v3125_v18, %v710_v63  ;;  %v733_v23 = vor.u32 1.1754944e-38, %v732_v34 }
 0x218   :  { %v736_v24 = vmul.f32 %v2491_v26, %v3074_v42  ;;  %v760_v58 = vand.u32 2147483648, %v3108_v39  ;;  %v724_v9 = vmul.f32 %v3139_v41, %v723_v21  ;;  %vm727_vm13 = vweird.f32 %v3139_v41 }
 0x219   :  { %v772_v60 = vand.u32 2147483647, %v3111_v11  ;;  %2496 = vrcp.f32 %v3114_v54  ;;  %v2493_v62 = vpop.eup %2492  ;;  %v649_v15 = vrot.slane %v3146_v20, 1  ;;  %vm3183_vm1 = vcmp.eq.f32.partialorder %v744_v35, 8.507059e+37  ;;  %vm3202_vm7 = vmor %vm726_vm5, %vm727_vm13 }
 0x21a   :  { %v737_v4 = vsub.f32 1.0, %v736_v24  ;;  %v747_v32 = vor.u32 1.1754944e-38, %v746_v28  ;;  %vm754_vm6 = vweird.f32 %v3108_v39  ;;  %v715_v40 = vsel %vm3179_vm0, %v3125_v18, %v711_v51 }
 0x21b   :  { %v725_v25 = vadd.f32 %v3139_v41, %v724_v9  ;;  %v750_v29 = vmul.f32 %v2493_v62, %v3108_v39  ;;  %vm3193_vm9 = vcmp.eq.f32.partialorder %v758_v49, 8.507059e+37  ;;  %v774_v44 = vand.u32 2147483648, %v3111_v11 }
 0x21c   :  { %v2495_v47 = vpop.eup %2494  ;;  %v738_v2 = vmul.f32 %v2491_v26, %v737_v4  ;;  %vm741_vm2 = vweird.f32 %v2491_v26  ;;  %v761_v27 = vor.u32 1.1754944e-38, %v760_v58  ;;  %vm768_vm4 = vweird.f32 %v3111_v11 }
 0x21d   :  { %v729_v38 = vsel %vm3202_vm7, %v3139_v41, %v725_v25  ;;  %v751_v18 = vsub.f32 1.0, %v750_v29  ;;  %v764_v14 = vmul.f32 %v2495_v47, %v3111_v11  ;;  %vm3211_vm10 = vcmp.eq.f32.partialorder %v772_v60, 8.507059e+37  ;;  %vm3223_vm13 = vmor %vm740_vm11, %vm741_vm2 }
 0x21e   :  { %v786_v17 = vand.u32 2147483647, %v3114_v54  ;;  %v720_v6 = vsel %vm3148_vm8, %v719_v56, %v715_v40  ;;  %v739_v48 = vadd.f32 %v2491_v26, %v738_v2  ;;  %vm782_vm5 = vweird.f32 %v3114_v54 }
 0x21f   :  { %v788_v52 = vand.u32 2147483648, %v3114_v54  ;;  %2498 = vrcp.f32 %v3117_v50  ;;  %v2497_v57 = vpop.eup %2496  ;;  %v752_v37 = vmul.f32 %v2493_v62, %v751_v18  ;;  %vm755_vm0 = vweird.f32 %v2493_v62 }
 0x220   :  { %v765_v34 = vsub.f32 1.0, %v764_v14  ;;  %v775_v16 = vor.u32 1.1754944e-38, %v774_v44  ;;  %v734_v56 = vsel %vm3162_vm12, %v733_v23, %v729_v38  ;;  %v743_v1 = vsel %vm3223_vm13, %v2491_v26, %v739_v48  ;;  %vm756_vm11 = vmor %vm754_vm6, %vm755_vm0 }
 0x221   :  { %vm769_vm8 = vweird.f32 %v2495_v47  ;;  %v778_v35 = vmul.f32 %v2497_v57, %v3114_v54  ;;  %v753_v63 = vadd.f32 %v2493_v62, %v752_v37  ;;  %v800_v42 = vand.u32 2147483647, %v3117_v50 }
 0x222   :  { %v766_v28 = vmul.f32 %v2495_v47, %v765_v34  ;;  %v802_v21 = vand.u32 2147483648, %v3117_v50  ;;  %vm3236_vm7 = vcmp.eq.f32.partialorder %v786_v17, 8.507059e+37  ;;  %v789_v45 = vor.u32 1.1754944e-38, %v788_v52  ;;  %vm770_vm6 = vmor %vm768_vm4, %vm769_vm8 }
 0x223   :  { %v779_v49 = vsub.f32 1.0, %v778_v35  ;;  %2500 = vrcp.f32 %v3119_v55  ;;  %v748_v26 = vsel %vm3183_vm1, %v747_v32, %v743_v1  ;;  %v757_v23 = vsel %vm756_vm11, %v2493_v62, %v753_v63 }
 0x224   :  { %v767_v24 = vadd.f32 %v2495_v47, %v766_v28  ;;  %vm783_vm12 = vweird.f32 %v2497_v57  ;;  %vm796_vm2 = vweird.f32 %v3117_v50  ;;  %v762_v39 = vsel %vm3193_vm9, %v761_v27, %v757_v23 }
 0x225   :  { %v2499_v58 = vpop.eup %2498  ;;  %v780_v9 = vmul.f32 %v2497_v57, %v779_v49  ;;  %v823_v60 = vmul.f32 %v720_v6, %v3121_v0  ;;  %v824_v3 = vmul.f32 %v734_v56, %v3123_v46  ;;  %vm3252_vm1 = vcmp.eq.f32.partialorder %v800_v42, 8.507059e+37  ;;  %vm784_vm9 = vmor %vm782_vm5, %vm783_vm12  ;;  %v2423_v49 = vld [vmem:[%s4395_s6] ss:$0 sm:$0xff] }
 0x226   :  { %v771_v4 = vsel %vm770_vm6, %v2495_v47, %v767_v24  ;;  %v792_v62 = vmul.f32 %v2499_v58, %v3117_v50  ;;  %v803_v32 = vor.u32 1.1754944e-38, %v802_v21  ;;  %v814_v11 = vand.u32 2147483647, %v3119_v55 }
 0x227   :  { %v776_v40 = vsel %vm3211_vm10, %v775_v16, %v771_v4  ;;  %v781_v25 = vadd.f32 %v2497_v57, %v780_v9  ;;  %v825_v29 = vmul.f32 %v748_v26, %v3129_v5  ;;  %v826_v46 = vmul.f32 %v762_v39, %v3131_v53 }
 0x228   :  { %v793_v0 = vsub.f32 1.0, %v792_v62  ;;  %v827_v36 = vmul.f32 %v776_v40, %v3136_v22  ;;  %vm843_vm4 = vcmask 1041409   ;;  %vm797_vm13 = vweird.f32 %v2499_v58 }
 0x229   :  { %v2501_v44 = vpop.eup %2500  ;;  %v785_v47 = vsel %vm784_vm9, %v2497_v57, %v781_v25  ;;  %v816_v33 = vand.u32 2147483648, %v3119_v55  ;;  %vm845_vm10 = vcmask 1042434   ;;  %vm847_vm0 = vcmask 1043459   ;;  %vm798_vm8 = vmor %vm796_vm2, %vm797_vm13 }
 0x22a   :  { %v790_v2 = vsel %vm3236_vm7, %v789_v45, %v785_v47  ;;  %v794_v5 = vmul.f32 %v2499_v58, %v793_v0  ;;  %v806_v27 = vmul.f32 %v2501_v44, %v3119_v55  ;;  %vm849_vm5 = vcmask 1044484  }
 0x22b   :  { %v828_v54 = vmul.f32 %v790_v2, %v3144_v30  ;;  %v864_v53 = vsel %vm843_vm4, %v824_v3, %v823_v60  ;;  %v844_v22 = vsel %vm843_vm4, %v2963_v43, %v2942_v12  ;;  %vm811_vm11 = vweird.f32 %v2501_v44 }
 0x22c   :  { %v795_v38 = vadd.f32 %v2499_v58, %v794_v5  ;;  %v807_v18 = vsub.f32 1.0, %v806_v27  ;;  %v865_v14 = vsel %vm845_vm10, %v825_v29, %v864_v53  ;;  %v846_v31 = vsel %vm845_vm10, %v2977_v8, %v844_v22  ;;  %v1001_v53 = vld [vmem:[%s4396_s7 + $0x10] sm:$0xff]  ;;  %v1002_v22 = vld [vmem:[%s4396_s7 + $0x18] sm:$0xff] }
 0x22d   :  { %v866_v30 = vsel %vm847_vm0, %v826_v46, %v865_v14  ;;  %v848_v17 = vsel %vm847_vm0, %v2997_v61, %v846_v31  ;;  %v857_v6 = vsel %vm843_vm4, %v828_v54, %v827_v36  ;;  %vm810_vm7 = vweird.f32 %v3119_v55  ;;  %1127 = vmatpush.msrb.mxu1 %v1001_v53  ;;  %1153 = vmatpush.msrb.mxu2 %v1002_v22  ;;  %v1587_v53 = vld [vmem:[%s4398_s9 + $0x1f8] sm:$0xff]  ;;  %v1538_v22 = vld [vmem:[%s4398_s9 + $0x70] sm:$0xff] }
 0x22e   :  { %v799_v12 = vsel %vm798_vm8, %v2499_v58, %v795_v38  ;;  %v808_v43 = vmul.f32 %v2501_v44, %v807_v18  ;;  %v867_v48 = vsel %vm849_vm5, %v827_v36, %v866_v30  ;;  %v850_v52 = vsel %vm849_vm5, %v823_v60, %v848_v17  ;;  %vm812_vm12 = vmor %vm810_vm7, %vm811_vm11 }
 0x22f   :  { %v804_v57 = vsel %vm3252_vm1, %v803_v32, %v799_v12  ;;  %v868_v8 = vsel %vm851_vm14, %v828_v54, %v867_v48  ;;  %v852_v50 = vsel %vm851_vm14, %v824_v3, %v850_v52  ;;  %v650_v34 = vadd.f32 %v649_v15, %v3146_v20  ;;  %v1000_v54 = vld [vmem:[%s4396_s7 + $0x8] sm:$0xff] }
 0x230   :  { %v809_v41 = vadd.f32 %v2501_v44, %v808_v43  ;;  %v829_v37 = vmul.f32 %v804_v57, %v3160_v19  ;;  %v854_v61 = vsel %vm853_vm3, %v825_v29, %v852_v50  ;;  %v817_v16 = vor.u32 1.1754944e-38, %v816_v33  ;;  %1101 = vmatpush.msrb.mxu0 %v1000_v54  ;;  %v1571_v54 = vld [vmem:[%s4398_s9 + $0x178] sm:$0xff] }
 0x231   :  { %v856_v56 = vsel %vm855_vm15, %v826_v46, %v854_v61  ;;  %vm815_vm2 = vcmp.eq.f32.partialorder %v814_v11, 8.507059e+37  ;;  %vm4433_vm14 = vcmask 64512   ;;  %vm4434_vm6 = vcmask 1043456  }
 0x232   :  { %v813_v1 = vsel %vm812_vm12, %v2501_v44, %v809_v41  ;;  %v869_v35 = vsel %vm853_vm3, %v829_v37, %v868_v8  ;;  %2363 = vmatmul.msk.f32.vlgmr.msra.gmra.mxu2 %vm4433_vm14, %v856_v56  ;;  %v858_v55 = vsel %vm845_vm10, %v829_v37, %v857_v6  ;;  %vm4435_vm1 = vmmov %vm4433_vm14  ;;  %v2545_v60 = vmov 8.0  }
 0x233   :  { %v818_v19 = vsel %vm815_vm2, %v817_v16, %v813_v1  ;;  %vm4436_vm9 = vmmov %vm4435_vm1  ;;  %2502 = vrcp.f32 %v2545_v60  ;;  %v2424_v16 = vld [vmem:[%s4395_s6 + $0x1] ss:$0 sm:$0xff] }
 0x234   :  { %v830_v63 = vmul.f32 %v818_v19, %v650_v34  ;;  %vm4437_vm3 = vmmov %vm4435_vm1 }
 0x235   :  { %vm4439_vm13 = vmmov %vm4435_vm1 }
 0x236   :  { %v870_v28 = vsel %vm855_vm15, %v830_v63, %v869_v35  ;;  %v859_v42 = vsel %vm847_vm0, %v830_v63, %v858_v55  ;;  %vm4438_vm15 = vmmov %vm4435_vm1  ;;  %v2425_v35 = vld [vmem:[%s4395_s6 + $0x2] ss:$0 sm:$0xff] }
 0x237   :  { %873 = vrot.lane.b32.xlu0 %v870_v28, %s2543_s19  ;;  %vm4440_vm10 = vmmov %vm4435_vm1 }
 0x238   :  { %vm4441_vm0 = vmmov %vm4435_vm1 }
 0x239   :  { %v872_v20 = vpop.permute.xlu2 %871  ;;  %v2503_v3 = vpop.eup %2502  ;;  %vm4442_vm5 = vmmov %vm4441_vm0 }
 0x23a   :  { %v876_v15 = vsel %vm4434_vm6, %v859_v42, %v872_v20  ;;  %v926_v4 = vmul.f32 8.0, %v2503_v3  ;;  %vm930_vm4 = vweird.f32 %v2503_v3  ;;  %vm4443_vm2 = vmmov %vm4441_vm0 }
 0x23b   :  { %2364 = vmatmul.msk.f32.gmra.mxu2 %vm4435_vm1, %v876_v15  ;;  %vm4444_vm14 = vmmov %vm4441_vm0 }
 0x23c   :  { %v927_v62 = vsub.f32 1.0, %v926_v4  ;;  %vm4445_vm1 = vmmov %vm4441_vm0 }
 0x23e   :  { %v928_v59 = vmul.f32 %v2503_v3, %v927_v62 }
 0x240   :  { %v929_v32 = vadd.f32 %v2503_v3, %v928_v59 }
 0x242   :  { %v3312_v40 = vsel %vm930_vm4, %v2503_v3, %v929_v32  ;;  %vm4448_vm4 = vmmov %vm4441_vm0 }
 0x2a9   :  { %v874_v21 = vpop.permute.xlu0 %873 }
 0x2aa   :  { %2365 = vmatmul.msk.f32.gmra.mxu2 %vm4436_vm9, %v874_v21  ;;  %vm4446_vm9 = vmmov %vm4441_vm0 }
 0x2b5   :  { %v904_v51 = vpop.f32.mrf.mxu2 }
 0x2b6   :  { %v905_v45 = vadd.f32 %v2423_v49, %v904_v51 }
 0x2b8   :  { %v913_v26 = vadd.f32 %v905_v45, %v2631_v7 }
 0x2ba   :  { %v916_v23 = vsel %vm4437_vm3, %v913_v26, 0.0 }
 0x2bb   :  { %917 = vadd.xlane.f32.xlu1 %v916_v23  ;;  %v1004_v23 = vld [vmem:[%s4396_s7 + $0x28] sm:$0xff] }
 0x2bc   :  { %1205 = vmatpush.msra.mxu0 %v1004_v23  ;;  %v1546_v23 = vld [vmem:[%s4398_s9 + $0xb0] sm:$0xff] }
 0x2be   :  { %v907_v24 = vpop.f32.mrf.mxu2 }
 0x2bf   :  { %v908_v58 = vadd.f32 %v2423_v49, %v907_v24  ;;  %v1005_v24 = vld [vmem:[%s4396_s7 + $0x30] sm:$0xff] }
 0x2c0   :  { %1231 = vmatpush.msra.mxu1 %v1005_v24  ;;  %v1562_v24 = vld [vmem:[%s4398_s9 + $0x130] sm:$0xff] }
 0x2c1   :  { %v914_v39 = vadd.f32 %v908_v58, %v2638_v10  ;;  %v1006_v58 = vld [vmem:[%s4396_s7 + $0x38] sm:$0xff] }
 0x2c2   :  { %1257 = vmatpush.msra.mxu2 %v1006_v58  ;;  %v1578_v58 = vld [vmem:[%s4398_s9 + $0x1b0] sm:$0xff] }
 0x2c3   :  { %v919_v9 = vsel %vm4438_vm15, %v914_v39, 0.0  ;;  %vm4447_vm15 = vmmov %vm4441_vm0 }
 0x2c4   :  { %920 = vadd.xlane.f32.xlu2 %v919_v9 }
 0x32d   :  { %v910_v7 = vpop.f32.mrf.mxu2 }
 0x32e   :  { %v911_v25 = vadd.f32 %v2423_v49, %v910_v7  ;;  %v918_v11 = vpop.xlane.xlu1 %917 }
 0x32f   :  { %v932_v29 = vmul.f32 %v3312_v40, %v918_v11  ;;  %v1007_v11 = vld [vmem:[%s4396_s7 + $0x40] sm:$0xff] }
 0x330   :  { %v915_v10 = vadd.f32 %v911_v25, %v2645_v13  ;;  %v999_v13 = vld [vmem:[%s4396_s7] sm:$0xff] }
 0x331   :  { %v935_v0 = vsub.f32 %v913_v26, %v932_v29  ;;  %1075 = vmatpush.msra.mxu3 %v999_v13  ;;  %v1003_v26 = vld [vmem:[%s4396_s7 + $0x20] sm:$0xff]  ;;  %v1008_v29 = vld [vmem:[%s4396_s7 + $0x48] sm:$0xff]  ;;  %v1555_v13 = vld [vmem:[%s4398_s9 + $0xf8] sm:$0xff] }
 0x332   :  { %v922_v46 = vsel %vm4439_vm13, %v915_v10, 0.0  ;;  %vm4449_vm13 = vmmov %vm4441_vm0 }
 0x333   :  { %923 = vadd.xlane.f32.xlu0 %v922_v46  ;;  %v938_v36 = vmul.f32 %v935_v0, %v935_v0  ;;  %1179 = vmatpush.msrb.mxu3 %v1003_v26  ;;  %v1010_v46 = vld [vmem:[%s4396_s7 + $0x58] sm:$0xff]  ;;  %v1530_v26 = vld [vmem:[%s4398_s9 + $0x30] sm:$0xff] }
 0x335   :  { %v941_v44 = vsel %vm4440_vm10, %v938_v36, 0.0  ;;  %vm4450_vm10 = vmmov %vm4441_vm0 }
 0x336   :  { %942 = vadd.xlane.f32.xlu2 %v941_v44 }
 0x337   :  { %v921_v47 = vpop.xlane.xlu2 %920 }
 0x338   :  { %v933_v33 = vmul.f32 %v3312_v40, %v921_v47  ;;  %v1011_v47 = vld [vmem:[%s4396_s7 + $0x60] sm:$0xff] }
 0x33a   :  { %v936_v2 = vsub.f32 %v914_v39, %v933_v33  ;;  %v1012_v33 = vld [vmem:[%s4396_s7 + $0x68] sm:$0xff] }
 0x33c   :  { %v939_v5 = vmul.f32 %v936_v2, %v936_v2 }
 0x33e   :  { %v944_v27 = vsel %vm4441_vm0, %v939_v5, 0.0  ;;  %v1014_v5 = vld [vmem:[%s4396_s7 + $0x78] sm:$0xff] }
 0x33f   :  { %945 = vadd.xlane.f32.xlu1 %v944_v27  ;;  %v1539_v27 = vld [vmem:[%s4398_s9 + $0x78] sm:$0xff] }
 0x3a6   :  { %v924_v38 = vpop.xlane.xlu0 %923 }
 0x3a7   :  { %v934_v18 = vmul.f32 %v3312_v40, %v924_v38  ;;  %v1554_v38 = vld [vmem:[%s4398_s9 + $0xf0] sm:$0xff] }
 0x3a9   :  { %v3333_v14 = vsub.f32 %v915_v10, %v934_v18  ;;  %v943_v31 = vpop.xlane.xlu2 %942  ;;  %v1009_v10 = vld [vmem:[%s4396_s7 + $0x50] sm:$0xff] }
 0x3aa   :  { %v950_v30 = vmul.f32 %v943_v31, %v3312_v40  ;;  %v1570_v18 = vld [vmem:[%s4398_s9 + $0x170] sm:$0xff]  ;;  %v1537_v31 = vld [vmem:[%s4398_s9 + $0x68] sm:$0xff] }
 0x3ab   :  { %v940_v17 = vmul.f32 %v3333_v14, %v3333_v14 }
 0x3ac   :  { %v953_v6 = vadd.f32 1e-05, %v950_v30  ;;  %v1553_v30 = vld [vmem:[%s4398_s9 + $0xe8] sm:$0xff] }
 0x3ad   :  { %v947_v12 = vsel %vm4442_vm5, %v940_v17, 0.0  ;;  %v1569_v17 = vld [vmem:[%s4398_s9 + $0x168] sm:$0xff] }
 0x3ae   :  { %948 = vadd.xlane.f32.xlu2 %v947_v12  ;;  %2504 = vrsqrt.f32 %v953_v6  ;;  %vm962_vm11 = vweird.f32 %v953_v6  ;;  %v1536_v12 = vld [vmem:[%s4398_s9 + $0x60] sm:$0xff] }
 0x3b2   :  { %v946_v43 = vpop.xlane.xlu1 %945 }
 0x3b3   :  { %v951_v48 = vmul.f32 %v946_v43, %v3312_v40  ;;  %v1552_v43 = vld [vmem:[%s4398_s9 + $0xe0] sm:$0xff] }
 0x3b4   :  { %v2505_v52 = vpop.eup %2504 }
 0x3b5   :  { %v957_v57 = vmul.f32 %v2505_v52, %v953_v6  ;;  %v954_v8 = vadd.f32 1e-05, %v951_v48  ;;  %vm963_vm8 = vweird.f32 %v2505_v52  ;;  %v1585_v6 = vld [vmem:[%s4398_s9 + $0x1e8] sm:$0xff]  ;;  %v1568_v48 = vld [vmem:[%s4398_s9 + $0x160] sm:$0xff] }
 0x3b6   :  { %vm964_vm7 = vmor %vm962_vm11, %vm963_vm8 }
 0x3b7   :  { %v958_v50 = vmul.f32 %v2505_v52, %v957_v57  ;;  %2506 = vrsqrt.f32 %v954_v8  ;;  %vm972_vm6 = vweird.f32 %v954_v8  ;;  %vm4451_vm11 = vmmov %vm4445_vm1  ;;  %v1535_v57 = vld [vmem:[%s4398_s9 + $0x58] sm:$0xff] }
 0x3b9   :  { %v959_v41 = vmul.f32 0.5, %v958_v50  ;;  %v1567_v50 = vld [vmem:[%s4398_s9 + $0x158] sm:$0xff] }
 0x3bb   :  { %v960_v37 = vsub.f32 1.5, %v959_v41  ;;  %v1583_v41 = vld [vmem:[%s4398_s9 + $0x1d8] sm:$0xff] }
 0x3bd   :  { %v2507_v61 = vpop.eup %2506  ;;  %v961_v34 = vmul.f32 %v2505_v52, %v960_v37  ;;  %v1534_v37 = vld [vmem:[%s4398_s9 + $0x50] sm:$0xff] }
 0x3be   :  { %v967_v56 = vmul.f32 %v2507_v61, %v954_v8  ;;  %vm973_vm12 = vweird.f32 %v2507_v61  ;;  %v1551_v8 = vld [vmem:[%s4398_s9 + $0xd8] sm:$0xff] }
 0x3bf   :  { %v965_v1 = vsel %vm964_vm7, %v2505_v52, %v961_v34  ;;  %vm974_vm3 = vmor %vm972_vm6, %vm973_vm12  ;;  %v1584_v52 = vld [vmem:[%s4398_s9 + $0x1e0] sm:$0xff]  ;;  %v1566_v34 = vld [vmem:[%s4398_s9 + $0x150] sm:$0xff] }
 0x3c0   :  { %v986_v55 = vmul.f32 %v965_v1, %v935_v0  ;;  %v968_v19 = vmul.f32 %v2507_v61, %v967_v56  ;;  %vm4452_vm7 = vmmov %vm4445_vm1  ;;  %v1533_v56 = vld [vmem:[%s4398_s9 + $0x48] sm:$0xff] }
 0x3c1   :  { %vm4453_vm12 = vmmov %vm4445_vm1  ;;  %v1549_v1 = vld [vmem:[%s4398_s9 + $0xc8] sm:$0xff] }
 0x3c2   :  { %v991_v63 = vmul.f32 %v2424_v16, %v986_v55  ;;  %v969_v28 = vmul.f32 0.5, %v968_v19  ;;  %vm4456_vm6 = vmmov %vm4445_vm1  ;;  %v1581_v55 = vld [vmem:[%s4398_s9 + $0x1c8] sm:$0xff]  ;;  %v1532_v19 = vld [vmem:[%s4398_s9 + $0x40] sm:$0xff] }
 0x3c4   :  { %v3346_v42 = vadd.f32 %v2425_v35, %v991_v63  ;;  %v970_v20 = vsub.f32 1.5, %v969_v28  ;;  %v1548_v63 = vld [vmem:[%s4398_s9 + $0xc0] sm:$0xff] }
 0x3c5   :  { %v1564_v28 = vld [vmem:[%s4398_s9 + $0x140] sm:$0xff] }
 0x3c6   :  { %2366 = vmatmul.msk.f32.vlgmr.msra.gmra.mxu3 %vm4443_vm2, %v3346_v42  ;;  %2369 = vmatmul.msk.f32.vlgmr.msrb.gmra.mxu0 %vm4444_vm14, %v3346_v42  ;;  %v971_v15 = vmul.f32 %v2507_v61, %v970_v20  ;;  %vm4454_vm2 = vmmov %vm4445_vm1  ;;  %v1580_v20 = vld [vmem:[%s4398_s9 + $0x1c0] sm:$0xff] }
 0x3c7   :  { %2372 = vmatmul.msk.f32.vlgmr.msrb.gmra.mxu1 %vm4445_vm1, %v3346_v42  ;;  %2375 = vmatmul.msk.f32.vlgmr.msrb.gmra.mxu2 %vm4446_vm9, %v3346_v42  ;;  %vm4455_vm14 = vmmov %vm4445_vm1 }
 0x3c8   :  { %v975_v21 = vsel %vm974_vm3, %v2507_v61, %v971_v15  ;;  %1283 = vmatpush.msra.mxu3 %v1007_v11  ;;  %1309 = vmatpush.msrb.mxu0 %v1008_v29  ;;  %vm4457_vm9 = vmmov %vm4445_vm1  ;;  %v1550_v61 = vld [vmem:[%s4398_s9 + $0xd0] sm:$0xff]  ;;  %v1531_v15 = vld [vmem:[%s4398_s9 + $0x38] sm:$0xff] }
 0x3c9   :  { %v987_v49 = vmul.f32 %v975_v21, %v936_v2  ;;  %1335 = vmatpush.msrb.mxu1 %v1009_v10  ;;  %1361 = vmatpush.msrb.mxu2 %v1010_v46  ;;  %vm4458_vm3 = vmmov %vm4445_vm1  ;;  %v1013_v2 = vld [vmem:[%s4396_s7 + $0x70] sm:$0xff]  ;;  %v1547_v21 = vld [vmem:[%s4398_s9 + $0xb8] sm:$0xff] }
 0x3ca   :  { %v1559_v11 = vld [vmem:[%s4398_s9 + $0x118] sm:$0xff]  ;;  %v1526_v10 = vld [vmem:[%s4398_s9 + $0x10] sm:$0xff] }
 0x3cb   :  { %v992_v51 = vmul.f32 %v2424_v16, %v987_v49  ;;  %v1563_v49 = vld [vmem:[%s4398_s9 + $0x138] sm:$0xff]  ;;  %v1558_v46 = vld [vmem:[%s4398_s9 + $0x110] sm:$0xff] }
 0x3cc   :  { %v1575_v29 = vld [vmem:[%s4398_s9 + $0x198] sm:$0xff] }
 0x3cd   :  { %v3356_v45 = vadd.f32 %v2425_v35, %v992_v51  ;;  %v1579_v51 = vld [vmem:[%s4398_s9 + $0x1b8] sm:$0xff] }
 0x3cf   :  { %2367 = vmatmul.msk.f32.gmra.mxu3 %vm4447_vm15, %v3356_v45  ;;  %2370 = vmatmul.msk.f32.gmra.mxu0 %vm4448_vm4, %v3356_v45  ;;  %vm4459_vm15 = vmmov %vm4445_vm1 }
 0x3d0   :  { %2373 = vmatmul.msk.f32.gmra.mxu1 %vm4449_vm13, %v3356_v45  ;;  %2376 = vmatmul.msk.f32.gmra.mxu2 %vm4450_vm10, %v3356_v45  ;;  %vm4460_vm4 = vmmov %vm4445_vm1 }
 0x3d1   :  { %vm4461_vm13 = vmmov %vm4445_vm1 }
 0x3d2   :  { %vm4462_vm10 = vmmov %vm4445_vm1 }
 0x421   :  { %v949_v39 = vpop.xlane.xlu2 %948 }
 0x422   :  { %v952_v9 = vmul.f32 %v949_v39, %v3312_v40  ;;  %v1529_v39 = vld [vmem:[%s4398_s9 + $0x28] sm:$0xff] }
 0x424   :  { %v955_v60 = vadd.f32 1e-05, %v952_v9  ;;  %v1545_v9 = vld [vmem:[%s4398_s9 + $0xa8] sm:$0xff] }
 0x426   :  { %2508 = vrsqrt.f32 %v955_v60  ;;  %vm982_vm5 = vweird.f32 %v955_v60 }
 0x42c   :  { %v2509_v3 = vpop.eup %2508 }
 0x42d   :  { %v977_v4 = vmul.f32 %v2509_v3, %v955_v60  ;;  %vm983_vm0 = vweird.f32 %v2509_v3  ;;  %v1561_v60 = vld [vmem:[%s4398_s9 + $0x128] sm:$0xff] }
 0x42e   :  { %vm984_vm8 = vmor %vm982_vm5, %vm983_vm0 }
 0x42f   :  { %v978_v62 = vmul.f32 %v2509_v3, %v977_v4  ;;  %vm4463_vm0 = vmmov %vm4445_vm1  ;;  %v1528_v4 = vld [vmem:[%s4398_s9 + $0x20] sm:$0xff] }
 0x430   :  { %vm4464_vm5 = vmmov %vm4463_vm0 }
 0x431   :  { %v979_v59 = vmul.f32 0.5, %v978_v62  ;;  %v1544_v62 = vld [vmem:[%s4398_s9 + $0xa0] sm:$0xff] }
 0x433   :  { %v980_v32 = vsub.f32 1.5, %v979_v59  ;;  %v1560_v59 = vld [vmem:[%s4398_s9 + $0x120] sm:$0xff] }
 0x435   :  { %v981_v7 = vmul.f32 %v2509_v3, %v980_v32  ;;  %v1576_v32 = vld [vmem:[%s4398_s9 + $0x1a0] sm:$0xff] }
 0x437   :  { %v985_v25 = vsel %vm984_vm8, %v2509_v3, %v981_v7  ;;  %vm4465_vm8 = vmmov %vm4463_vm0  ;;  %v1577_v3 = vld [vmem:[%s4398_s9 + $0x1a8] sm:$0xff]  ;;  %v1527_v7 = vld [vmem:[%s4398_s9 + $0x18] sm:$0xff] }
 0x438   :  { %v988_v0 = vmul.f32 %v985_v25, %v3333_v14  ;;  %v1586_v14 = vld [vmem:[%s4398_s9 + $0x1f0] sm:$0xff]  ;;  %v1543_v25 = vld [vmem:[%s4398_s9 + $0x98] sm:$0xff] }
 0x43a   :  { %v993_v36 = vmul.f32 %v2424_v16, %v988_v0  ;;  %v1582_v16 = vld [vmem:[%s4398_s9 + $0x1d0] sm:$0xff] }
 0x43b   :  { %v1542_v0 = vld [vmem:[%s4398_s9 + $0x90] sm:$0xff] }
 0x43c   :  { %v3392_v44 = vadd.f32 %v2425_v35, %v993_v36  ;;  %v1565_v35 = vld [vmem:[%s4398_s9 + $0x148] sm:$0xff]  ;;  %v1574_v36 = vld [vmem:[%s4398_s9 + $0x190] sm:$0xff] }
 0x43e   :  { %2368 = vmatmul.msk.f32.gmra.mxu3 %vm4451_vm11, %v3392_v44  ;;  %2371 = vmatmul.msk.f32.gmra.mxu0 %vm4452_vm7, %v3392_v44  ;;  %vm4466_vm11 = vmmov %vm4463_vm0 }
 0x43f   :  { %2374 = vmatmul.msk.f32.gmra.mxu1 %vm4453_vm12, %v3392_v44  ;;  %2377 = vmatmul.msk.f32.gmra.mxu2 %vm4454_vm2, %v3392_v44  ;;  %vm4467_vm7 = vmmov %vm4463_vm0 }
 0x440   :  { %vm4468_vm12 = vmmov %vm4463_vm0 }
 0x441   :  { %vm4469_vm2 = vmmov %vm4463_vm0 }
 0x446   :  { %2378 = vmatmul.msk.f32.vlgmr.msrb.gmra.mxu3 %vm4455_vm14, %v3346_v42  ;;  %2381 = vmatmul.msk.f32.vlgmr.msra.gmra.mxu0 %vm4456_vm6, %v3346_v42  ;;  %vm4470_vm14 = vmmov %vm4463_vm0 }
 0x447   :  { %2384 = vmatmul.msk.f32.vlgmr.msra.gmra.mxu1 %vm4445_vm1, %v3346_v42  ;;  %2387 = vmatmul.msk.f32.vlgmr.msra.gmra.mxu2 %vm4457_vm9, %v3346_v42  ;;  %vm4471_vm6 = vmmov %vm4463_vm0 }
 0x448   :  { %1387 = vmatpush.msrb.mxu3 %v1011_v47  ;;  %1413 = vmatpush.msra.mxu0 %v1012_v33  ;;  %vm4472_vm1 = vmmov %vm4463_vm0  ;;  %v3649_v47 = vld [vmem:[%s4397_s8] sm:$0xff]  ;;  %v1525_v33 = vld [vmem:[%s4398_s9 + $0x8] sm:$0xff] }
 0x449   :  { %1439 = vmatpush.msra.mxu1 %v1013_v2  ;;  %1465 = vmatpush.msra.mxu2 %v1014_v5  ;;  %vm4473_vm9 = vmmov %vm4463_vm0  ;;  %v1541_v2 = vld [vmem:[%s4398_s9 + $0x88] sm:$0xff] }
 0x44a   :  { %v1557_v5 = vld [vmem:[%s4398_s9 + $0x108] sm:$0xff] }
 0x44e   :  { %2379 = vmatmul.msk.f32.gmra.mxu3 %vm4458_vm3, %v3356_v45  ;;  %2382 = vmatmul.msk.f32.gmra.mxu0 %vm4459_vm15, %v3356_v45  ;;  %vm4474_vm3 = vmmov %vm4463_vm0 }
 0x44f   :  { %2385 = vmatmul.msk.f32.gmra.mxu1 %vm4460_vm4, %v3356_v45  ;;  %2388 = vmatmul.msk.f32.gmra.mxu2 %vm4461_vm13, %v3356_v45  ;;  %vm4475_vm15 = vmmov %vm4463_vm0 }
 0x450   :  { %vm4476_vm4 = vmmov %vm4463_vm0 }
 0x451   :  { %vm4477_vm13 = vmmov %vm4463_vm0 }
 0x456   :  { %2380 = vmatmul.msk.f32.gmra.mxu3 %vm4462_vm10, %v3392_v44  ;;  %2383 = vmatmul.msk.f32.gmra.mxu0 %vm4463_vm0, %v3392_v44  ;;  %vm4478_vm10 = vmmov %vm4463_vm0 }
 0x457   :  { %2386 = vmatmul.msk.f32.gmra.mxu1 %vm4464_vm5, %v3392_v44  ;;  %2389 = vmatmul.msk.f32.gmra.mxu2 %vm4465_vm8, %v3392_v44  ;;  %vm4479_vm5 = vmmov %vm4463_vm0 }
 0x458   :  { %vm4480_vm8 = vmmov %vm4463_vm0 }
 0x45e   :  { %2390 = vmatmul.msk.f32.vlgmr.msra.gmra.mxu3 %vm4466_vm11, %v3346_v42  ;;  %2393 = vmatmul.msk.f32.vlgmr.msrb.gmra.mxu0 %vm4467_vm7, %v3346_v42  ;;  %vm4481_vm11 = vmmov %vm4463_vm0 }
 0x45f   :  { %2396 = vmatmul.msk.f32.vlgmr.msrb.gmra.mxu1 %vm4468_vm12, %v3346_v42  ;;  %2399 = vmatmul.msk.f32.vlgmr.msrb.gmra.mxu2 %vm4469_vm2, %v3346_v42  ;;  %vm4482_vm7 = vmmov %vm4463_vm0 }
 0x460   :  { %1782 = vmatpush.msra.mxu3 %v1539_v27  ;;  %1808 = vmatpush.msrb.mxu0 %v1555_v13  ;;  %vm4483_vm12 = vmmov %vm4463_vm0  ;;  %v1573_v27 = vld [vmem:[%s4398_s9 + $0x188] sm:$0xff]  ;;  %v1103_v13 = vpop.f32.mrf.mxu0 }
 0x461   :  { %1834 = vmatpush.msrb.mxu1 %v1571_v54  ;;  %1860 = vmatpush.msrb.mxu2 %v1587_v53  ;;  %vm4484_vm2 = vmmov %vm4463_vm0  ;;  %v3664_v54 = vperm.slane %v3649_v47, 1  ;;  %v1129_v53 = vpop.f32.mrf.mxu1 }
 0x462   :  { %1783 = vmatpush.msra.mxu3 %v1538_v22  ;;  %1809 = vmatpush.msrb.mxu0 %v1554_v38  ;;  %v3667_v22 = vperm.slane %v3649_v47, 0  ;;  %v3670_v38 = vperm.slane %v3649_v47, 2 }
 0x463   :  { %1835 = vmatpush.msrb.mxu1 %v1570_v18  ;;  %1861 = vmatpush.msrb.mxu2 %v1586_v14  ;;  %v1077_v18 = vpop.f32.mrf.mxu3  ;;  %v3673_v14 = vperm.slane %v3649_v47, 3 }
 0x464   :  { %1784 = vmatpush.msra.mxu3 %v1537_v31  ;;  %1810 = vmatpush.msrb.mxu0 %v1553_v30  ;;  %v1524_v31 = vld [vmem:[%s4398_s9] sm:$0xff] }
 0x465   :  { %1836 = vmatpush.msrb.mxu1 %v1569_v17  ;;  %1862 = vmatpush.msrb.mxu2 %v1585_v6  ;;  %v1540_v30 = vld [vmem:[%s4398_s9 + $0x80] sm:$0xff]  ;;  %v1155_v17 = vpop.f32.mrf.mxu2 }
 0x466   :  { %2391 = vmatmul.msk.f32.gmra.mxu3 %vm4470_vm14, %v3356_v45  ;;  %2394 = vmatmul.msk.f32.gmra.mxu0 %vm4471_vm6, %v3356_v45  ;;  %vm4485_vm14 = vmmov %vm4463_vm0  ;;  %v1556_v6 = vld [vmem:[%s4398_s9 + $0x100] sm:$0xff] }
 0x467   :  { %2397 = vmatmul.msk.f32.gmra.mxu1 %vm4472_vm1, %v3356_v45  ;;  %2400 = vmatmul.msk.f32.gmra.mxu2 %vm4473_vm9, %v3356_v45  ;;  %vm4486_vm6 = vmmov %vm4463_vm0 }
 0x468   :  { %1785 = vmatpush.msra.mxu3 %v1536_v12  ;;  %1811 = vmatpush.msrb.mxu0 %v1552_v43  ;;  %v1572_v12 = vld [vmem:[%s4398_s9 + $0x180] sm:$0xff]  ;;  %vm4487_vm1 = vmmov %vm4463_vm0  ;;  %v1619_v43 = vld [vmem:[%s4398_s9 + $0x2f8] sm:$0xff] }
 0x469   :  { %1837 = vmatpush.msrb.mxu1 %v1568_v48  ;;  %1863 = vmatpush.msrb.mxu2 %v1584_v52  ;;  %vm4488_vm9 = vmmov %vm4463_vm0  ;;  %v1635_v48 = vld [vmem:[%s4398_s9 + $0x378] sm:$0xff]  ;;  %v1104_v52 = vadd.f32 %v1103_v13, %v3664_v54  ;;  %v1646_v13 = vld [vmem:[%s4398_s9 + $0x3d0] sm:$0xff] }
 0x46a   :  { %1786 = vmatpush.msra.mxu3 %v1535_v57  ;;  %1812 = vmatpush.msrb.mxu0 %v1551_v8  ;;  %v1078_v57 = vadd.f32 %v1077_v18, %v3667_v22  ;;  %v1603_v8 = vld [vmem:[%s4398_s9 + $0x278] sm:$0xff]  ;;  %v1597_v18 = vld [vmem:[%s4398_s9 + $0x248] sm:$0xff] }
 0x46b   :  { %1838 = vmatpush.msrb.mxu1 %v1567_v50  ;;  %1864 = vmatpush.msrb.mxu2 %v1583_v41  ;;  %v1651_v50 = vld [vmem:[%s4398_s9 + $0x3f8] sm:$0xff]  ;;  %v1130_v41 = vadd.f32 %v1129_v53, %v3670_v38 }
 0x46c   :  { %1787 = vmatpush.msra.mxu3 %v1534_v37  ;;  %1813 = vmatpush.msrb.mxu0 %v1550_v61  ;;  %v1156_v37 = vadd.f32 %v1155_v17, %v3673_v14  ;;  %v1618_v61 = vld [vmem:[%s4398_s9 + $0x2f0] sm:$0xff]  ;;  %v1627_v53 = vld [vmem:[%s4398_s9 + $0x338] sm:$0xff] }
 0x46d   :  { %1839 = vmatpush.msrb.mxu1 %v1566_v34  ;;  %1865 = vmatpush.msrb.mxu2 %v1582_v16  ;;  %v1634_v34 = vld [vmem:[%s4398_s9 + $0x370] sm:$0xff] }
 0x46e   :  { %2392 = vmatmul.msk.f32.gmra.mxu3 %vm4474_vm3, %v3392_v44  ;;  %2395 = vmatmul.msk.f32.gmra.mxu0 %vm4475_vm15, %v3392_v44  ;;  %v1602_v16 = vld [vmem:[%s4398_s9 + $0x270] sm:$0xff]  ;;  %vm4489_vm3 = vmmov %vm4463_vm0 }
 0x46f   :  { %2398 = vmatmul.msk.f32.gmra.mxu1 %vm4476_vm4, %v3392_v44  ;;  %2401 = vmatmul.msk.f32.gmra.mxu2 %vm4477_vm13, %v3392_v44  ;;  %v1626_v17 = vld [vmem:[%s4398_s9 + $0x330] sm:$0xff]  ;;  %vm4490_vm15 = vmmov %vm4463_vm0 }
 0x470   :  { %1788 = vmatpush.msra.mxu3 %v1533_v56  ;;  %1814 = vmatpush.msrb.mxu0 %v1549_v1  ;;  %v1650_v56 = vld [vmem:[%s4398_s9 + $0x3f0] sm:$0xff]  ;;  %v1106_v1 = vpop.f32.mrf.mxu0  ;;  %vm4491_vm4 = vmmov %vm4463_vm0 }
 0x471   :  { %1840 = vmatpush.msrb.mxu1 %v1565_v35  ;;  %1866 = vmatpush.msrb.mxu2 %v1581_v55  ;;  %v1477_v35 = vmax.f32 %v1104_v52, 0.0  ;;  %v1476_v55 = vmax.f32 %v1078_v57, 0.0  ;;  %v1595_v52 = vld [vmem:[%s4398_s9 + $0x238] sm:$0xff]  ;;  %v1609_v57 = vld [vmem:[%s4398_s9 + $0x2a8] sm:$0xff]  ;;  %vm4492_vm13 = vmmov %vm4463_vm0 }
 0x472   :  { %1789 = vmatpush.msra.mxu3 %v1532_v19  ;;  %1815 = vmatpush.msrb.mxu0 %v1548_v63  ;;  %v1132_v19 = vpop.f32.mrf.mxu1  ;;  %v1478_v63 = vmax.f32 %v1130_v41, 0.0  ;;  %v1594_v41 = vld [vmem:[%s4398_s9 + $0x230] sm:$0xff] }
 0x473   :  { %1841 = vmatpush.msrb.mxu1 %v1564_v28  ;;  %1867 = vmatpush.msrb.mxu2 %v1580_v20  ;;  %v1479_v28 = vmax.f32 %v1156_v37, 0.0  ;;  %v1617_v20 = vld [vmem:[%s4398_s9 + $0x2e8] sm:$0xff]  ;;  %v1608_v37 = vld [vmem:[%s4398_s9 + $0x2a0] sm:$0xff] }
 0x474   :  { %1790 = vmatpush.msra.mxu3 %v1531_v15  ;;  %1816 = vmatpush.msrb.mxu0 %v1547_v21  ;;  %v1633_v15 = vld [vmem:[%s4398_s9 + $0x368] sm:$0xff]  ;;  %v1080_v21 = vpop.f32.mrf.mxu3 }
 0x475   :  { %1842 = vmatpush.msrb.mxu1 %v1563_v49  ;;  %1868 = vmatpush.msrb.mxu2 %v1579_v51  ;;  %v1107_v49 = vadd.f32 %v1106_v1, %v3664_v54  ;;  %v1601_v51 = vld [vmem:[%s4398_s9 + $0x268] sm:$0xff] }
 0x476   :  { %2402 = vmatmul.msk.f32.vlgmr.msrb.gmra.mxu3 %vm4478_vm10, %v3346_v42  ;;  %2405 = vmatmul.msk.f32.vlgmr.msra.gmra.mxu0 %vm4463_vm0, %v3346_v42  ;;  %v1641_v1 = vld [vmem:[%s4398_s9 + $0x3a8] sm:$0xff]  ;;  %vm4493_vm10 = vmmov %vm4463_vm0 }
 0x477   :  { %2408 = vmatmul.msk.f32.vlgmr.msra.gmra.mxu1 %vm4479_vm5, %v3346_v42  ;;  %2411 = vmatmul.msk.f32.vlgmr.msra.gmra.mxu2 %vm4480_vm8, %v3346_v42 }
 0x478   :  { %1791 = vmatpush.msra.mxu3 %v1530_v26  ;;  %1817 = vmatpush.msrb.mxu0 %v1546_v23  ;;  %v1649_v26 = vld [vmem:[%s4398_s9 + $0x3e8] sm:$0xff]  ;;  %v1158_v23 = vpop.f32.mrf.mxu2 }
 0x479   :  { %1843 = vmatpush.msrb.mxu1 %v1562_v24  ;;  %1869 = vmatpush.msrb.mxu2 %v1578_v58  ;;  %v1133_v24 = vadd.f32 %v1132_v19, %v3670_v38  ;;  %v1616_v58 = vld [vmem:[%s4398_s9 + $0x2e0] sm:$0xff]  ;;  %v1606_v19 = vld [vmem:[%s4398_s9 + $0x290] sm:$0xff] }
 0x47a   :  { %1792 = vmatpush.msra.mxu3 %v1529_v39  ;;  %1818 = vmatpush.msrb.mxu0 %v1545_v9  ;;  %v1632_v39 = vld [vmem:[%s4398_s9 + $0x360] sm:$0xff]  ;;  %v1081_v9 = vadd.f32 %v1080_v21, %v3667_v22  ;;  %v1639_v21 = vld [vmem:[%s4398_s9 + $0x398] sm:$0xff] }
 0x47b   :  { %1844 = vmatpush.msrb.mxu1 %v1561_v60  ;;  %1870 = vmatpush.msrb.mxu2 %v1577_v3  ;;  %v1600_v60 = vld [vmem:[%s4398_s9 + $0x260] sm:$0xff] }
 0x47c   :  { %1793 = vmatpush.msra.mxu3 %v1528_v4  ;;  %1819 = vmatpush.msrb.mxu0 %v1544_v62  ;;  %v1648_v3 = vld [vmem:[%s4398_s9 + $0x3e0] sm:$0xff]  ;;  %v1615_v4 = vld [vmem:[%s4398_s9 + $0x2d8] sm:$0xff] }
 0x47d   :  { %1845 = vmatpush.msrb.mxu1 %v1560_v59  ;;  %1871 = vmatpush.msrb.mxu2 %v1576_v32  ;;  %v1631_v62 = vld [vmem:[%s4398_s9 + $0x358] sm:$0xff]  ;;  %v1159_v59 = vadd.f32 %v1158_v23, %v3673_v14  ;;  %v1493_v32 = vmax.f32 %v1107_v49, 0.0  ;;  %v1620_v49 = vld [vmem:[%s4398_s9 + $0x300] sm:$0xff] }
 0x47e   :  { %2403 = vmatmul.msk.f32.gmra.mxu3 %vm4481_vm11, %v3356_v45  ;;  %2406 = vmatmul.msk.f32.gmra.mxu0 %vm4482_vm7, %v3356_v45  ;;  %v1699_v23 = vld [vmem:[%s4398_s9 + $0x578] sm:$0xff] }
 0x47f   :  { %2409 = vmatmul.msk.f32.gmra.mxu1 %vm4483_vm12, %v3356_v45  ;;  %2412 = vmatmul.msk.f32.gmra.mxu2 %vm4484_vm2, %v3356_v45 }
 0x480   :  { %1794 = vmatpush.msra.mxu3 %v1527_v7  ;;  %1820 = vmatpush.msrb.mxu0 %v1543_v25  ;;  %v1599_v7 = vld [vmem:[%s4398_s9 + $0x258] sm:$0xff] }
 0x481   :  { %1846 = vmatpush.msrb.mxu1 %v1559_v11  ;;  %1872 = vmatpush.msrb.mxu2 %v1575_v29  ;;  %v1647_v25 = vld [vmem:[%s4398_s9 + $0x3d8] sm:$0xff]  ;;  %v1494_v11 = vmax.f32 %v1133_v24, 0.0  ;;  %v1630_v29 = vld [vmem:[%s4398_s9 + $0x350] sm:$0xff] }
 0x482   :  { %1795 = vmatpush.msra.mxu3 %v1526_v10  ;;  %1821 = vmatpush.msrb.mxu0 %v1542_v0  ;;  %v1614_v10 = vld [vmem:[%s4398_s9 + $0x2d0] sm:$0xff]  ;;  %v1492_v0 = vmax.f32 %v1081_v9, 0.0  ;;  %v1683_v24 = vld [vmem:[%s4398_s9 + $0x4f8] sm:$0xff]  ;;  %v1589_v9 = vld [vmem:[%s4398_s9 + $0x208] sm:$0xff] }
 0x483   :  { %1847 = vmatpush.msrb.mxu1 %v1558_v46  ;;  %1873 = vmatpush.msrb.mxu2 %v1574_v36  ;;  %v1495_v46 = vmax.f32 %v1159_v59, 0.0  ;;  %v1629_v36 = vld [vmem:[%s4398_s9 + $0x348] sm:$0xff] }
 0x484   :  { %1796 = vmatpush.msra.mxu3 %v1525_v33  ;;  %1822 = vmatpush.msrb.mxu0 %v1541_v2  ;;  %v1613_v33 = vld [vmem:[%s4398_s9 + $0x2c8] sm:$0xff]  ;;  %v1628_v2 = vld [vmem:[%s4398_s9 + $0x340] sm:$0xff] }
 0x485   :  { %1848 = vmatpush.msrb.mxu1 %v1557_v5  ;;  %1874 = vmatpush.msrb.mxu2 %v1573_v27  ;;  %v1598_v5 = vld [vmem:[%s4398_s9 + $0x250] sm:$0xff]  ;;  %v1612_v27 = vld [vmem:[%s4398_s9 + $0x2c0] sm:$0xff]  ;;  %v1681_v59 = vld [vmem:[%s4398_s9 + $0x4e8] sm:$0xff] }
 0x486   :  { %2404 = vmatmul.msk.f32.gmra.mxu3 %vm4485_vm14, %v3392_v44  ;;  %2407 = vmatmul.msk.f32.gmra.mxu0 %vm4486_vm6, %v3392_v44 }
 0x487   :  { %2410 = vmatmul.msk.f32.gmra.mxu1 %vm4487_vm1, %v3392_v44  ;;  %2413 = vmatmul.msk.f32.gmra.mxu2 %vm4488_vm9, %v3392_v44 }
 0x488   :  { %1797 = vmatpush.msra.mxu3 %v1524_v31  ;;  %1823 = vmatpush.msrb.mxu0 %v1540_v30  ;;  %v1611_v31 = vld [vmem:[%s4398_s9 + $0x2b8] sm:$0xff]  ;;  %v1645_v30 = vld [vmem:[%s4398_s9 + $0x3c8] sm:$0xff] }
 0x489   :  { %1849 = vmatpush.msrb.mxu1 %v1556_v6  ;;  %1875 = vmatpush.msrb.mxu2 %v1572_v12  ;;  %v1596_v6 = vld [vmem:[%s4398_s9 + $0x240] sm:$0xff]  ;;  %v1610_v12 = vld [vmem:[%s4398_s9 + $0x2b0] sm:$0xff] }
 0x48a   :  { %1912 = vmatpush.msra.mxu0 %v1619_v43  ;;  %1886 = vmatpush.msrb.mxu3 %v1603_v8  ;;  %v1644_v43 = vld [vmem:[%s4398_s9 + $0x3c0] sm:$0xff]  ;;  %v1643_v8 = vld [vmem:[%s4398_s9 + $0x3b8] sm:$0xff] }
 0x48b   :  { %1938 = vmatpush.msra.mxu1 %v1635_v48  ;;  %1964 = vmatpush.msra.mxu2 %v1651_v50  ;;  %v1625_v48 = vld [vmem:[%s4398_s9 + $0x328] sm:$0xff]  ;;  %v1624_v50 = vld [vmem:[%s4398_s9 + $0x320] sm:$0xff] }
 0x48c   :  { %1913 = vmatpush.msra.mxu0 %v1618_v61  ;;  %1887 = vmatpush.msrb.mxu3 %v1602_v16  ;;  %v1642_v61 = vld [vmem:[%s4398_s9 + $0x3b0] sm:$0xff]  ;;  %v1593_v16 = vld [vmem:[%s4398_s9 + $0x228] sm:$0xff] }
 0x48d   :  { %1939 = vmatpush.msra.mxu1 %v1634_v34  ;;  %1965 = vmatpush.msra.mxu2 %v1650_v56  ;;  %v1623_v34 = vld [vmem:[%s4398_s9 + $0x318] sm:$0xff] }
 0x48e   :  { %1798 = vmatmul.f32.vlgmr.msra.gmra.mxu3 %v1476_v55  ;;  %1824 = vmatmul.f32.vlgmr.msrb.gmra.mxu0 %v1477_v35  ;;  %v1607_v56 = vld [vmem:[%s4398_s9 + $0x298] sm:$0xff]  ;;  %v1622_v35 = vld [vmem:[%s4398_s9 + $0x310] sm:$0xff]  ;;  %v1592_v55 = vld [vmem:[%s4398_s9 + $0x220] sm:$0xff] }
 0x48f   :  { %1850 = vmatmul.f32.vlgmr.msrb.gmra.mxu1 %v1478_v63  ;;  %1876 = vmatmul.f32.vlgmr.msrb.gmra.mxu2 %v1479_v28  ;;  %v1640_v63 = vld [vmem:[%s4398_s9 + $0x3a0] sm:$0xff]  ;;  %v1621_v28 = vld [vmem:[%s4398_s9 + $0x308] sm:$0xff] }
 0x490   :  { %1914 = vmatpush.msra.mxu0 %v1617_v20  ;;  %1940 = vmatpush.msra.mxu1 %v1633_v15  ;;  %v1591_v20 = vld [vmem:[%s4398_s9 + $0x218] sm:$0xff]  ;;  %v1605_v15 = vld [vmem:[%s4398_s9 + $0x288] sm:$0xff] }
 0x491   :  { %1888 = vmatpush.msrb.mxu3 %v1601_v51  ;;  %1966 = vmatpush.msra.mxu2 %v1649_v26  ;;  %v1590_v51 = vld [vmem:[%s4398_s9 + $0x210] sm:$0xff]  ;;  %v1604_v26 = vld [vmem:[%s4398_s9 + $0x280] sm:$0xff] }
 0x492   :  { %1915 = vmatpush.msra.mxu0 %v1616_v58  ;;  %1941 = vmatpush.msra.mxu1 %v1632_v39  ;;  %v1638_v58 = vld [vmem:[%s4398_s9 + $0x390] sm:$0xff] }
 0x493   :  { %1889 = vmatpush.msrb.mxu3 %v1600_v60  ;;  %1967 = vmatpush.msra.mxu2 %v1648_v3  ;;  %v1698_v39 = vld [vmem:[%s4398_s9 + $0x570] sm:$0xff]  ;;  %v1637_v3 = vld [vmem:[%s4398_s9 + $0x388] sm:$0xff] }
 0x494   :  { %1916 = vmatpush.msra.mxu0 %v1615_v4  ;;  %1942 = vmatpush.msra.mxu1 %v1631_v62  ;;  %v1682_v60 = vld [vmem:[%s4398_s9 + $0x4f0] sm:$0xff]  ;;  %v1697_v4 = vld [vmem:[%s4398_s9 + $0x568] sm:$0xff]  ;;  %v1588_v62 = vld [vmem:[%s4398_s9 + $0x200] sm:$0xff] }
 0x495   :  { %1890 = vmatpush.msrb.mxu3 %v1599_v7  ;;  %1968 = vmatpush.msra.mxu2 %v1647_v25  ;;  %v1667_v7 = vld [vmem:[%s4398_s9 + $0x478] sm:$0xff]  ;;  %v1696_v25 = vld [vmem:[%s4398_s9 + $0x560] sm:$0xff] }
 0x496   :  { %1827 = vmatmul.f32.gmra.mxu0 %v1493_v32  ;;  %1943 = vmatpush.msra.mxu1 %v1630_v29  ;;  %v1636_v32 = vld [vmem:[%s4398_s9 + $0x380] sm:$0xff]  ;;  %v1715_v29 = vld [vmem:[%s4398_s9 + $0x5f8] sm:$0xff] }
 0x497   :  { %1853 = vmatmul.f32.gmra.mxu1 %v1494_v11  ;;  %1917 = vmatpush.msra.mxu0 %v1614_v10  ;;  %v1680_v11 = vld [vmem:[%s4398_s9 + $0x4e0] sm:$0xff]  ;;  %v1666_v10 = vld [vmem:[%s4398_s9 + $0x470] sm:$0xff] }
 0x498   :  { %1944 = vmatpush.msra.mxu1 %v1629_v36  ;;  %1801 = vmatmul.f32.gmra.mxu3 %v1492_v0  ;;  %v1695_v0 = vld [vmem:[%s4398_s9 + $0x558] sm:$0xff]  ;;  %v1714_v36 = vld [vmem:[%s4398_s9 + $0x5f0] sm:$0xff] }
 0x499   :  { %1918 = vmatpush.msra.mxu0 %v1613_v33  ;;  %1879 = vmatmul.f32.gmra.mxu2 %v1495_v46  ;;  %v1679_v46 = vld [vmem:[%s4398_s9 + $0x4d8] sm:$0xff]  ;;  %v1665_v33 = vld [vmem:[%s4398_s9 + $0x468] sm:$0xff] }
 0x49a   :  { %1945 = vmatpush.msra.mxu1 %v1628_v2  ;;  %1891 = vmatpush.msrb.mxu3 %v1598_v5  ;;  %v1694_v2 = vld [vmem:[%s4398_s9 + $0x550] sm:$0xff] }
 0x49b   :  { %1919 = vmatpush.msra.mxu0 %v1612_v27  ;;  %1969 = vmatpush.msra.mxu2 %v1646_v13  ;;  %v1678_v5 = vld [vmem:[%s4398_s9 + $0x4d0] sm:$0xff]  ;;  %v1713_v27 = vld [vmem:[%s4398_s9 + $0x5e8] sm:$0xff]  ;;  %v1664_v13 = vld [vmem:[%s4398_s9 + $0x460] sm:$0xff] }
 0x49c   :  { %1946 = vmatpush.msra.mxu1 %v1627_v53  ;;  %1892 = vmatpush.msrb.mxu3 %v1597_v18  ;;  %v1693_v53 = vld [vmem:[%s4398_s9 + $0x548] sm:$0xff] }
 0x49d   :  { %1920 = vmatpush.msra.mxu0 %v1611_v31  ;;  %1970 = vmatpush.msra.mxu2 %v1645_v30  ;;  %v1677_v18 = vld [vmem:[%s4398_s9 + $0x4c8] sm:$0xff]  ;;  %v1712_v31 = vld [vmem:[%s4398_s9 + $0x5e0] sm:$0xff]  ;;  %v1663_v30 = vld [vmem:[%s4398_s9 + $0x458] sm:$0xff] }
 0x49e   :  { %1947 = vmatpush.msra.mxu1 %v1626_v17  ;;  %1893 = vmatpush.msrb.mxu3 %v1596_v6  ;;  %v1692_v17 = vld [vmem:[%s4398_s9 + $0x540] sm:$0xff] }
 0x49f   :  { %1921 = vmatpush.msra.mxu0 %v1610_v12  ;;  %1971 = vmatpush.msra.mxu2 %v1644_v43  ;;  %v1676_v6 = vld [vmem:[%s4398_s9 + $0x4c0] sm:$0xff]  ;;  %v1711_v12 = vld [vmem:[%s4398_s9 + $0x5d8] sm:$0xff]  ;;  %v1662_v43 = vld [vmem:[%s4398_s9 + $0x450] sm:$0xff] }
 0x4a0   :  { %1948 = vmatpush.msra.mxu1 %v1625_v48  ;;  %1894 = vmatpush.msrb.mxu3 %v1595_v52  ;;  %v1691_v48 = vld [vmem:[%s4398_s9 + $0x538] sm:$0xff] }
 0x4a1   :  { %1922 = vmatpush.msra.mxu0 %v1609_v57  ;;  %1972 = vmatpush.msra.mxu2 %v1643_v8  ;;  %v1675_v52 = vld [vmem:[%s4398_s9 + $0x4b8] sm:$0xff]  ;;  %v1710_v57 = vld [vmem:[%s4398_s9 + $0x5d0] sm:$0xff]  ;;  %v1661_v8 = vld [vmem:[%s4398_s9 + $0x448] sm:$0xff] }
 0x4a2   :  { %1949 = vmatpush.msra.mxu1 %v1624_v50  ;;  %1895 = vmatpush.msrb.mxu3 %v1594_v41  ;;  %v1690_v50 = vld [vmem:[%s4398_s9 + $0x530] sm:$0xff] }
 0x4a3   :  { %1923 = vmatpush.msra.mxu0 %v1608_v37  ;;  %1973 = vmatpush.msra.mxu2 %v1642_v61  ;;  %v1674_v37 = vld [vmem:[%s4398_s9 + $0x4b0] sm:$0xff]  ;;  %v1709_v61 = vld [vmem:[%s4398_s9 + $0x5c8] sm:$0xff] }
 0x4a4   :  { %1950 = vmatpush.msra.mxu1 %v1623_v34  ;;  %1896 = vmatpush.msrb.mxu3 %v1593_v16 }
 0x4a5   :  { %1924 = vmatpush.msra.mxu0 %v1607_v56  ;;  %1974 = vmatpush.msra.mxu2 %v1641_v1  ;;  %v1660_v56 = vld [vmem:[%s4398_s9 + $0x440] sm:$0xff]  ;;  %v1689_v1 = vld [vmem:[%s4398_s9 + $0x528] sm:$0xff] }
 0x4a6   :  { %1951 = vmatpush.msra.mxu1 %v1622_v35  ;;  %1897 = vmatpush.msrb.mxu3 %v1592_v55  ;;  %v1708_v55 = vld [vmem:[%s4398_s9 + $0x5c0] sm:$0xff] }
 0x4a7   :  { %1925 = vmatpush.msra.mxu0 %v1606_v19  ;;  %1975 = vmatpush.msra.mxu2 %v1640_v63  ;;  %v1673_v19 = vld [vmem:[%s4398_s9 + $0x4a8] sm:$0xff] }
 0x4a8   :  { %1952 = vmatpush.msra.mxu1 %v1621_v28  ;;  %1898 = vmatpush.msrb.mxu3 %v1591_v20  ;;  %v1688_v28 = vld [vmem:[%s4398_s9 + $0x520] sm:$0xff]  ;;  %v4018_v20 = vperm.slane %v3649_v47, 5 }
 0x4a9   :  { %1926 = vmatpush.msra.mxu0 %v1605_v15  ;;  %1976 = vmatpush.msra.mxu2 %v1639_v21  ;;  %v1672_v15 = vld [vmem:[%s4398_s9 + $0x4a0] sm:$0xff]  ;;  %v1707_v21 = vld [vmem:[%s4398_s9 + $0x5b8] sm:$0xff] }
 0x4aa   :  { %1953 = vmatpush.msra.mxu1 %v1620_v49  ;;  %1899 = vmatpush.msrb.mxu3 %v1590_v51  ;;  %v4027_v51 = vperm.slane %v3649_v47, 6 }
 0x4ab   :  { %1927 = vmatpush.msra.mxu0 %v1604_v26  ;;  %1977 = vmatpush.msra.mxu2 %v1638_v58  ;;  %v1658_v26 = vld [vmem:[%s4398_s9 + $0x430] sm:$0xff] }
 0x4ac   :  { %2042 = vmatpush.msrb.mxu1 %v1699_v23  ;;  %1900 = vmatpush.msrb.mxu3 %v1589_v9  ;;  %v1687_v23 = vld [vmem:[%s4398_s9 + $0x518] sm:$0xff]  ;;  %v1706_v9 = vld [vmem:[%s4398_s9 + $0x5b0] sm:$0xff] }
 0x4ad   :  { %2016 = vmatpush.msrb.mxu0 %v1683_v24  ;;  %1978 = vmatpush.msra.mxu2 %v1637_v3 }
 0x4ae   :  { %2043 = vmatpush.msrb.mxu1 %v1698_v39  ;;  %1901 = vmatpush.msrb.mxu3 %v1588_v62  ;;  %v1671_v39 = vld [vmem:[%s4398_s9 + $0x498] sm:$0xff] }
 0x4af   :  { %2017 = vmatpush.msrb.mxu0 %v1682_v60  ;;  %1979 = vmatpush.msra.mxu2 %v1636_v32  ;;  %v1657_v32 = vld [vmem:[%s4398_s9 + $0x428] sm:$0xff] }
 0x4b0   :  { %2044 = vmatpush.msrb.mxu1 %v1697_v4  ;;  %1990 = vmatpush.msra.mxu3 %v1667_v7 }
 0x4b1   :  { %2018 = vmatpush.msrb.mxu0 %v1681_v59  ;;  %2068 = vmatpush.msrb.mxu2 %v1715_v29  ;;  %v4055_v29 = vperm.slane %v3649_v47, 4 }
 0x4b2   :  { %2045 = vmatpush.msrb.mxu1 %v1696_v25  ;;  %1991 = vmatpush.msra.mxu3 %v1666_v10  ;;  %v1705_v25 = vld [vmem:[%s4398_s9 + $0x5a8] sm:$0xff]  ;;  %v1670_v10 = vld [vmem:[%s4398_s9 + $0x490] sm:$0xff] }
 0x4b3   :  { %2019 = vmatpush.msrb.mxu0 %v1680_v11  ;;  %2069 = vmatpush.msrb.mxu2 %v1714_v36  ;;  %v1656_v36 = vld [vmem:[%s4398_s9 + $0x420] sm:$0xff] }
 0x4b4   :  { %2046 = vmatpush.msrb.mxu1 %v1695_v0  ;;  %1992 = vmatpush.msra.mxu3 %v1665_v33  ;;  %v1685_v33 = vld [vmem:[%s4398_s9 + $0x508] sm:$0xff] }
 0x4b5   :  { %2020 = vmatpush.msrb.mxu0 %v1679_v46  ;;  %2070 = vmatpush.msrb.mxu2 %v1713_v27  ;;  %v4061_v46 = vperm.slane %v3649_v47, 7  ;;  %v1704_v47 = vld [vmem:[%s4398_s9 + $0x5a0] sm:$0xff]  ;;  %v1655_v27 = vld [vmem:[%s4398_s9 + $0x418] sm:$0xff] }
 0x4b6   :  { %2047 = vmatpush.msrb.mxu1 %v1694_v2  ;;  %1993 = vmatpush.msra.mxu3 %v1664_v13  ;;  %v1669_v2 = vld [vmem:[%s4398_s9 + $0x488] sm:$0xff]  ;;  %v1684_v13 = vld [vmem:[%s4398_s9 + $0x500] sm:$0xff] }
 0x4b7   :  { %2021 = vmatpush.msrb.mxu0 %v1678_v5  ;;  %2071 = vmatpush.msrb.mxu2 %v1712_v31  ;;  %v1668_v31 = vld [vmem:[%s4398_s9 + $0x480] sm:$0xff] }
 0x4b8   :  { %2048 = vmatpush.msrb.mxu1 %v1693_v53  ;;  %1994 = vmatpush.msra.mxu3 %v1663_v30  ;;  %v1703_v30 = vld [vmem:[%s4398_s9 + $0x598] sm:$0xff] }
 0x4b9   :  { %2022 = vmatpush.msrb.mxu0 %v1677_v18  ;;  %2072 = vmatpush.msrb.mxu2 %v1711_v12  ;;  %v1747_v12 = vld [vmem:[%s4398_s9 + $0x6f8] sm:$0xff] }
 0x4ba   :  { %2049 = vmatpush.msrb.mxu1 %v1692_v17  ;;  %1995 = vmatpush.msra.mxu3 %v1662_v43 }
 0x4bb   :  { %2023 = vmatpush.msrb.mxu0 %v1676_v6  ;;  %v1109_v41 = vpop.f32.mrf.mxu0  ;;  %2073 = vmatpush.msrb.mxu2 %v1710_v57  ;;  %v1763_v57 = vld [vmem:[%s4398_s9 + $0x778] sm:$0xff] }
 0x4bc   :  { %2050 = vmatpush.msrb.mxu1 %v1691_v48  ;;  %v1110_v34 = vadd.f32 %v1109_v41, %v3664_v54  ;;  %v1135_v16 = vpop.f32.mrf.mxu1  ;;  %1996 = vmatpush.msra.mxu3 %v1661_v8  ;;  %v1654_v41 = vld [vmem:[%s4398_s9 + $0x410] sm:$0xff] }
 0x4bd   :  { %2024 = vmatpush.msrb.mxu0 %v1675_v52  ;;  %v1136_v35 = vadd.f32 %v1135_v16, %v3670_v38  ;;  %2074 = vmatpush.msrb.mxu2 %v1709_v61  ;;  %v1659_v38 = vld [vmem:[%s4398_s9 + $0x438] sm:$0xff]  ;;  %v1702_v61 = vld [vmem:[%s4398_s9 + $0x590] sm:$0xff] }
 0x4be   :  { %2051 = vmatpush.msrb.mxu1 %v1690_v50  ;;  %v1509_v54 = vmax.f32 %v1110_v34, 0.0  ;;  %1997 = vmatpush.msra.mxu3 %v1660_v56  ;;  %v1746_v16 = vld [vmem:[%s4398_s9 + $0x6f0] sm:$0xff] }
 0x4bf   :  { %2025 = vmatpush.msrb.mxu0 %v1674_v37  ;;  %v1510_v63 = vmax.f32 %v1136_v35, 0.0  ;;  %2075 = vmatpush.msrb.mxu2 %v1708_v55  ;;  %v1762_v56 = vld [vmem:[%s4398_s9 + $0x770] sm:$0xff]  ;;  %v1701_v35 = vld [vmem:[%s4398_s9 + $0x588] sm:$0xff] }
 0x4c0   :  { %2052 = vmatpush.msrb.mxu1 %v1689_v1  ;;  %1830 = vmatmul.f32.gmra.mxu0 %v1509_v54  ;;  %v1653_v1 = vld [vmem:[%s4398_s9 + $0x408] sm:$0xff] }
 0x4c1   :  { %1856 = vmatmul.f32.gmra.mxu1 %v1510_v63  ;;  %v1083_v49 = vpop.f32.mrf.mxu3  ;;  %2026 = vmatpush.msrb.mxu0 %v1673_v19  ;;  %v1745_v54 = vld [vmem:[%s4398_s9 + $0x6e8] sm:$0xff] }
 0x4c2   :  { %v1084_v24 = vadd.f32 %v1083_v49, %v3667_v22  ;;  %v1161_v58 = vpop.f32.mrf.mxu2  ;;  %1998 = vmatpush.msra.mxu3 %v1659_v38  ;;  %2053 = vmatpush.msrb.mxu1 %v1688_v28  ;;  %v1686_v22 = vld [vmem:[%s4398_s9 + $0x510] sm:$0xff]  ;;  %v1761_v19 = vld [vmem:[%s4398_s9 + $0x768] sm:$0xff]  ;;  %v1652_v28 = vld [vmem:[%s4398_s9 + $0x400] sm:$0xff] }
 0x4c3   :  { %v1162_v60 = vadd.f32 %v1161_v58, %v3673_v14  ;;  %v1207_v3 = vpop.f32.mrf.mxu0  ;;  %2027 = vmatpush.msrb.mxu0 %v1672_v15  ;;  %2076 = vmatpush.msrb.mxu2 %v1707_v21  ;;  %v1700_v15 = vld [vmem:[%s4398_s9 + $0x580] sm:$0xff] }
 0x4c4   :  { %v1508_v4 = vmax.f32 %v1084_v24, 0.0  ;;  %v1208_v62 = vadd.f32 %v1207_v3, %v4018_v20  ;;  %v1233_v59 = vpop.f32.mrf.mxu1  ;;  %1999 = vmatpush.msra.mxu3 %v1658_v26  ;;  %2054 = vmatpush.msrb.mxu1 %v1687_v23  ;;  %v1744_v26 = vld [vmem:[%s4398_s9 + $0x6e0] sm:$0xff]  ;;  %v4140_v3 = vld [vmem:[%s4397_s8 + $0x8] sm:$0xff] }
 0x4c5   :  { %v1511_v7 = vmax.f32 %v1162_v60, 0.0  ;;  %v1234_v14 = vadd.f32 %v1233_v59, %v4027_v51  ;;  %2028 = vmatpush.msrb.mxu0 %v1671_v39  ;;  %2077 = vmatpush.msrb.mxu2 %v1706_v9  ;;  %v1731_v39 = vld [vmem:[%s4398_s9 + $0x678] sm:$0xff] }
 0x4c6   :  { %v1481_v11 = vmax.f32 %v1208_v62, 0.0  ;;  %1804 = vmatmul.f32.gmra.mxu3 %v1508_v4  ;;  %2055 = vmatpush.msrb.mxu1 %v1686_v22  ;;  %v1779_v4 = vld [vmem:[%s4398_s9 + $0x7f8] sm:$0xff] }
 0x4c7   :  { %v1482_v0 = vmax.f32 %v1234_v14, 0.0  ;;  %1882 = vmatmul.f32.gmra.mxu2 %v1511_v7  ;;  %2000 = vmatpush.msra.mxu3 %v1657_v32  ;;  %v1743_v59 = vld [vmem:[%s4398_s9 + $0x6d8] sm:$0xff]  ;;  %v4155_v32 = vperm.slane %v4140_v3, 1  ;;  %v1778_v14 = vld [vmem:[%s4398_s9 + $0x7f0] sm:$0xff] }
 0x4c8   :  { %1928 = vmatmul.f32.vlgmr.msra.gmra.mxu0 %v1481_v11  ;;  %2078 = vmatpush.msrb.mxu2 %v1705_v25  ;;  %v1759_v7 = vld [vmem:[%s4398_s9 + $0x758] sm:$0xff]  ;;  %v4164_v11 = vperm.slane %v4140_v3, 2 }
 0x4c9   :  { %1954 = vmatmul.f32.vlgmr.msra.gmra.mxu1 %v1482_v0  ;;  %v1181_v5 = vpop.f32.mrf.mxu3  ;;  %2029 = vmatpush.msrb.mxu0 %v1670_v10  ;;  %v1729_v10 = vld [vmem:[%s4398_s9 + $0x668] sm:$0xff]  ;;  %v1742_v0 = vld [vmem:[%s4398_s9 + $0x6d0] sm:$0xff] }
 0x4ca   :  { %v1182_v53 = vadd.f32 %v1181_v5, %v4055_v29  ;;  %v1259_v18 = vpop.f32.mrf.mxu2  ;;  %2001 = vmatpush.msra.mxu3 %v1656_v36  ;;  %2056 = vmatpush.msrb.mxu1 %v1685_v33 }
 0x4cb   :  { %v1260_v17 = vadd.f32 %v1259_v18, %v4061_v46  ;;  %v1210_v6 = vpop.f32.mrf.mxu0  ;;  %2030 = vmatpush.msrb.mxu0 %v1669_v2  ;;  %2079 = vmatpush.msrb.mxu2 %v1704_v47  ;;  %v1758_v2 = vld [vmem:[%s4398_s9 + $0x750] sm:$0xff]  ;;  %v1777_v47 = vld [vmem:[%s4398_s9 + $0x7e8] sm:$0xff] }
 0x4cc   :  { %v1480_v43 = vmax.f32 %v1182_v53, 0.0  ;;  %v1211_v48 = vadd.f32 %v1210_v6, %v4018_v20  ;;  %v1236_v52 = vpop.f32.mrf.mxu1  ;;  %2002 = vmatpush.msra.mxu3 %v1655_v27  ;;  %2057 = vmatpush.msrb.mxu1 %v1684_v13 }
 0x4cd   :  { %v1483_v8 = vmax.f32 %v1260_v17, 0.0  ;;  %v1237_v50 = vadd.f32 %v1236_v52, %v4027_v51  ;;  %2031 = vmatpush.msrb.mxu0 %v1668_v31  ;;  %2080 = vmatpush.msrb.mxu2 %v1703_v30  ;;  %v1728_v31 = vld [vmem:[%s4398_s9 + $0x660] sm:$0xff]  ;;  %v1757_v17 = vld [vmem:[%s4398_s9 + $0x748] sm:$0xff]  ;;  %v4198_v52 = vperm.slane %v4140_v3, 3 }
 0x4ce   :  { %v1497_v37 = vmax.f32 %v1211_v48, 0.0  ;;  %1902 = vmatmul.f32.vlgmr.msrb.gmra.mxu3 %v1480_v43  ;;  %2146 = vmatpush.msra.mxu1 %v1763_v57  ;;  %v1776_v43 = vld [vmem:[%s4398_s9 + $0x7e0] sm:$0xff]  ;;  %v1727_v57 = vld [vmem:[%s4398_s9 + $0x658] sm:$0xff] }
 0x4cf   :  { %2120 = vmatpush.msra.mxu0 %v1747_v12  ;;  %v1498_v34 = vmax.f32 %v1237_v50, 0.0  ;;  %1980 = vmatmul.f32.vlgmr.msra.gmra.mxu2 %v1483_v8  ;;  %v4192_v12 = vperm.slane %v4140_v3, 0  ;;  %v1740_v8 = vld [vmem:[%s4398_s9 + $0x6c0] sm:$0xff] }
 0x4d0   :  { %1931 = vmatmul.f32.gmra.mxu0 %v1497_v37  ;;  %2003 = vmatpush.msra.mxu3 %v1654_v41  ;;  %v1756_v50 = vld [vmem:[%s4398_s9 + $0x740] sm:$0xff]  ;;  %v1775_v41 = vld [vmem:[%s4398_s9 + $0x7d8] sm:$0xff] }
 0x4d1   :  { %1957 = vmatmul.f32.gmra.mxu1 %v1498_v34  ;;  %v1184_v55 = vpop.f32.mrf.mxu3  ;;  %2081 = vmatpush.msrb.mxu2 %v1702_v61  ;;  %v1726_v61 = vld [vmem:[%s4398_s9 + $0x650] sm:$0xff]  ;;  %v1739_v34 = vld [vmem:[%s4398_s9 + $0x6b8] sm:$0xff] }
 0x4d2   :  { %v1185_v63 = vadd.f32 %v1184_v55, %v4055_v29  ;;  %v1262_v38 = vpop.f32.mrf.mxu2  ;;  %2121 = vmatpush.msra.mxu0 %v1746_v16  ;;  %2147 = vmatpush.msra.mxu1 %v1762_v56 }
 0x4d3   :  { %v1263_v21 = vadd.f32 %v1262_v38, %v4061_v46  ;;  %v1213_v49 = vpop.f32.mrf.mxu0  ;;  %2004 = vmatpush.msra.mxu3 %v1653_v1  ;;  %2082 = vmatpush.msrb.mxu2 %v1701_v35  ;;  %v1755_v1 = vld [vmem:[%s4398_s9 + $0x738] sm:$0xff]  ;;  %v1774_v35 = vld [vmem:[%s4398_s9 + $0x7d0] sm:$0xff] }
 0x4d4   :  { %v1496_v23 = vmax.f32 %v1185_v63, 0.0  ;;  %v1214_v24 = vadd.f32 %v1213_v49, %v4018_v20  ;;  %v1239_v58 = vpop.f32.mrf.mxu1  ;;  %2122 = vmatpush.msra.mxu0 %v1745_v54  ;;  %2148 = vmatpush.msra.mxu1 %v1761_v19  ;;  %v1760_v20 = vld [vmem:[%s4398_s9 + $0x760] sm:$0xff]  ;;  %v1738_v19 = vld [vmem:[%s4398_s9 + $0x6b0] sm:$0xff] }
 0x4d5   :  { %v1499_v9 = vmax.f32 %v1263_v21, 0.0  ;;  %v1240_v60 = vadd.f32 %v1239_v58, %v4027_v51  ;;  %2005 = vmatpush.msra.mxu3 %v1652_v28  ;;  %2083 = vmatpush.msrb.mxu2 %v1700_v15  ;;  %v1730_v51 = vld [vmem:[%s4398_s9 + $0x670] sm:$0xff]  ;;  %v1725_v15 = vld [vmem:[%s4398_s9 + $0x648] sm:$0xff] }
 0x4d6   :  { %v1513_v22 = vmax.f32 %v1214_v24, 0.0  ;;  %1905 = vmatmul.f32.gmra.mxu3 %v1496_v23  ;;  %2123 = vmatpush.msra.mxu0 %v1744_v26  ;;  %v1754_v26 = vld [vmem:[%s4398_s9 + $0x730] sm:$0xff]  ;;  %v1773_v24 = vld [vmem:[%s4398_s9 + $0x7c8] sm:$0xff] }
 0x4d7   :  { %v1514_v62 = vmax.f32 %v1240_v60, 0.0  ;;  %1983 = vmatmul.f32.gmra.mxu2 %v1499_v9  ;;  %2094 = vmatpush.msrb.mxu3 %v1731_v39  ;;  %v1724_v39 = vld [vmem:[%s4398_s9 + $0x640] sm:$0xff]  ;;  %v1737_v9 = vld [vmem:[%s4398_s9 + $0x6a8] sm:$0xff] }
 0x4d8   :  { %1934 = vmatmul.f32.gmra.mxu0 %v1513_v22  ;;  %2149 = vmatpush.msra.mxu1 %v1760_v20  ;;  %v1753_v60 = vld [vmem:[%s4398_s9 + $0x728] sm:$0xff]  ;;  %v1772_v20 = vld [vmem:[%s4398_s9 + $0x7c0] sm:$0xff] }
 0x4d9   :  { %1960 = vmatmul.f32.gmra.mxu1 %v1514_v62  ;;  %v1187_v25 = vpop.f32.mrf.mxu3  ;;  %2172 = vmatpush.msra.mxu2 %v1779_v4  ;;  %v1723_v4 = vld [vmem:[%s4398_s9 + $0x638] sm:$0xff]  ;;  %v1736_v62 = vld [vmem:[%s4398_s9 + $0x6a0] sm:$0xff] }
 0x4da   :  { %v1188_v36 = vadd.f32 %v1187_v25, %v4055_v29  ;;  %v1265_v33 = vpop.f32.mrf.mxu2  ;;  %2095 = vmatpush.msrb.mxu3 %v1730_v51  ;;  %2124 = vmatpush.msra.mxu0 %v1743_v59  ;;  %v1741_v29 = vld [vmem:[%s4398_s9 + $0x6c8] sm:$0xff] }
 0x4db   :  { %v1266_v5 = vadd.f32 %v1265_v33, %v4061_v46  ;;  %v1311_v27 = vpop.f32.mrf.mxu0  ;;  %2150 = vmatpush.msra.mxu1 %v1759_v7  ;;  %2173 = vmatpush.msra.mxu2 %v1778_v14  ;;  %v1752_v7 = vld [vmem:[%s4398_s9 + $0x720] sm:$0xff]  ;;  %v1771_v14 = vld [vmem:[%s4398_s9 + $0x7b8] sm:$0xff] }
 0x4dc   :  { %v1512_v13 = vmax.f32 %v1188_v36, 0.0  ;;  %v1312_v53 = vadd.f32 %v1311_v27, %v4155_v32  ;;  %v1337_v18 = vpop.f32.mrf.mxu1  ;;  %2096 = vmatpush.msrb.mxu3 %v1729_v10  ;;  %2125 = vmatpush.msra.mxu0 %v1742_v0  ;;  %v1735_v0 = vld [vmem:[%s4398_s9 + $0x698] sm:$0xff] }
 0x4dd   :  { %v1515_v30 = vmax.f32 %v1266_v5, 0.0  ;;  %v1338_v46 = vadd.f32 %v1337_v18, %v4164_v11  ;;  %2151 = vmatpush.msra.mxu1 %v1758_v2  ;;  %2174 = vmatpush.msra.mxu2 %v1777_v47  ;;  %v1722_v47 = vld [vmem:[%s4398_s9 + $0x630] sm:$0xff] }
 0x4de   :  { %v1485_v6 = vmax.f32 %v1312_v53, 0.0  ;;  %1908 = vmatmul.f32.gmra.mxu3 %v1512_v13  ;;  %2126 = vmatpush.msra.mxu0 %v1741_v29  ;;  %v1751_v29 = vld [vmem:[%s4398_s9 + $0x718] sm:$0xff]  ;;  %v1734_v18 = vld [vmem:[%s4398_s9 + $0x690] sm:$0xff] }
 0x4df   :  { %v1486_v48 = vmax.f32 %v1338_v46, 0.0  ;;  %1986 = vmatmul.f32.gmra.mxu2 %v1515_v30  ;;  %2097 = vmatpush.msrb.mxu3 %v1728_v31  ;;  %v4287_v31 = vperm.slane %v4140_v3, 5  ;;  %v1750_v30 = vld [vmem:[%s4398_s9 + $0x710] sm:$0xff]  ;;  %v1769_v46 = vld [vmem:[%s4398_s9 + $0x7a8] sm:$0xff] }
 0x4e0   :  { %2032 = vmatmul.f32.vlgmr.msrb.gmra.mxu0 %v1485_v6  ;;  %2152 = vmatpush.msra.mxu1 %v1757_v17  ;;  %v4296_v6 = vperm.slane %v4140_v3, 6 }
 0x4e1   :  { %2058 = vmatmul.f32.vlgmr.msrb.gmra.mxu1 %v1486_v48  ;;  %v1285_v37 = vpop.f32.mrf.mxu3  ;;  %2175 = vmatpush.msra.mxu2 %v1776_v43  ;;  %v1720_v43 = vld [vmem:[%s4398_s9 + $0x620] sm:$0xff]  ;;  %v1733_v48 = vld [vmem:[%s4398_s9 + $0x688] sm:$0xff] }
 0x4e2   :  { %v1286_v16 = vadd.f32 %v1285_v37, %v4192_v12  ;;  %v1363_v56 = vpop.f32.mrf.mxu2  ;;  %2098 = vmatpush.msrb.mxu3 %v1727_v57  ;;  %2127 = vmatpush.msra.mxu0 %v1740_v8 }
 0x4e3   :  { %v1364_v55 = vadd.f32 %v1363_v56, %v4198_v52  ;;  %v1314_v54 = vpop.f32.mrf.mxu0  ;;  %2153 = vmatpush.msra.mxu1 %v1756_v50  ;;  %2176 = vmatpush.msra.mxu2 %v1775_v41  ;;  %v1749_v50 = vld [vmem:[%s4398_s9 + $0x708] sm:$0xff]  ;;  %v1768_v41 = vld [vmem:[%s4398_s9 + $0x7a0] sm:$0xff] }
 0x4e4   :  { %v1484_v63 = vmax.f32 %v1286_v16, 0.0  ;;  %v1315_v38 = vadd.f32 %v1314_v54, %v4155_v32  ;;  %v1340_v28 = vpop.f32.mrf.mxu1  ;;  %2099 = vmatpush.msrb.mxu3 %v1726_v61  ;;  %2128 = vmatpush.msra.mxu0 %v1739_v34  ;;  %v1767_v54 = vld [vmem:[%s4398_s9 + $0x798] sm:$0xff] }
 0x4e5   :  { %v1487_v21 = vmax.f32 %v1364_v55, 0.0  ;;  %v1341_v49 = vadd.f32 %v1340_v28, %v4164_v11  ;;  %2154 = vmatpush.msra.mxu1 %v1755_v1  ;;  %2177 = vmatpush.msra.mxu2 %v1774_v35  ;;  %v1719_v1 = vld [vmem:[%s4398_s9 + $0x618] sm:$0xff]  ;;  %v1748_v55 = vld [vmem:[%s4398_s9 + $0x700] sm:$0xff]  ;;  %v1034_v28 = vperm.slane %v4140_v3, 7 }
 0x4e6   :  { %v1501_v23 = vmax.f32 %v1315_v38, 0.0  ;;  %2006 = vmatmul.f32.vlgmr.msra.gmra.mxu3 %v1484_v63  ;;  %2129 = vmatpush.msra.mxu0 %v1738_v19  ;;  %v1031_v63 = vperm.slane %v4140_v3, 4  ;;  %v1765_v3 = vld [vmem:[%s4398_s9 + $0x788] sm:$0xff] }
 0x4e7   :  { %v1502_v58 = vmax.f32 %v1341_v49, 0.0  ;;  %2084 = vmatmul.f32.vlgmr.msrb.gmra.mxu2 %v1487_v21  ;;  %2100 = vmatpush.msrb.mxu3 %v1725_v15  ;;  %v1718_v15 = vld [vmem:[%s4398_s9 + $0x610] sm:$0xff] }
 0x4e8   :  { %2035 = vmatmul.f32.gmra.mxu0 %v1501_v23  ;;  %2155 = vmatpush.msra.mxu1 %v1754_v26  ;;  %v1766_v21 = vld [vmem:[%s4398_s9 + $0x790] sm:$0xff]  ;;  %v1717_v26 = vld [vmem:[%s4398_s9 + $0x608] sm:$0xff] }
 0x4e9   :  { %2061 = vmatmul.f32.gmra.mxu1 %v1502_v58  ;;  %v1288_v22 = vpop.f32.mrf.mxu3  ;;  %2178 = vmatpush.msra.mxu2 %v1773_v24 }
 0x4ea   :  { %v1289_v51 = vadd.f32 %v1288_v22, %v4192_v12  ;;  %v1366_v59 = vpop.f32.mrf.mxu2  ;;  %2101 = vmatpush.msrb.mxu3 %v1724_v39  ;;  %2130 = vmatpush.msra.mxu0 %v1737_v9  ;;  %v1716_v9 = vld [vmem:[%s4398_s9 + $0x600] sm:$0xff] }
 0x4eb   :  { %v1367_v25 = vadd.f32 %v1366_v59, %v4198_v52  ;;  %v1317_v10 = vpop.f32.mrf.mxu0  ;;  %2156 = vmatpush.msra.mxu1 %v1753_v60  ;;  %2179 = vmatpush.msra.mxu2 %v1772_v20  ;;  %v1764_v60 = vld [vmem:[%s4398_s9 + $0x780] sm:$0xff] }
 0x4ec   :  { %v1500_v36 = vmax.f32 %v1289_v51, 0.0  ;;  %v1318_v33 = vadd.f32 %v1317_v10, %v4155_v32  ;;  %v1343_v2 = vpop.f32.mrf.mxu1  ;;  %2102 = vmatpush.msrb.mxu3 %v1723_v4  ;;  %2131 = vmatpush.msra.mxu0 %v1736_v62  ;;  %v1770_v32 = vld [vmem:[%s4398_s9 + $0x7b0] sm:$0xff] }
 0x4ed   :  { %v1503_v5 = vmax.f32 %v1367_v25, 0.0  ;;  %v1344_v27 = vadd.f32 %v1343_v2, %v4164_v11  ;;  %2157 = vmatpush.msra.mxu1 %v1752_v7  ;;  %2180 = vmatpush.msra.mxu2 %v1771_v14  ;;  %v1721_v11 = vld [vmem:[%s4398_s9 + $0x628] sm:$0xff] }
 0x4ee   :  { %v1517_v13 = vmax.f32 %v1318_v33, 0.0  ;;  %2009 = vmatmul.f32.gmra.mxu3 %v1500_v36  ;;  %2132 = vmatpush.msra.mxu0 %v1735_v0 }
 0x4ef   :  { %v1518_v53 = vmax.f32 %v1344_v27, 0.0  ;;  %2087 = vmatmul.f32.gmra.mxu2 %v1503_v5  ;;  %2103 = vmatpush.msrb.mxu3 %v1722_v47 }
 0x4f0   :  { %2038 = vmatmul.f32.gmra.mxu0 %v1517_v13  ;;  %2158 = vmatpush.msra.mxu1 %v1751_v29 }
 0x4f1   :  { %2064 = vmatmul.f32.gmra.mxu1 %v1518_v53  ;;  %v1291_v17 = vpop.f32.mrf.mxu3  ;;  %2181 = vmatpush.msra.mxu2 %v1770_v32 }
 0x4f2   :  { %v1292_v57 = vadd.f32 %v1291_v17, %v4192_v12  ;;  %v1369_v8 = vpop.f32.mrf.mxu2  ;;  %2104 = vmatpush.msrb.mxu3 %v1721_v11  ;;  %2133 = vmatpush.msra.mxu0 %v1734_v18  ;;  %v1732_v12 = vld [vmem:[%s4398_s9 + $0x680] sm:$0xff] }
 0x4f3   :  { %v1370_v37 = vadd.f32 %v1369_v8, %v4198_v52  ;;  %v1415_v61 = vpop.f32.mrf.mxu0  ;;  %2159 = vmatpush.msra.mxu1 %v1750_v30  ;;  %2182 = vmatpush.msra.mxu2 %v1769_v46 }
 0x4f4   :  { %v1516_v34 = vmax.f32 %v1292_v57, 0.0  ;;  %v1416_v16 = vadd.f32 %v1415_v61, %v4287_v31  ;;  %v1441_v56 = vpop.f32.mrf.mxu1  ;;  %2105 = vmatpush.msrb.mxu3 %v1720_v43  ;;  %2134 = vmatpush.msra.mxu0 %v1733_v48 }
 0x4f5   :  { %v1519_v35 = vmax.f32 %v1370_v37, 0.0  ;;  %v1442_v52 = vadd.f32 %v1441_v56, %v4296_v6  ;;  %2160 = vmatpush.msra.mxu1 %v1749_v50  ;;  %2183 = vmatpush.msra.mxu2 %v1768_v41 }
 0x4f6   :  { %v1489_v19 = vmax.f32 %v1416_v16, 0.0  ;;  %2012 = vmatmul.f32.gmra.mxu3 %v1516_v34  ;;  %2135 = vmatpush.msra.mxu0 %v1732_v12 }
 0x4f7   :  { %v1490_v38 = vmax.f32 %v1442_v52, 0.0  ;;  %2090 = vmatmul.f32.gmra.mxu2 %v1519_v35  ;;  %2106 = vmatpush.msrb.mxu3 %v1719_v1 }
 0x4f8   :  { %2161 = vmatpush.msra.mxu1 %v1748_v55  ;;  %2184 = vmatpush.msra.mxu2 %v1767_v54  ;;  %v2426_v55 = vld [vmem:[%s4395_s6 + $0x3] ss:$0 sm:$0xff] }
 0x4f9   :  { %2136 = vmatmul.f32.vlgmr.msra.gmra.mxu0 %v1489_v19  ;;  %2162 = vmatmul.f32.vlgmr.msra.gmra.mxu1 %v1490_v38  ;;  %v1389_v49 = vpop.f32.mrf.mxu3 }
 0x4fa   :  { %v1390_v23 = vadd.f32 %v1389_v49, %v1031_v63  ;;  %v1467_v24 = vpop.f32.mrf.mxu2  ;;  %2107 = vmatpush.msrb.mxu3 %v1718_v15  ;;  %2185 = vmatpush.msra.mxu2 %v1766_v21 }
 0x4fb   :  { %v1468_v58 = vadd.f32 %v1467_v24, %v1034_v28  ;;  %v1418_v39 = vpop.f32.mrf.mxu0 }
 0x4fc   :  { %v1488_v20 = vmax.f32 %v1390_v23, 0.0  ;;  %v1419_v22 = vadd.f32 %v1418_v39, %v4287_v31  ;;  %v1444_v4 = vpop.f32.mrf.mxu1  ;;  %2108 = vmatpush.msrb.mxu3 %v1717_v26  ;;  %2186 = vmatpush.msra.mxu2 %v1765_v3 }
 0x4fd   :  { %v1491_v62 = vmax.f32 %v1468_v58, 0.0  ;;  %v1445_v51 = vadd.f32 %v1444_v4, %v4296_v6 }
 0x4fe   :  { %v1505_v59 = vmax.f32 %v1419_v22, 0.0  ;;  %2109 = vmatpush.msrb.mxu3 %v1716_v9  ;;  %2187 = vmatpush.msra.mxu2 %v1764_v60 }
 0x4ff   :  { %v1506_v7 = vmax.f32 %v1445_v51, 0.0  ;;  %2110 = vmatmul.f32.vlgmr.msrb.gmra.mxu3 %v1488_v20  ;;  %2188 = vmatmul.f32.vlgmr.msra.gmra.mxu2 %v1491_v62 }
 0x501   :  { %2139 = vmatmul.f32.gmra.mxu0 %v1505_v59  ;;  %2165 = vmatmul.f32.gmra.mxu1 %v1506_v7  ;;  %v1392_v14 = vpop.f32.mrf.mxu3 }
 0x502   :  { %v1393_v25 = vadd.f32 %v1392_v14, %v1031_v63  ;;  %v1470_v10 = vpop.f32.mrf.mxu2 }
 0x503   :  { %v1471_v0 = vadd.f32 %v1470_v10, %v1034_v28  ;;  %v1421_v36 = vpop.f32.mrf.mxu0 }
 0x504   :  { %v1504_v33 = vmax.f32 %v1393_v25, 0.0  ;;  %v1422_v2 = vadd.f32 %v1421_v36, %v4287_v31  ;;  %v1447_v47 = vpop.f32.mrf.mxu1 }
 0x505   :  { %v1507_v5 = vmax.f32 %v1471_v0, 0.0  ;;  %v1448_v27 = vadd.f32 %v1447_v47, %v4296_v6 }
 0x506   :  { %v1521_v29 = vmax.f32 %v1422_v2, 0.0 }
 0x507   :  { %v1522_v13 = vmax.f32 %v1448_v27, 0.0  ;;  %2113 = vmatmul.f32.gmra.mxu3 %v1504_v33  ;;  %2191 = vmatmul.f32.gmra.mxu2 %v1507_v5 }
 0x509   :  { %2142 = vmatmul.f32.gmra.mxu0 %v1521_v29  ;;  %2168 = vmatmul.f32.gmra.mxu1 %v1522_v13  ;;  %v1395_v32 = vpop.f32.mrf.mxu3 }
 0x50a   :  { %v1396_v53 = vadd.f32 %v1395_v32, %v1031_v63  ;;  %v1473_v11 = vpop.f32.mrf.mxu2 }
 0x50b   :  { %v1474_v18 = vadd.f32 %v1473_v11, %v1034_v28  ;;  %v1825_v17 = vpop.f32.mrf.mxu0 }
 0x50c   :  { %v1520_v30 = vmax.f32 %v1396_v53, 0.0  ;;  %v1851_v31 = vpop.f32.mrf.mxu1 }
 0x50d   :  { %v1523_v46 = vmax.f32 %v1474_v18, 0.0 }
 0x50f   :  { %2116 = vmatmul.f32.gmra.mxu3 %v1520_v30  ;;  %2194 = vmatmul.f32.gmra.mxu2 %v1523_v46 }
 0x511   :  { %v1799_v57 = vpop.f32.mrf.mxu3 }
 0x512   :  { %v1877_v6 = vpop.f32.mrf.mxu2  ;;  %v1800_v19 = vadd.f32 %v2426_v55, %v1799_v57 }
 0x513   :  { %v1828_v43 = vpop.f32.mrf.mxu0 }
 0x514   :  { %v1854_v48 = vpop.f32.mrf.mxu1  ;;  %v1826_v15 = vadd.f32 %v1825_v17, %v1800_v19 }
 0x516   :  { %v1852_v21 = vadd.f32 %v1851_v31, %v1826_v15 }
 0x518   :  { %v1878_v58 = vadd.f32 %v1877_v6, %v1852_v21 }
 0x51b   :  { %v1802_v41 = vpop.f32.mrf.mxu3 }
 0x51c   :  { %v1880_v37 = vpop.f32.mrf.mxu2  ;;  %v1803_v49 = vadd.f32 %v2426_v55, %v1802_v41 }
 0x51e   :  { %v1829_v39 = vadd.f32 %v1828_v43, %v1803_v49 }
 0x520   :  { %v1855_v60 = vadd.f32 %v1854_v48, %v1829_v39 }
 0x522   :  { %v1881_v59 = vadd.f32 %v1880_v37, %v1855_v60 }
 0x53d   :  { %v1831_v8 = vpop.f32.mrf.mxu0 }
 0x53e   :  { %v1857_v50 = vpop.f32.mrf.mxu1 }
 0x545   :  { %v1929_v61 = vpop.f32.mrf.mxu0 }
 0x546   :  { %v1955_v12 = vpop.f32.mrf.mxu1 }
 0x549   :  { %v1805_v34 = vpop.f32.mrf.mxu3 }
 0x54a   :  { %v1883_v16 = vpop.f32.mrf.mxu2  ;;  %v1806_v20 = vadd.f32 %v2426_v55, %v1805_v34 }
 0x54c   :  { %v1832_v7 = vadd.f32 %v1831_v8, %v1806_v20 }
 0x54d   :  { %v1932_v56 = vpop.f32.mrf.mxu0 }
 0x54e   :  { %v1958_v1 = vpop.f32.mrf.mxu1  ;;  %v1858_v0 = vadd.f32 %v1857_v50, %v1832_v7 }
 0x550   :  { %v1884_v5 = vadd.f32 %v1883_v16, %v1858_v0 }
 0x551   :  { %v1903_v35 = vpop.f32.mrf.mxu3 }
 0x552   :  { %v1981_v52 = vpop.f32.mrf.mxu2  ;;  %v1904_v9 = vadd.f32 %v1903_v35, %v1878_v58 }
 0x554   :  { %v1930_v62 = vadd.f32 %v1929_v61, %v1904_v9 }
 0x555   :  { %v1935_v54 = vpop.f32.mrf.mxu0 }
 0x556   :  { %v1961_v38 = vpop.f32.mrf.mxu1  ;;  %v1956_v25 = vadd.f32 %v1955_v12, %v1930_v62 }
 0x558   :  { %v1982_v2 = vadd.f32 %v1981_v52, %v1956_v25 }
 0x559   :  { %v1906_v63 = vpop.f32.mrf.mxu3 }
 0x55a   :  { %v1984_v28 = vpop.f32.mrf.mxu2  ;;  %v1907_v10 = vadd.f32 %v1906_v63, %v1881_v59 }
 0x55c   :  { %v1933_v47 = vadd.f32 %v1932_v56, %v1907_v10 }
 0x55d   :  { %v2033_v3 = vpop.f32.mrf.mxu0 }
 0x55e   :  { %v2059_v24 = vpop.f32.mrf.mxu1  ;;  %v1959_v13 = vadd.f32 %v1958_v1, %v1933_v47 }
 0x560   :  { %v1985_v46 = vadd.f32 %v1984_v28, %v1959_v13 }
 0x561   :  { %v1909_v26 = vpop.f32.mrf.mxu3 }
 0x562   :  { %v1987_v23 = vpop.f32.mrf.mxu2  ;;  %v1910_v32 = vadd.f32 %v1909_v26, %v1884_v5 }
 0x564   :  { %v1936_v17 = vadd.f32 %v1935_v54, %v1910_v32 }
 0x565   :  { %v2036_v51 = vpop.f32.mrf.mxu0 }
 0x566   :  { %v2062_v14 = vpop.f32.mrf.mxu1  ;;  %v1962_v48 = vadd.f32 %v1961_v38, %v1936_v17 }
 0x568   :  { %v1988_v37 = vadd.f32 %v1987_v23, %v1962_v48 }
 0x569   :  { %v2007_v22 = vpop.f32.mrf.mxu3 }
 0x56a   :  { %v2085_v4 = vpop.f32.mrf.mxu2  ;;  %v2008_v27 = vadd.f32 %v2007_v22, %v1982_v2 }
 0x56c   :  { %v2034_v11 = vadd.f32 %v2033_v3, %v2008_v27 }
 0x56d   :  { %v2039_v29 = vpop.f32.mrf.mxu0 }
 0x56e   :  { %v2065_v53 = vpop.f32.mrf.mxu1  ;;  %v2060_v31 = vadd.f32 %v2059_v24, %v2034_v11 }
 0x570   :  { %v2086_v6 = vadd.f32 %v2085_v4, %v2060_v31 }
 0x571   :  { %v2010_v36 = vpop.f32.mrf.mxu3 }
 0x572   :  { %v2088_v33 = vpop.f32.mrf.mxu2  ;;  %v2011_v43 = vadd.f32 %v2010_v36, %v1985_v46 }
 0x574   :  { %v2037_v8 = vadd.f32 %v2036_v51, %v2011_v43 }
 0x576   :  { %v2137_v57 = vpop.f32.mrf.mxu0  ;;  %v2163_v50 = vpop.f32.mrf.mxu1  ;;  %v2063_v34 = vadd.f32 %v2062_v14, %v2037_v8 }
 0x578   :  { %v2089_v35 = vadd.f32 %v2088_v33, %v2063_v34  ;;  %v2277_v34 = vlaneseq }
 0x579   :  { %v2013_v18 = vpop.f32.mrf.mxu3 }
 0x57a   :  { %v2091_v30 = vpop.f32.mrf.mxu2  ;;  %v2014_v16 = vadd.f32 %v2013_v18, %v1988_v37 }
 0x57c   :  { %v2040_v52 = vadd.f32 %v2039_v29, %v2014_v16 }
 0x57e   :  { %v2140_v19 = vpop.f32.mrf.mxu0  ;;  %v2166_v28 = vpop.f32.mrf.mxu1  ;;  %v2066_v15 = vadd.f32 %v2065_v53, %v2040_v52  ;;  %v2280_v52 = vshrl.u32 %v2277_v34, 7 }
 0x580   :  { %v2092_v23 = vadd.f32 %v2091_v30, %v2066_v15 }
 0x582   :  { %v2111_v41 = vpop.f32.mrf.mxu3  ;;  %v2189_v12 = vpop.f32.mrf.mxu2 }
 0x583   :  { %v2112_v61 = vadd.f32 %v2111_v41, %v2086_v6 }
 0x585   :  { %v2138_v56 = vadd.f32 %v2137_v57, %v2112_v61 }
 0x586   :  { %v2143_v60 = vpop.f32.mrf.mxu0  ;;  %v2169_v4 = vpop.f32.mrf.mxu1 }
 0x587   :  { %v2164_v1 = vadd.f32 %v2163_v50, %v2138_v56 }
 0x589   :  { %v2190_v55 = vadd.f32 %v2189_v12, %v2164_v1 }
 0x58a   :  { %v2114_v54 = vpop.f32.mrf.mxu3  ;;  %v2192_v26 = vpop.f32.mrf.mxu2 }
 0x58b   :  { %v2115_v63 = vadd.f32 %v2114_v54, %v2089_v35  ;;  %v2198_v38 = vadd.f32 %v2190_v55, %v3346_v42 }
 0x58d   :  { %v2141_v21 = vadd.f32 %v2140_v19, %v2115_v63  ;;  %v2201_v49 = vsel %vm4489_vm3, %v2198_v38, 0.0  ;;  %v2281_v63 = vmul.u32 12, %v2280_v52 }
 0x58e   :  { %2202 = vadd.xlane.f32.xlu2 %v2201_v49 }
 0x58f   :  { %v2167_v3 = vadd.f32 %v2166_v28, %v2141_v21 }
 0x591   :  { %v2193_v24 = vadd.f32 %v2192_v26, %v2167_v3  ;;  %v2278_v26 = vand.u32 127, %v2277_v34  ;;  %v2283_v3 = vadd.s32 12, %v2281_v63 }
 0x592   :  { %v2117_v58 = vpop.f32.mrf.mxu3  ;;  %v2195_v62 = vpop.f32.mrf.mxu2 }
 0x593   :  { %v2118_v39 = vadd.f32 %v2117_v58, %v2092_v23  ;;  %v2199_v9 = vadd.f32 %v2193_v24, %v3356_v45  ;;  %v2427_v58 = vld [vmem:[%s4395_s6 + $0x4] ss:$0 sm:$0xff]  ;;  %vm2282_vm9 = vcmp.ge.s32.totalorder %v2278_v26, %v2281_v63  ;;  %vm2284_vm3 = vcmp.lt.s32.totalorder %v2278_v26, %v2283_v3 }
 0x595   :  { %v2144_v20 = vadd.f32 %v2143_v60, %v2118_v39  ;;  %v2204_v22 = vsel %vm4490_vm15, %v2199_v9, 0.0  ;;  %v2428_v60 = vld [vmem:[%s4395_s6 + $0x5] ss:$0 sm:$0xff]  ;;  %vm2285_vm15 = vmand %vm2282_vm9, %vm2284_vm3 }
 0x596   :  { %2205 = vadd.xlane.f32.xlu1 %v2204_v22 }
 0x597   :  { %v2170_v42 = vadd.f32 %v2169_v4, %v2144_v20 }
 0x599   :  { %v2196_v51 = vadd.f32 %v2195_v62, %v2170_v42 }
 0x59b   :  { %v2200_v59 = vadd.f32 %v2196_v51, %v3392_v44  ;;  %v2546_v51 = vmov 0.0  }
 0x59d   :  { %v2207_v7 = vsel %vm4491_vm4, %v2200_v59, 0.0  ;;  %vm2287_vm4 = vcmask 195584  }
 0x59e   :  { %2208 = vadd.xlane.f32.xlu0 %v2207_v7  ;;  %v2311_v7 = vld [vmem:[%s4399_s10] sm:$0xff] }
 0x601   :  { %v2203_v14 = vpop.xlane.xlu2 %2202 }
 0x602   :  { %v2210_v25 = vmul.f32 %v2203_v14, %v3312_v40 }
 0x604   :  { %v4360_v10 = vsub.f32 %v2198_v38, %v2210_v25  ;;  %v2429_v25 = vld [vmem:[%s4400_s11] ss:$0 sm:$0xff] }
 0x606   :  { %v2216_v45 = vmul.f32 %v4360_v10, %v4360_v10 }
 0x608   :  { %v2219_v0 = vsel %vm4492_vm13, %v2216_v45, 0.0  ;;  %vm4494_vm13 = vmmov %vm4463_vm0 }
 0x609   :  { %2220 = vadd.xlane.f32.xlu2 %v2219_v0  ;;  %v2206_v36 = vpop.xlane.xlu1 %2205 }
 0x60a   :  { %v2211_v33 = vmul.f32 %v2206_v36, %v3312_v40 }
 0x60c   :  { %v2214_v2 = vsub.f32 %v2199_v9, %v2211_v33 }
 0x60e   :  { %v2217_v47 = vmul.f32 %v2214_v2, %v2214_v2 }
 0x610   :  { %v2222_v44 = vsel %vm4493_vm10, %v2217_v47, 0.0 }
 0x611   :  { %v2209_v5 = vpop.xlane.xlu0 %2208  ;;  %2223 = vadd.xlane.f32.xlu1 %v2222_v44 }
 0x612   :  { %v2212_v27 = vmul.f32 %v2209_v5, %v3312_v40 }
 0x614   :  { %v2215_v29 = vsub.f32 %v2200_v59, %v2212_v27  ;;  %v2286_v59 = vsel %vm2285_vm15, 0.083333336, %v2546_v51 }
 0x616   :  { %v2218_v13 = vmul.f32 %v2215_v29, %v2215_v29 }
 0x618   :  { %v2225_v32 = vsel %vm4463_vm0, %v2218_v13, 0.0 }
 0x619   :  { %2226 = vadd.xlane.f32.xlu0 %v2225_v32 }
 0x67c   :  { %v2221_v53 = vpop.xlane.xlu2 %2220 }
 0x67d   :  { %v2228_v11 = vmul.f32 %v2221_v53, %v3312_v40 }
 0x67f   :  { %v2231_v18 = vadd.f32 1e-05, %v2228_v11 }
 0x681   :  { %2510 = vrsqrt.f32 %v2231_v18  ;;  %vm2240_vm12 = vweird.f32 %v2231_v18 }
 0x684   :  { %v2224_v30 = vpop.xlane.xlu1 %2223 }
 0x685   :  { %v2229_v46 = vmul.f32 %v2224_v30, %v3312_v40 }
 0x687   :  { %v2232_v17 = vadd.f32 1e-05, %v2229_v46  ;;  %v2511_v31 = vpop.eup %2510 }
 0x688   :  { %v2235_v43 = vmul.f32 %v2511_v31, %v2231_v18  ;;  %vm2241_vm8 = vweird.f32 %v2511_v31 }
 0x689   :  { %2512 = vrsqrt.f32 %v2232_v17  ;;  %vm2250_vm11 = vweird.f32 %v2232_v17  ;;  %vm2242_vm14 = vmor %vm2240_vm12, %vm2241_vm8 }
 0x68a   :  { %v2236_v50 = vmul.f32 %v2511_v31, %v2235_v43 }
 0x68c   :  { %v2227_v48 = vpop.xlane.xlu0 %2226  ;;  %v2237_v61 = vmul.f32 0.5, %v2236_v50 }
 0x68d   :  { %v2230_v57 = vmul.f32 %v2227_v48, %v3312_v40 }
 0x68e   :  { %v2238_v1 = vsub.f32 1.5, %v2237_v61 }
 0x68f   :  { %v2513_v6 = vpop.eup %2512  ;;  %v2233_v8 = vadd.f32 1e-05, %v2230_v57 }
 0x690   :  { %v2245_v41 = vmul.f32 %v2513_v6, %v2232_v17  ;;  %vm2251_vm5 = vweird.f32 %v2513_v6  ;;  %v2239_v54 = vmul.f32 %v2511_v31, %v2238_v1 }
 0x691   :  { %2514 = vrsqrt.f32 %v2233_v8  ;;  %vm2252_vm7 = vmor %vm2250_vm11, %vm2251_vm5  ;;  %vm2260_vm6 = vweird.f32 %v2233_v8 }
 0x692   :  { %v2246_v37 = vmul.f32 %v2513_v6, %v2245_v41  ;;  %v2243_v15 = vsel %vm2242_vm14, %v2511_v31, %v2239_v54 }
 0x693   :  { %v2264_v39 = vmul.f32 %v2243_v15, %v4360_v10 }
 0x694   :  { %v2247_v12 = vmul.f32 0.5, %v2246_v37 }
 0x695   :  { %v2269_v4 = vmul.f32 %v2427_v58, %v2264_v39 }
 0x696   :  { %v2248_v16 = vsub.f32 1.5, %v2247_v12 }
 0x697   :  { %v2515_v56 = vpop.eup %2514  ;;  %v2274_v62 = vadd.f32 %v2428_v60, %v2269_v4 }
 0x698   :  { %v2255_v35 = vmul.f32 %v2515_v56, %v2233_v8  ;;  %v2249_v55 = vmul.f32 %v2513_v6, %v2248_v16  ;;  %vm2261_vm2 = vweird.f32 %v2515_v56 }
 0x699   :  { %vm2262_vm1 = vmor %vm2260_vm6, %vm2261_vm2 }
 0x69a   :  { %v2256_v19 = vmul.f32 %v2515_v56, %v2255_v35  ;;  %v2253_v38 = vsel %vm2252_vm7, %v2513_v6, %v2249_v55 }
 0x69b   :  { %v2265_v49 = vmul.f32 %v2253_v38, %v2214_v2 }
 0x69c   :  { %v2257_v40 = vmul.f32 0.5, %v2256_v19 }
 0x69d   :  { %v2270_v20 = vmul.f32 %v2427_v58, %v2265_v49 }
 0x69e   :  { %v2258_v28 = vsub.f32 1.5, %v2257_v40 }
 0x69f   :  { %v2275_v42 = vadd.f32 %v2428_v60, %v2270_v20 }
 0x6a0   :  { %v2259_v21 = vmul.f32 %v2515_v56, %v2258_v28 }
 0x6a2   :  { %v2263_v23 = vsel %vm2262_vm1, %v2515_v56, %v2259_v21 }
 0x6a3   :  { %v2266_v24 = vmul.f32 %v2263_v23, %v2215_v29 }
 0x6a5   :  { %v2271_v9 = vmul.f32 %v2427_v58, %v2266_v24 }
 0x6a7   :  { %v2276_v22 = vadd.f32 %v2428_v60, %v2271_v9 }
 0x6a9   :  { %2304 = vmatpush.msra.mxu3 %v2276_v22 }
 0x6ab   :  { %2305 = vmatpush.msra.mxu3 %v2275_v42 }
 0x6ad   :  { %2306 = vmatpush.msra.mxu3 %v2274_v62 }
 0x6ae   :  { %2414 = vmatmul.msk.f32.vlgmr.msra.gmra.mxu3 %vm2287_vm4, %v2286_v59 }
 0x6af   :  { %2334 = vmatpush.msrb.mxu3 %v2311_v7 }
 0x731   :  { %v2308_v14 = vpop.f32.mrf.mxu3 }
 0x732   :  { %2415 = vmatmul.msk.f32.vlgmr.msrb.gmra.mxu3 %vm4494_vm13, %v2308_v14 }
 0x7b5   :  { %v2336_v10 = vpop.f32.mrf.mxu3 }
 0x7b6   :  { %v2337_v45 = vadd.f32 %v2429_v25, %v2336_v10 }
 0x7b8   :  { %2339 = vst [vmem:[#allocation2] sm:$0x3] %v2337_v45 }
 0x7b9   :  { %2350 = dma.vmem_to_hbm [thread:$0]  %s2346_s2, 32, %s2348_s13, [#allocation3]  }
 0x7ba   :  { %2540 = dma.done.wait [#allocation3], 32  }
 0x7bb   :  { %2541 = vsyncadd [#allocation3], 4294967264 }
 0x7bc   :  { %2355 = vsyncpa [#allocation3], 1 }

</bundles_post_ra>
